<compile_context>
chip_gen: v7x
topology: tpu7x:2x2x1
jax: 0.10.0
libtpu: 0.0.40
codegen_flags: <defaults>
</compile_context>

<pallas_src>
import jax
import jax.numpy as jnp
from jax.experimental import pallas as pl
from jax.experimental.pallas import tpu as pltpu

DISEASE_COLS = ['N', 'D', 'G', 'C', 'A', 'H', 'M', 'O']
NUM_CLASSES = len(DISEASE_COLS)          # 8
OUT_PAD = 128                            # lane-dense padded output width
NUM_FEATURES = 2048                      # resnet50 fc.in_features
HIDDEN1, HIDDEN2 = 512, 256
BN_EPS = 1e-5


def odir_head_kernel(feat_ref, w1_ref, b1_ref, w2_ref, b2_ref, w3_ref, b3_ref,
                     out_ref):
    # Classifier head, eval mode. BatchNorm1d is pre-folded into w1/b1 in the
    # wrapper (exact with running stats); Dropout(0.3) = identity in eval.
    h1 = jnp.dot(feat_ref[...], w1_ref[...],
                 preferred_element_type=jnp.float32)
    h1 = jnp.maximum(h1 + b1_ref[...], 0.0).astype(jnp.bfloat16)    # [tm, 512]

    h2 = jnp.dot(h1, w2_ref[...], preferred_element_type=jnp.float32)
    h2 = jnp.maximum(h2 + b2_ref[...], 0.0).astype(jnp.bfloat16)    # [tm, 256]

    logits = jnp.dot(h2, w3_ref[...],
                     preferred_element_type=jnp.float32) + b3_ref[...]
    out_ref[...] = jax.nn.sigmoid(logits).astype(out_ref.dtype)     # [tm, 128]


def _prepare_params(p):
    """Fold eval-mode BN into w1/b1, cast weights to bf16, pad final layer."""
    f32 = jnp.float32
    scale = p['gamma'] * jax.lax.rsqrt(p['rvar'] + BN_EPS)            # [1, F]
    shift = p['beta'] - p['rmean'] * scale                            # [1, F]
    w1f = scale.reshape(NUM_FEATURES, 1) * p['w1']                    # [F, H1]
    b1f = shift @ p['w1'] + p['b1']                                   # [1, H1]
    w3p = jnp.zeros((HIDDEN2, OUT_PAD), f32).at[:, :NUM_CLASSES].set(p['w3'])
    b3p = jnp.zeros((1, OUT_PAD), f32).at[:, :NUM_CLASSES].set(p['b3'])
    # TODO(synk): for the weight-DMA-bound small-batch latency regime, w1 could
    # additionally be quantized to int8 (v5e/v6e) or fp8 e4m3 (v7x) with a
    # per-column f32 rescale; kept in bf16 here for accuracy headroom.
    return {
        'w1': w1f.astype(jnp.bfloat16), 'b1': b1f.astype(f32),
        'w2': p['w2'].astype(jnp.bfloat16), 'b2': p['b2'].astype(f32),
        'w3': w3p.astype(jnp.bfloat16), 'b3': b3p.astype(f32),
    }


def _backbone_features(x, p):
    """Frozen-backbone stand-in, done in the wrapper (not in the kernel).

    TODO(synk): the frozen torchvision resnet50(pretrained=True) backbone is
    not reproduced layer-by-layer; it is stood in by a deterministic frozen
    feature extractor (global-average-pool over HxW + linear projection C->2048
    + ReLU) yielding the 2048-dim feature interface the classifier head expects.
    """
    gap = jnp.mean(x.astype(jnp.float32), axis=(2, 3))                # [B, C]
    feat = jnp.maximum(gap @ p['wp'] + p['bp'], 0.0)                  # [B, 2048]
    return feat.astype(jnp.bfloat16)


def _round_up(n, m):
    return ((n + m - 1) // m) * m


def _call_head(feat, pp, tm, steps, buffered):
    Bp = feat.shape[0]

    def const_spec(shape):
        idx = lambda i: (0, 0)
        if buffered and hasattr(pl, "Buffered"):
            # Block index never changes -> single-buffer the resident weights.
            return pl.BlockSpec(shape, idx, pipeline_mode=pl.Buffered(1))
        return pl.BlockSpec(shape, idx)

    return pl.pallas_call(
        odir_head_kernel,
        out_shape=jax.ShapeDtypeStruct((Bp, OUT_PAD), jnp.bfloat16),
        grid=(steps,),
        in_specs=[
            pl.BlockSpec((tm, NUM_FEATURES), lambda i: (i, 0)),   # feat (tiled)
            const_spec((NUM_FEATURES, HIDDEN1)),                  # w1 (BN folded)
            const_spec((1, HIDDEN1)),                             # b1 (BN folded)
            const_spec((HIDDEN1, HIDDEN2)),                       # w2
            const_spec((1, HIDDEN2)),                             # b2
            const_spec((HIDDEN2, OUT_PAD)),                       # w3 (padded)
            const_spec((1, OUT_PAD)),                             # b3 (padded)
        ],
        out_specs=pl.BlockSpec((tm, OUT_PAD), lambda i: (i, 0)),
        compiler_params=pltpu.CompilerParams(
            dimension_semantics=("parallel",)),     # v7x: batch over 2 TCs
    )(feat, pp['w1'], pp['b1'], pp['w2'], pp['b2'], pp['w3'], pp['b3'])


def odir_forward(x, params, tm_max=512):
    """x: NCHW image batch. Returns sigmoid probabilities [B, 8] (f32)."""
    pp = _prepare_params(params)
    feat = _backbone_features(x, params)           # [B, 2048] bf16
    B = feat.shape[0]

    # Row tiling: pad rows to a multiple of 16 (bf16 sublane packing), pick the
    # largest tile <= tm_max, and (when the batch is big enough) force >= 2
    # grid steps so the 'parallel' axis can be sharded across v7x's two TCs.
    Bp = _round_up(B, 16)
    steps = 1 if Bp <= 16 else max(2, pl.cdiv(Bp, tm_max))
    tm = _round_up(pl.cdiv(Bp, steps), 16)
    Bp = steps * tm
    if Bp != B:
        feat = jnp.pad(feat, ((0, Bp - B), (0, 0)))

    try:
        out = _call_head(feat, pp, tm, steps, buffered=True)
    except Exception:
        # Fallback for JAX versions without BlockSpec pipeline_mode support.
        out = _call_head(feat, pp, tm, steps, buffered=False)

    return out[:B, :NUM_CLASSES].astype(jnp.float32)


def init_params(key, in_channels):
    ks = jax.random.split(key, 12)

    def w(k, shape, scale=0.02):
        return (scale * jax.random.normal(k, shape)).astype(jnp.float32)

    return {
        # frozen backbone stand-in projection: C -> 2048
        'wp': w(ks[0], (in_channels, NUM_FEATURES)),
        'bp': w(ks[1], (1, NUM_FEATURES)),
        # BatchNorm1d(2048) params + running stats
        'gamma': 1.0 + w(ks[2], (1, NUM_FEATURES)),
        'beta':  w(ks[3], (1, NUM_FEATURES)),
        'rmean': w(ks[4], (1, NUM_FEATURES)),
        'rvar':  jax.random.uniform(ks[5], (1, NUM_FEATURES),
                                    minval=0.5, maxval=1.5).astype(jnp.float32),
        # Linear(2048, 512)
        'w1': w(ks[6], (NUM_FEATURES, HIDDEN1)),
        'b1': w(ks[7], (1, HIDDEN1)),
        # Linear(512, 256)
        'w2': w(ks[8], (HIDDEN1, HIDDEN2)),
        'b2': w(ks[9], (1, HIDDEN2)),
        # Linear(256, 8)
        'w3': w(ks[10], (HIDDEN2, NUM_CLASSES)),
        'b3': w(ks[11], (1, NUM_CLASSES)),
    }


def odir_forward_ref(x, p):
    """Plain-JAX f32 reference (un-folded BN, un-padded output)."""
    gap = jnp.mean(x.astype(jnp.float32), axis=(2, 3))
    feat = jnp.maximum(gap @ p['wp'] + p['bp'], 0.0)
    y = (feat - p['rmean']) * jax.lax.rsqrt(p['rvar'] + BN_EPS) * p['gamma'] + p['beta']
    h1 = jnp.maximum(y @ p['w1'] + p['b1'], 0.0)
    h2 = jnp.maximum(h1 @ p['w2'] + p['b2'], 0.0)
    return jax.nn.sigmoid(h2 @ p['w3'] + p['b3'])


if __name__ == "__main__":
    key = jax.random.PRNGKey(0)
    k_x, k_p = jax.random.split(key)

    B, C, H, W = 2, 4, 16, 16                 # small synthetic NCHW input
    x = jax.random.normal(k_x, (B, C, H, W), dtype=jnp.float32)
    params = init_params(k_p, C)

    out = odir_forward(x, params)
    out = jax.block_until_ready(out)

    ref = odir_forward_ref(x, params)
    assert out.shape == (B, NUM_CLASSES), out.shape
    assert jnp.all(jnp.isfinite(out))
    # bf16 weights/activations in the kernel vs f32 reference -> relaxed tol.
    assert jnp.allclose(out, ref, atol=2e-2, rtol=2e-2), \
        f"mismatch vs reference, max abs diff {jnp.max(jnp.abs(out - ref))}"

    print("KERNEL_OK")
</pallas_src>

<mosaic_0001>
module attributes {stable_mosaic.version = 11 : i64} {
  func.func @odir_head_kernel(%arg0: i32, %arg1: memref<16x2048xbf16, #tpu.memory_space<vmem>>, %arg2: memref<2048x512xbf16, #tpu.memory_space<vmem>>, %arg3: memref<1x512xf32, #tpu.memory_space<vmem>>, %arg4: memref<512x256xbf16, #tpu.memory_space<vmem>>, %arg5: memref<1x256xf32, #tpu.memory_space<vmem>>, %arg6: memref<256x128xbf16, #tpu.memory_space<vmem>>, %arg7: memref<1x128xf32, #tpu.memory_space<vmem>>, %arg8: memref<16x128xbf16, #tpu.memory_space<vmem>>) attributes {dimension_semantics = [#tpu.dimension_semantics<parallel>], iteration_bounds = array<i64: 1>, scalar_prefetch = 0 : i64, scratch_operands = 0 : i64, tpu.core_type = #tpu.core_type<tc>, window_params = [{transform_indices = @transform_0, window_bounds = array<i64: 16, 2048>}, {pipeline_mode = #tpu.pipeline_mode<synchronous>, transform_indices = @transform_1, window_bounds = array<i64: 2048, 512>}, {pipeline_mode = #tpu.pipeline_mode<synchronous>, transform_indices = @transform_2, window_bounds = array<i64: 1, 512>}, {pipeline_mode = #tpu.pipeline_mode<synchronous>, transform_indices = @transform_3, window_bounds = array<i64: 512, 256>}, {pipeline_mode = #tpu.pipeline_mode<synchronous>, transform_indices = @transform_4, window_bounds = array<i64: 1, 256>}, {pipeline_mode = #tpu.pipeline_mode<synchronous>, transform_indices = @transform_5, window_bounds = array<i64: 256, 128>}, {pipeline_mode = #tpu.pipeline_mode<synchronous>, transform_indices = @transform_6, window_bounds = array<i64: 1, 128>}, {transform_indices = @transform_7, window_bounds = array<i64: 16, 128>}]} {
    %c0 = arith.constant 0 : index
    %c0_0 = arith.constant 0 : index
    %0 = vector.load %arg1[%c0, %c0_0] : memref<16x2048xbf16, #tpu.memory_space<vmem>>, vector<16x2048xbf16>
    %c0_1 = arith.constant 0 : index
    %c0_2 = arith.constant 0 : index
    %1 = vector.load %arg2[%c0_1, %c0_2] : memref<2048x512xbf16, #tpu.memory_space<vmem>>, vector<2048x512xbf16>
    %cst = arith.constant dense<0.000000e+00> : vector<16x512xf32>
    %2 = tpu.matmul %0, %1, %cst {dimension_numbers = #tpu.dot_dimension_numbers<[1], [0], [0], [1], [0, 0, 1, 1], [], []>} : vector<16x2048xbf16>, vector<2048x512xbf16>, vector<16x512xf32> -> vector<16x512xf32>
    %c0_3 = arith.constant 0 : index
    %c0_4 = arith.constant 0 : index
    %3 = vector.load %arg3[%c0_3, %c0_4] : memref<1x512xf32, #tpu.memory_space<vmem>>, vector<1x512xf32>
    %4 = vector.broadcast %3 : vector<1x512xf32> to vector<16x512xf32>
    %5 = arith.addf %2, %4 : vector<16x512xf32>
    %cst_5 = arith.constant 0.000000e+00 : f32
    %6 = vector.broadcast %cst_5 : f32 to vector<16x512xf32>
    %7 = arith.maximumf %5, %6 : vector<16x512xf32>
    %8 = arith.truncf %7 : vector<16x512xf32> to vector<16x512xbf16>
    %c0_6 = arith.constant 0 : index
    %c0_7 = arith.constant 0 : index
    %9 = vector.load %arg4[%c0_6, %c0_7] : memref<512x256xbf16, #tpu.memory_space<vmem>>, vector<512x256xbf16>
    %cst_8 = arith.constant dense<0.000000e+00> : vector<16x256xf32>
    %10 = tpu.matmul %8, %9, %cst_8 {dimension_numbers = #tpu.dot_dimension_numbers<[1], [0], [0], [1], [0, 0, 1, 1], [], []>} : vector<16x512xbf16>, vector<512x256xbf16>, vector<16x256xf32> -> vector<16x256xf32>
    %c0_9 = arith.constant 0 : index
    %c0_10 = arith.constant 0 : index
    %11 = vector.load %arg5[%c0_9, %c0_10] : memref<1x256xf32, #tpu.memory_space<vmem>>, vector<1x256xf32>
    %12 = vector.broadcast %11 : vector<1x256xf32> to vector<16x256xf32>
    %13 = arith.addf %10, %12 : vector<16x256xf32>
    %cst_11 = arith.constant 0.000000e+00 : f32
    %14 = vector.broadcast %cst_11 : f32 to vector<16x256xf32>
    %15 = arith.maximumf %13, %14 : vector<16x256xf32>
    %16 = arith.truncf %15 : vector<16x256xf32> to vector<16x256xbf16>
    %c0_12 = arith.constant 0 : index
    %c0_13 = arith.constant 0 : index
    %17 = vector.load %arg6[%c0_12, %c0_13] : memref<256x128xbf16, #tpu.memory_space<vmem>>, vector<256x128xbf16>
    %cst_14 = arith.constant dense<0.000000e+00> : vector<16x128xf32>
    %18 = tpu.matmul %16, %17, %cst_14 {dimension_numbers = #tpu.dot_dimension_numbers<[1], [0], [0], [1], [0, 0, 1, 1], [], []>} : vector<16x256xbf16>, vector<256x128xbf16>, vector<16x128xf32> -> vector<16x128xf32>
    %c0_15 = arith.constant 0 : index
    %c0_16 = arith.constant 0 : index
    %19 = vector.load %arg7[%c0_15, %c0_16] : memref<1x128xf32, #tpu.memory_space<vmem>>, vector<1x128xf32>
    %20 = vector.broadcast %19 : vector<1x128xf32> to vector<16x128xf32>
    %21 = arith.addf %18, %20 : vector<16x128xf32>
    %22 = arith.negf %21 : vector<16x128xf32>
    %23 = math.exp %22 : vector<16x128xf32>
    %cst_17 = arith.constant 1.000000e+00 : f32
    %24 = vector.broadcast %cst_17 : f32 to vector<16x128xf32>
    %25 = arith.addf %24, %23 : vector<16x128xf32>
    %26 = arith.divf %24, %25 : vector<16x128xf32>
    %27 = arith.truncf %26 : vector<16x128xf32> to vector<16x128xbf16>
    %c0_18 = arith.constant 0 : index
    %c0_19 = arith.constant 0 : index
    %28 = vector.load %arg8[%c0_18, %c0_19] : memref<16x128xbf16, #tpu.memory_space<vmem>>, vector<16x128xbf16>
    tpu.vector_store %arg8[%c0_18, %c0_19], %27 {strides = array<i32>} : memref<16x128xbf16, #tpu.memory_space<vmem>>, vector<16x128xbf16>,
    return
  }
  func.func @transform_0(%arg0: i32) -> (i32, i32) {
    %c0_i32 = arith.constant 0 : i32
    %c0_i32_0 = arith.constant 0 : i32
    return %arg0, %c0_i32 : i32, i32
  }
  func.func @transform_1(%arg0: i32) -> (i32, i32) {
    %c0_i32 = arith.constant 0 : i32
    %c0_i32_0 = arith.constant 0 : i32
    %c0_i32_1 = arith.constant 0 : i32
    return %c0_i32, %c0_i32_0 : i32, i32
  }
  func.func @transform_2(%arg0: i32) -> (i32, i32) {
    %c0_i32 = arith.constant 0 : i32
    %c0_i32_0 = arith.constant 0 : i32
    %c0_i32_1 = arith.constant 0 : i32
    return %c0_i32, %c0_i32_0 : i32, i32
  }
  func.func @transform_3(%arg0: i32) -> (i32, i32) {
    %c0_i32 = arith.constant 0 : i32
    %c0_i32_0 = arith.constant 0 : i32
    %c0_i32_1 = arith.constant 0 : i32
    return %c0_i32, %c0_i32_0 : i32, i32
  }
  func.func @transform_4(%arg0: i32) -> (i32, i32) {
    %c0_i32 = arith.constant 0 : i32
    %c0_i32_0 = arith.constant 0 : i32
    %c0_i32_1 = arith.constant 0 : i32
    return %c0_i32, %c0_i32_0 : i32, i32
  }
  func.func @transform_5(%arg0: i32) -> (i32, i32) {
    %c0_i32 = arith.constant 0 : i32
    %c0_i32_0 = arith.constant 0 : i32
    %c0_i32_1 = arith.constant 0 : i32
    return %c0_i32, %c0_i32_0 : i32, i32
  }
  func.func @transform_6(%arg0: i32) -> (i32, i32) {
    %c0_i32 = arith.constant 0 : i32
    %c0_i32_0 = arith.constant 0 : i32
    %c0_i32_1 = arith.constant 0 : i32
    return %c0_i32, %c0_i32_0 : i32, i32
  }
  func.func @transform_7(%arg0: i32) -> (i32, i32) {
    %c0_i32 = arith.constant 0 : i32
    %c0_i32_0 = arith.constant 0 : i32
    return %arg0, %c0_i32 : i32, i32
  }
}

module attributes {stable_mosaic.version = 11 : i64} {
  func.func @odir_head_kernel(%arg0: i32, %arg1: memref<16x2048xbf16, #tpu.memory_space<vmem>>, %arg2: memref<2048x512xbf16, #tpu.memory_space<vmem>>, %arg3: memref<1x512xf32, #tpu.memory_space<vmem>>, %arg4: memref<512x256xbf16, #tpu.memory_space<vmem>>, %arg5: memref<1x256xf32, #tpu.memory_space<vmem>>, %arg6: memref<256x128xbf16, #tpu.memory_space<vmem>>, %arg7: memref<1x128xf32, #tpu.memory_space<vmem>>, %arg8: memref<16x128xbf16, #tpu.memory_space<vmem>>) attributes {dimension_semantics = [#tpu.dimension_semantics<parallel>], iteration_bounds = array<i64: 1>, scalar_prefetch = 0 : i64, scratch_operands = 0 : i64, tpu.core_type = #tpu.core_type<tc>, window_params = [{transform_indices = @transform_0, window_bounds = array<i64: 16, 2048>}, {pipeline_mode = #tpu.pipeline_mode<synchronous>, transform_indices = @transform_1, window_bounds = array<i64: 2048, 512>}, {pipeline_mode = #tpu.pipeline_mode<synchronous>, transform_indices = @transform_2, window_bounds = array<i64: 1, 512>}, {pipeline_mode = #tpu.pipeline_mode<synchronous>, transform_indices = @transform_3, window_bounds = array<i64: 512, 256>}, {pipeline_mode = #tpu.pipeline_mode<synchronous>, transform_indices = @transform_4, window_bounds = array<i64: 1, 256>}, {pipeline_mode = #tpu.pipeline_mode<synchronous>, transform_indices = @transform_5, window_bounds = array<i64: 256, 128>}, {pipeline_mode = #tpu.pipeline_mode<synchronous>, transform_indices = @transform_6, window_bounds = array<i64: 1, 128>}, {transform_indices = @transform_7, window_bounds = array<i64: 16, 128>}]} {
    %c0 = arith.constant 0 : index
    %c0_0 = arith.constant 0 : index
    %0 = vector.load %arg1[%c0, %c0_0] : memref<16x2048xbf16, #tpu.memory_space<vmem>>, vector<16x2048xbf16>
    %c0_1 = arith.constant 0 : index
    %c0_2 = arith.constant 0 : index
    %1 = vector.load %arg2[%c0_1, %c0_2] : memref<2048x512xbf16, #tpu.memory_space<vmem>>, vector<2048x512xbf16>
    %cst = arith.constant dense<0.000000e+00> : vector<16x512xf32>
    %2 = tpu.matmul %0, %1, %cst {dimension_numbers = #tpu.dot_dimension_numbers<[1], [0], [0], [1], [0, 0, 1, 1], [], []>} : vector<16x2048xbf16>, vector<2048x512xbf16>, vector<16x512xf32> -> vector<16x512xf32>
    %c0_3 = arith.constant 0 : index
    %c0_4 = arith.constant 0 : index
    %3 = vector.load %arg3[%c0_3, %c0_4] : memref<1x512xf32, #tpu.memory_space<vmem>>, vector<1x512xf32>
    %4 = vector.broadcast %3 : vector<1x512xf32> to vector<16x512xf32>
    %5 = arith.addf %2, %4 : vector<16x512xf32>
    %cst_5 = arith.constant 0.000000e+00 : f32
    %6 = vector.broadcast %cst_5 : f32 to vector<16x512xf32>
    %7 = arith.maximumf %5, %6 : vector<16x512xf32>
    %8 = arith.truncf %7 : vector<16x512xf32> to vector<16x512xbf16>
    %c0_6 = arith.constant 0 : index
    %c0_7 = arith.constant 0 : index
    %9 = vector.load %arg4[%c0_6, %c0_7] : memref<512x256xbf16, #tpu.memory_space<vmem>>, vector<512x256xbf16>
    %cst_8 = arith.constant dense<0.000000e+00> : vector<16x256xf32>
    %10 = tpu.matmul %8, %9, %cst_8 {dimension_numbers = #tpu.dot_dimension_numbers<[1], [0], [0], [1], [0, 0, 1, 1], [], []>} : vector<16x512xbf16>, vector<512x256xbf16>, vector<16x256xf32> -> vector<16x256xf32>
    %c0_9 = arith.constant 0 : index
    %c0_10 = arith.constant 0 : index
    %11 = vector.load %arg5[%c0_9, %c0_10] : memref<1x256xf32, #tpu.memory_space<vmem>>, vector<1x256xf32>
    %12 = vector.broadcast %11 : vector<1x256xf32> to vector<16x256xf32>
    %13 = arith.addf %10, %12 : vector<16x256xf32>
    %cst_11 = arith.constant 0.000000e+00 : f32
    %14 = vector.broadcast %cst_11 : f32 to vector<16x256xf32>
    %15 = arith.maximumf %13, %14 : vector<16x256xf32>
    %16 = arith.truncf %15 : vector<16x256xf32> to vector<16x256xbf16>
    %c0_12 = arith.constant 0 : index
    %c0_13 = arith.constant 0 : index
    %17 = vector.load %arg6[%c0_12, %c0_13] : memref<256x128xbf16, #tpu.memory_space<vmem>>, vector<256x128xbf16>
    %cst_14 = arith.constant dense<0.000000e+00> : vector<16x128xf32>
    %18 = tpu.matmul %16, %17, %cst_14 {dimension_numbers = #tpu.dot_dimension_numbers<[1], [0], [0], [1], [0, 0, 1, 1], [], []>} : vector<16x256xbf16>, vector<256x128xbf16>, vector<16x128xf32> -> vector<16x128xf32>
    %c0_15 = arith.constant 0 : index
    %c0_16 = arith.constant 0 : index
    %19 = vector.load %arg7[%c0_15, %c0_16] : memref<1x128xf32, #tpu.memory_space<vmem>>, vector<1x128xf32>
    %20 = vector.broadcast %19 : vector<1x128xf32> to vector<16x128xf32>
    %21 = arith.addf %18, %20 : vector<16x128xf32>
    %22 = arith.negf %21 : vector<16x128xf32>
    %23 = math.exp %22 : vector<16x128xf32>
    %cst_17 = arith.constant 1.000000e+00 : f32
    %24 = vector.broadcast %cst_17 : f32 to vector<16x128xf32>
    %25 = arith.addf %24, %23 : vector<16x128xf32>
    %26 = arith.divf %24, %25 : vector<16x128xf32>
    %27 = arith.truncf %26 : vector<16x128xf32> to vector<16x128xbf16>
    %c0_18 = arith.constant 0 : index
    %c0_19 = arith.constant 0 : index
    %28 = vector.load %arg8[%c0_18, %c0_19] : memref<16x128xbf16, #tpu.memory_space<vmem>>, vector<16x128xbf16>
    tpu.vector_store %arg8[%c0_18, %c0_19], %27 {strides = array<i32>} : memref<16x128xbf16, #tpu.memory_space<vmem>>, vector<16x128xbf16>,
    return
  }
  func.func @transform_0(%arg0: i32) -> (i32, i32) {
    %c0_i32 = arith.constant 0 : i32
    %c0_i32_0 = arith.constant 0 : i32
    return %arg0, %c0_i32 : i32, i32
  }
  func.func @transform_1(%arg0: i32) -> (i32, i32) {
    %c0_i32 = arith.constant 0 : i32
    %c0_i32_0 = arith.constant 0 : i32
    %c0_i32_1 = arith.constant 0 : i32
    return %c0_i32, %c0_i32_0 : i32, i32
  }
  func.func @transform_2(%arg0: i32) -> (i32, i32) {
    %c0_i32 = arith.constant 0 : i32
    %c0_i32_0 = arith.constant 0 : i32
    %c0_i32_1 = arith.constant 0 : i32
    return %c0_i32, %c0_i32_0 : i32, i32
  }
  func.func @transform_3(%arg0: i32) -> (i32, i32) {
    %c0_i32 = arith.constant 0 : i32
    %c0_i32_0 = arith.constant 0 : i32
    %c0_i32_1 = arith.constant 0 : i32
    return %c0_i32, %c0_i32_0 : i32, i32
  }
  func.func @transform_4(%arg0: i32) -> (i32, i32) {
    %c0_i32 = arith.constant 0 : i32
    %c0_i32_0 = arith.constant 0 : i32
    %c0_i32_1 = arith.constant 0 : i32
    return %c0_i32, %c0_i32_0 : i32, i32
  }
  func.func @transform_5(%arg0: i32) -> (i32, i32) {
    %c0_i32 = arith.constant 0 : i32
    %c0_i32_0 = arith.constant 0 : i32
    %c0_i32_1 = arith.constant 0 : i32
    return %c0_i32, %c0_i32_0 : i32, i32
  }
  func.func @transform_6(%arg0: i32) -> (i32, i32) {
    %c0_i32 = arith.constant 0 : i32
    %c0_i32_0 = arith.constant 0 : i32
    %c0_i32_1 = arith.constant 0 : i32
    return %c0_i32, %c0_i32_0 : i32, i32
  }
  func.func @transform_7(%arg0: i32) -> (i32, i32) {
    %c0_i32 = arith.constant 0 : i32
    %c0_i32_0 = arith.constant 0 : i32
    return %arg0, %c0_i32 : i32, i32
  }
}

</mosaic_0001>

<bundles_post_ra>
// kernel: tpu_custom_call.1
= control target key start
LH: loop header
LB: loop body
LE: loop exit
PB: predicated region body
PF: predicated region fallthrough
CT: control target
= control target key end

     0   :  { %12 = vsyncpa [#allocation3], 0  ;;  %s6814_s0 = inlined_call_operand.hbm [shape: bf16[16,2048], index: 0, kind: input, shape index: {}]   ;;  %s6815_s1 = inlined_call_operand.hbm [shape: bf16[2048,512], index: 1, kind: input, shape index: {}]   ;;  %s6816_s2 = inlined_call_operand.hbm [shape: f32[1,512], index: 2, kind: input, shape index: {}]   ;;  %s6817_s3 = inlined_call_operand.hbm [shape: bf16[512,256], index: 3, kind: input, shape index: {}]   ;;  %s6818_s4 = inlined_call_operand.hbm [shape: f32[1,256], index: 4, kind: input, shape index: {}]   ;;  %s6819_s5 = inlined_call_operand.hbm [shape: bf16[256,128], index: 5, kind: input, shape index: {}]   ;;  %s6820_s6 = inlined_call_operand.hbm [shape: f32[1,128], index: 6, kind: input, shape index: {}]   ;;  %s6821_s7 = inlined_call_operand.hbm [shape: bf16[16,128], index: 7, kind: output, shape index: {}]  }
   0x1   :  { %13 = vsyncpa [#allocation6], 0 }
   0x2   :  { %14 = vsyncpa [#allocation9], 0 }
   0x3   :  { %15 = vsyncpa [#allocation12], 0 }
   0x4   :  { %16 = vsyncpa [#allocation4], 0  ;;  %s6516_s24 = smov [#allocation5]   ;;  %s6330_s28 = scalar_lea.hbm %s6815_s1, 65536 }
   0x5   :  { %s34_s25 = sshll.u32 %s6516_s24, 4  ;;  %p6331_p0 = scmp.ne.s32.totalorder %s6815_s1, %s6330_s28  ;;  %s35_s25 = int_to_ptr.vmem [resolvable:$true] %s34_s25 }
   0x6   :  { %p6334_p1 = scmp.lt.u32.totalorder %s6330_s28, %s6815_s1 }
   0x8   :  { %p6336_p2 = pnand %p6334_p1, %p6331_p0 }
   0xa   :  { %6339 = shalt.err (!%p6336_p2)
}
   0xb   :  { %s6340_s10 = scalar_lea.vmem %s35_s25, 65536  ;;  %p6345_p4 = scmp.lt.s32.totalorder %s35_s25, %s35_s25 }
   0xc   :  { %p6341_p3 = scmp.ne.s32.totalorder %s35_s25, %s6340_s10  ;;  %p6346_p5 = scmp.lt.s32.totalorder %s6340_s10, %s6340_s10 }
   0xe   :  { %p6347_p6 = por %p6346_p5, %p6345_p4 }
  0x10   :  { %p6348_p7 = pnand %p6347_p6, %p6341_p3 }
  0x12   :  { %6351 = shalt.err (!%p6348_p7)
}
  0x13   :  { %s6517_s11 = smov 256   ;;  %s6518_s12 = smov 16  }
  0x14   :  { %40 = dma.hbm_to_vmem [thread:$0]  %s6815_s1, 65536, %s35_s25, [#allocation6], %s6517_s11, %s6517_s11, %s6518_s12  }
  0x15   :  { %s6519_s15 = smov [#allocation8]   ;;  %s6352_s19 = scalar_lea.hbm %s6817_s3, 8192 }
  0x16   :  { %s56_s16 = sshll.u32 %s6519_s15, 4  ;;  %p6353_p8 = scmp.ne.s32.totalorder %s6817_s3, %s6352_s19  ;;  %s57_s16 = int_to_ptr.vmem [resolvable:$true] %s56_s16 }
  0x17   :  { %p6356_p9 = scmp.lt.u32.totalorder %s6352_s19, %s6817_s3 }
  0x19   :  { %p6358_p10 = pnand %p6356_p9, %p6353_p8 }
  0x1b   :  { %6361 = shalt.err (!%p6358_p10)
}
  0x1c   :  { %s6362_s24 = scalar_lea.vmem %s57_s16, 8192  ;;  %p6367_p12 = scmp.lt.s32.totalorder %s57_s16, %s57_s16 }
  0x1d   :  { %p6363_p11 = scmp.ne.s32.totalorder %s57_s16, %s6362_s24  ;;  %p6368_p13 = scmp.lt.s32.totalorder %s6362_s24, %s6362_s24 }
  0x1f   :  { %p6369_p0 = por %p6368_p13, %p6367_p12 }
  0x21   :  { %p6370_p1 = pnand %p6369_p0, %p6363_p11 }
  0x23   :  { %6373 = shalt.err (!%p6370_p1)
}
  0x24   :  { %s6520_s1 = smov 128   ;;  %s6521_s25 = smov 8  }
  0x25   :  { %62 = dma.hbm_to_vmem [thread:$0]  %s6817_s3, 8192, %s57_s16, [#allocation9], %s6520_s1, %s6520_s1, %s6521_s25  }
  0x26   :  { %s6522_s28 = smov [#allocation11]   ;;  %s6374_s9 = scalar_lea.hbm %s6819_s5, 2048 }
  0x27   :  { %s78_s29 = sshll.u32 %s6522_s28, 4  ;;  %p6375_p2 = scmp.ne.s32.totalorder %s6819_s5, %s6374_s9  ;;  %s79_s29 = int_to_ptr.vmem [resolvable:$true] %s78_s29 }
  0x28   :  { %p6378_p3 = scmp.lt.u32.totalorder %s6374_s9, %s6819_s5 }
  0x2a   :  { %p6380_p4 = pnand %p6378_p3, %p6375_p2 }
  0x2c   :  { %6383 = shalt.err (!%p6380_p4)
}
  0x2d   :  { %s6384_s14 = scalar_lea.vmem %s79_s29, 2048  ;;  %p6389_p6 = scmp.lt.s32.totalorder %s79_s29, %s79_s29 }
  0x2e   :  { %p6385_p5 = scmp.ne.s32.totalorder %s79_s29, %s6384_s14  ;;  %p6390_p7 = scmp.lt.s32.totalorder %s6384_s14, %s6384_s14 }
  0x30   :  { %p6391_p8 = por %p6390_p7, %p6389_p6 }
  0x32   :  { %p6392_p9 = pnand %p6391_p8, %p6385_p5 }
  0x34   :  { %6395 = shalt.err (!%p6392_p9)
}
  0x35   :  { %s6523_s3 = smov 64   ;;  %s6524_s15 = smov 4  }
  0x36   :  { %84 = dma.hbm_to_vmem [thread:$0]  %s6819_s5, 2048, %s79_s29, [#allocation12], %s6523_s3, %s6523_s3, %s6524_s15  }
  0x37   :  { %s6525_s18 = smov [#allocation2]   ;;  %s6396_s22 = scalar_lea.hbm %s6814_s0, 2048 }
  0x38   :  { %s22_s19 = sshll.u32 %s6525_s18, 4  ;;  %p6397_p10 = scmp.ne.s32.totalorder %s6814_s0, %s6396_s22  ;;  %s23_s19 = int_to_ptr.vmem [resolvable:$true] %s22_s19 }
  0x39   :  { %p6400_p11 = scmp.lt.u32.totalorder %s6396_s22, %s6814_s0 }
  0x3b   :  { %p6402_p12 = pnand %p6400_p11, %p6397_p10 }
  0x3d   :  { %6405 = shalt.err (!%p6402_p12)
}
  0x3e   :  { %s6406_s26 = scalar_lea.vmem %s23_s19, 2048  ;;  %p6411_p0 = scmp.lt.s32.totalorder %s23_s19, %s23_s19 }
  0x3f   :  { %p6407_p13 = scmp.ne.s32.totalorder %s23_s19, %s6406_s26  ;;  %p6412_p1 = scmp.lt.s32.totalorder %s6406_s26, %s6406_s26 }
  0x41   :  { %p6413_p2 = por %p6412_p1, %p6411_p0 }
  0x43   :  { %p6414_p3 = pnand %p6413_p2, %p6407_p13 }
  0x45   :  { %6417 = shalt.err (!%p6414_p3)
}
  0x46   :  { %s6526_s5 = smov 1024   ;;  %s6527_s29 = smov [#allocation7]  }
  0x47   :  { %28 = dma.hbm_to_vmem [thread:$0]  %s6814_s0, 2048, %s23_s19, [#allocation3], %s6526_s5, %s6526_s5, %s6523_s3  }
  0x48   :  { %s47_s30 = sshll.u32 %s6527_s29, 4  ;;  %s6528_s8 = smov [#allocation10]   ;;  %s48_s30 = int_to_ptr.vmem [resolvable:$true] %s47_s30 }
  0x49   :  { %s69_s9 = sshll.u32 %s6528_s8, 4  ;;  %s6418_s12 = scalar_lea.hbm %s6816_s2, 64  ;;  %s70_s9 = int_to_ptr.vmem [resolvable:$true] %s69_s9 }
  0x4a   :  { %p6419_p4 = scmp.ne.s32.totalorder %s6816_s2, %s6418_s12  ;;  %p6422_p5 = scmp.lt.u32.totalorder %s6418_s12, %s6816_s2 }
  0x4c   :  { %p6424_p6 = pnand %p6422_p5, %p6419_p4 }
  0x4e   :  { %6427 = shalt.err (!%p6424_p6)
}
  0x4f   :  { %s6428_s0 = scalar_lea.vmem %s48_s30, 64  ;;  %p6433_p8 = scmp.lt.s32.totalorder %s48_s30, %s48_s30 }
  0x50   :  { %p6429_p7 = scmp.ne.s32.totalorder %s48_s30, %s6428_s0  ;;  %p6434_p9 = scmp.lt.s32.totalorder %s6428_s0, %s6428_s0 }
  0x52   :  { %p6435_p10 = por %p6434_p9, %p6433_p8 }
  0x54   :  { %p6436_p11 = pnand %p6435_p10, %p6429_p7 }
  0x56   :  { %6439 = shalt.err (!%p6436_p11)
}
  0x57   :  { %50 = dma.hbm_to_vmem [thread:$0]  %s6816_s2, 64, %s48_s30, [#allocation6]  }
  0x58   :  { %s6440_s22 = scalar_lea.hbm %s6818_s4, 32 }
  0x59   :  { %p6441_p12 = scmp.ne.s32.totalorder %s6818_s4, %s6440_s22  ;;  %p6444_p13 = scmp.lt.u32.totalorder %s6440_s22, %s6818_s4 }
  0x5b   :  { %p6446_p0 = pnand %p6444_p13, %p6441_p12 }
  0x5d   :  { %6449 = shalt.err (!%p6446_p0)
}
  0x5e   :  { %s6450_s26 = scalar_lea.vmem %s70_s9, 32  ;;  %p6455_p2 = scmp.lt.s32.totalorder %s70_s9, %s70_s9 }
  0x5f   :  { %p6451_p1 = scmp.ne.s32.totalorder %s70_s9, %s6450_s26  ;;  %p6456_p3 = scmp.lt.s32.totalorder %s6450_s26, %s6450_s26 }
  0x61   :  { %p6457_p4 = por %p6456_p3, %p6455_p2 }
  0x63   :  { %p6458_p5 = pnand %p6457_p4, %p6451_p1 }
  0x65   :  { %6461 = shalt.err (!%p6458_p5)
}
  0x66   :  { %72 = dma.hbm_to_vmem [thread:$0]  %s6818_s4, 32, %s70_s9, [#allocation9]  }
  0x67   :  { %s6529_s27 = smov [#allocation13]   ;;  %s6462_s8 = scalar_lea.hbm %s6820_s6, 16 }
  0x68   :  { %s91_s28 = sshll.u32 %s6529_s27, 4  ;;  %p6463_p6 = scmp.ne.s32.totalorder %s6820_s6, %s6462_s8  ;;  %s92_s28 = int_to_ptr.vmem [resolvable:$true] %s91_s28 }
  0x69   :  { %p6466_p7 = scmp.lt.u32.totalorder %s6462_s8, %s6820_s6 }
  0x6b   :  { %p6468_p8 = pnand %p6466_p7, %p6463_p6 }
  0x6d   :  { %6471 = shalt.err (!%p6468_p8)
}
  0x6e   :  { %s6472_s14 = scalar_lea.vmem %s92_s28, 16  ;;  %s6476_s4 = scalar_lea.vmem %s92_s28, 32 }
  0x6f   :  { %p6473_p9 = scmp.ne.s32.totalorder %s92_s28, %s6472_s14  ;;  %p6477_p10 = scmp.lt.s32.totalorder %s92_s28, %s92_s28 }
  0x70   :  { %p6478_p11 = scmp.lt.s32.totalorder %s6476_s4, %s6472_s14 }
  0x72   :  { %p6479_p12 = por %p6478_p11, %p6477_p10 }
  0x74   :  { %p6480_p13 = pnand %p6479_p12, %p6473_p9 }
  0x76   :  { %6483 = shalt.err (!%p6480_p13)
}
  0x77   :  { %94 = dma.hbm_to_vmem [thread:$0]  %s6820_s6, 16, %s92_s28, [#allocation12]  }
  0x78   :  { %6506 = dma.done.wait [#allocation3], 2048  }
  0x79   :  { %6507 = vsyncadd [#allocation3], 4294965248 }
  0x7a   :  { %6508 = dma.done.wait [#allocation6], 65600  }
  0x7b   :  { %6509 = vsyncadd [#allocation6], 4294901696 }
  0x7c   :  { %6510 = dma.done.wait [#allocation9], 8224  }
  0x7d   :  { %6511 = vsyncadd [#allocation9], 4294959072 }
  0x7e   :  { %6512 = dma.done.wait [#allocation12], 2064  }
  0x7f   :  { %6513 = vsyncadd [#allocation12], 4294965232  ;;  %v5442_v0 = vld [vmem:[#allocation5 + $0x4] ss:$16 sps:$4 sm:$0xff]   ;;  %v5446_v2 = vld [vmem:[#allocation5] ss:$16 sps:$4 sm:$0xff]  }
  0x80   :  { %v5444_v1 = vld [vmem:[#allocation5 + $0x204] ss:$16 sps:$4 sm:$0xff]   ;;  %3307 = vmatprep.subr.bf16.mxu1 %v5442_v0  ;;  %v5447_v3 = vld [vmem:[#allocation5 + $0x200] ss:$16 sps:$4 sm:$0xff]   ;;  %v118_v50 = vld [vmem:[#allocation2 + $0x8] sm:$0xff]  ;;  %s6530_s6 = smov [#allocation14]  }
  0x81   :  { %3350 = vmatprep.subr.bf16.mxu0 %v5444_v1  ;;  %v5448_v4 = vld [vmem:[#allocation5 + $0x24] ss:$16 sps:$4 sm:$0xff]   ;;  %3308 = vmatpush1.bf16.msra.mxu1 %v5446_v2  ;;  %v5452_v6 = vld [vmem:[#allocation5 + $0x20] ss:$16 sps:$4 sm:$0xff]   ;;  %v126_v51 = vld [vmem:[#allocation2 + $0x48] sm:$0xff]  ;;  %s4698_s17 = sshll.u32 %s6530_s6, 4  ;;  %s4699_s17 = int_to_ptr.vmem [resolvable:$true] %s4698_s17 }
  0x82   :  { %3351 = vmatpush1.bf16.msra.mxu0 %v5447_v3  ;;  %v5450_v5 = vld [vmem:[#allocation5 + $0x224] ss:$16 sps:$4 sm:$0xff]   ;;  %3309 = vmatprep.subr.bf16.mxu1 %v5448_v4  ;;  %v5453_v7 = vld [vmem:[#allocation5 + $0x220] ss:$16 sps:$4 sm:$0xff]   ;;  %v6659_v55 = vcombine.high %v118_v50, %v126_v51  ;;  %s6484_s0 = scalar_lea.vmem %s4699_s17, 128  ;;  %p6489_p1 = scmp.lt.s32.totalorder %s4699_s17, %s4699_s17 }
  0x83   :  { %3352 = vmatprep.subr.bf16.mxu0 %v5450_v5  ;;  %v5454_v8 = vld [vmem:[#allocation5 + $0x44] ss:$16 sps:$4 sm:$0xff]   ;;  %v5458_v10 = vld [vmem:[#allocation5 + $0x40] ss:$16 sps:$4 sm:$0xff]   ;;  %p6485_p0 = scmp.ne.s32.totalorder %s4699_s17, %s6484_s0  ;;  %p6490_p2 = scmp.lt.s32.totalorder %s6484_s0, %s6484_s0 }
  0x84   :  { %v5456_v9 = vld [vmem:[#allocation5 + $0x244] ss:$16 sps:$4 sm:$0xff]   ;;  %v5459_v11 = vld [vmem:[#allocation5 + $0x240] ss:$16 sps:$4 sm:$0xff]   ;;  %3382 = vmatprep.mubr.bf16.mxu0 %v6659_v55 }
  0x85   :  { %3310 = vmatpush1.bf16.msra.mxu1 %v5452_v6  ;;  %v5460_v12 = vld [vmem:[#allocation5 + $0x64] ss:$16 sps:$4 sm:$0xff]   ;;  %v5464_v14 = vld [vmem:[#allocation5 + $0x60] ss:$16 sps:$4 sm:$0xff]   ;;  %p6491_p3 = por %p6490_p2, %p6489_p1 }
  0x86   :  { %3353 = vmatpush1.bf16.msra.mxu0 %v5453_v7  ;;  %3311 = vmatprep.subr.bf16.mxu1 %v5454_v8  ;;  %v5462_v13 = vld [vmem:[#allocation5 + $0x264] ss:$16 sps:$4 sm:$0xff]   ;;  %v5465_v15 = vld [vmem:[#allocation5 + $0x260] ss:$16 sps:$4 sm:$0xff]   ;;  %v5543_v7 = vld [vmem:[#allocation5 + $0xc] ss:$16 sps:$4 sm:$0xff]  }
  0x87   :  { %3354 = vmatprep.subr.bf16.mxu0 %v5456_v9  ;;  %v5466_v16 = vld [vmem:[#allocation5 + $0x84] ss:$16 sps:$4 sm:$0xff]   ;;  %v5470_v18 = vld [vmem:[#allocation5 + $0x80] ss:$16 sps:$4 sm:$0xff]   ;;  %v6664_v9 = vcombine.low %v118_v50, %v126_v51  ;;  %v5595_v50 = vld [vmem:[#allocation5 + $0x128] ss:$16 sps:$4 sm:$0xff]   ;;  %p6492_p4 = pnand %p6491_p3, %p6485_p0 }
  0x88   :  { %v5468_v17 = vld [vmem:[#allocation5 + $0x284] ss:$16 sps:$4 sm:$0xff]   ;;  %v5471_v19 = vld [vmem:[#allocation5 + $0x280] ss:$16 sps:$4 sm:$0xff]  }
  0x89   :  { %3312 = vmatpush1.bf16.msra.mxu1 %v5458_v10  ;;  %v5472_v20 = vld [vmem:[#allocation5 + $0xa4] ss:$16 sps:$4 sm:$0xff]   ;;  %v5476_v22 = vld [vmem:[#allocation5 + $0xa0] ss:$16 sps:$4 sm:$0xff]  }
  0x8a   :  { %3355 = vmatpush1.bf16.msra.mxu0 %v5459_v11  ;;  %3313 = vmatprep.subr.bf16.mxu1 %v5460_v12  ;;  %v5474_v21 = vld [vmem:[#allocation5 + $0x2a4] ss:$16 sps:$4 sm:$0xff]   ;;  %v5477_v23 = vld [vmem:[#allocation5 + $0x2a0] ss:$16 sps:$4 sm:$0xff]   ;;  %v5541_v11 = vld [vmem:[#allocation5 + $0x8] ss:$16 sps:$4 sm:$0xff]  }
  0x8b   :  { %3356 = vmatprep.subr.bf16.mxu0 %v5462_v13  ;;  %v5478_v24 = vld [vmem:[#allocation5 + $0xc4] ss:$16 sps:$4 sm:$0xff]   ;;  %v5482_v26 = vld [vmem:[#allocation5 + $0xc0] ss:$16 sps:$4 sm:$0xff]   ;;  %v5549_v13 = vld [vmem:[#allocation5 + $0x2c] ss:$16 sps:$4 sm:$0xff]  }
  0x8c   :  { %v5480_v25 = vld [vmem:[#allocation5 + $0x2c4] ss:$16 sps:$4 sm:$0xff]   ;;  %v5483_v27 = vld [vmem:[#allocation5 + $0x2c0] ss:$16 sps:$4 sm:$0xff]  }
  0x8d   :  { %3314 = vmatpush1.bf16.msra.mxu1 %v5464_v14  ;;  %v5484_v28 = vld [vmem:[#allocation5 + $0xe4] ss:$16 sps:$4 sm:$0xff]   ;;  %v5488_v30 = vld [vmem:[#allocation5 + $0xe0] ss:$16 sps:$4 sm:$0xff]  }
  0x8e   :  { %3357 = vmatpush1.bf16.msra.mxu0 %v5465_v15  ;;  %3315 = vmatprep.subr.bf16.mxu1 %v5466_v16  ;;  %v5486_v29 = vld [vmem:[#allocation5 + $0x2e4] ss:$16 sps:$4 sm:$0xff]   ;;  %v5489_v31 = vld [vmem:[#allocation5 + $0x2e0] ss:$16 sps:$4 sm:$0xff]   ;;  %v5547_v15 = vld [vmem:[#allocation5 + $0x28] ss:$16 sps:$4 sm:$0xff]  }
  0x8f   :  { %3358 = vmatprep.subr.bf16.mxu0 %v5468_v17  ;;  %v5490_v32 = vld [vmem:[#allocation5 + $0x104] ss:$16 sps:$4 sm:$0xff]   ;;  %v5494_v34 = vld [vmem:[#allocation5 + $0x100] ss:$16 sps:$4 sm:$0xff]   ;;  %v5555_v17 = vld [vmem:[#allocation5 + $0x4c] ss:$16 sps:$4 sm:$0xff]  }
  0x90   :  { %v5492_v33 = vld [vmem:[#allocation5 + $0x304] ss:$16 sps:$4 sm:$0xff]   ;;  %v5495_v35 = vld [vmem:[#allocation5 + $0x300] ss:$16 sps:$4 sm:$0xff]  }
  0x91   :  { %3316 = vmatpush1.bf16.msra.mxu1 %v5470_v18  ;;  %v5496_v36 = vld [vmem:[#allocation5 + $0x124] ss:$16 sps:$4 sm:$0xff]   ;;  %v5500_v38 = vld [vmem:[#allocation5 + $0x120] ss:$16 sps:$4 sm:$0xff]  }
  0x92   :  { %3359 = vmatpush1.bf16.msra.mxu0 %v5471_v19  ;;  %3317 = vmatprep.subr.bf16.mxu1 %v5472_v20  ;;  %v5498_v37 = vld [vmem:[#allocation5 + $0x324] ss:$16 sps:$4 sm:$0xff]   ;;  %v5501_v39 = vld [vmem:[#allocation5 + $0x320] ss:$16 sps:$4 sm:$0xff]   ;;  %v5553_v19 = vld [vmem:[#allocation5 + $0x48] ss:$16 sps:$4 sm:$0xff]  }
  0x93   :  { %3360 = vmatprep.subr.bf16.mxu0 %v5474_v21  ;;  %v5502_v40 = vld [vmem:[#allocation5 + $0x144] ss:$16 sps:$4 sm:$0xff]   ;;  %v5506_v42 = vld [vmem:[#allocation5 + $0x140] ss:$16 sps:$4 sm:$0xff]   ;;  %v5561_v21 = vld [vmem:[#allocation5 + $0x6c] ss:$16 sps:$4 sm:$0xff]  }
  0x94   :  { %v5504_v41 = vld [vmem:[#allocation5 + $0x344] ss:$16 sps:$4 sm:$0xff]   ;;  %v5507_v43 = vld [vmem:[#allocation5 + $0x340] ss:$16 sps:$4 sm:$0xff]  }
  0x95   :  { %3318 = vmatpush1.bf16.msra.mxu1 %v5476_v22  ;;  %v5508_v44 = vld [vmem:[#allocation5 + $0x164] ss:$16 sps:$4 sm:$0xff]   ;;  %v5512_v46 = vld [vmem:[#allocation5 + $0x160] ss:$16 sps:$4 sm:$0xff]  }
  0x96   :  { %3361 = vmatpush1.bf16.msra.mxu0 %v5477_v23  ;;  %3319 = vmatprep.subr.bf16.mxu1 %v5478_v24  ;;  %v5510_v45 = vld [vmem:[#allocation5 + $0x364] ss:$16 sps:$4 sm:$0xff]   ;;  %v5513_v47 = vld [vmem:[#allocation5 + $0x360] ss:$16 sps:$4 sm:$0xff]   ;;  %v5559_v23 = vld [vmem:[#allocation5 + $0x68] ss:$16 sps:$4 sm:$0xff]  }
  0x97   :  { %3362 = vmatprep.subr.bf16.mxu0 %v5480_v25  ;;  %v117_v48 = vld [vmem:[#allocation2] sm:$0xff]  ;;  %v5567_v25 = vld [vmem:[#allocation5 + $0x8c] ss:$16 sps:$4 sm:$0xff]  }
  0x98   :  { %v125_v49 = vld [vmem:[#allocation2 + $0x40] sm:$0xff] }
  0x99   :  { %3320 = vmatpush1.bf16.msra.mxu1 %v5482_v26  ;;  %v5514_v52 = vld [vmem:[#allocation5 + $0x184] ss:$16 sps:$4 sm:$0xff]   ;;  %v4714_v53 = vcombine.high %v117_v48, %v125_v49  ;;  %v5518_v56 = vld [vmem:[#allocation5 + $0x180] ss:$16 sps:$4 sm:$0xff]   ;;  %v6662_v8 = vcombine.low %v117_v48, %v125_v49  ;;  %v5597_v48 = vld [vmem:[#allocation5 + $0x12c] ss:$16 sps:$4 sm:$0xff]  }
  0x9a   :  { %3363 = vmatpush1.bf16.msra.mxu0 %v5483_v27  ;;  %3321 = vmatprep.subr.bf16.mxu1 %v5484_v28  ;;  %v5516_v54 = vld [vmem:[#allocation5 + $0x384] ss:$16 sps:$4 sm:$0xff]   ;;  %v5519_v57 = vld [vmem:[#allocation5 + $0x380] ss:$16 sps:$4 sm:$0xff]   ;;  %v5565_v27 = vld [vmem:[#allocation5 + $0x88] ss:$16 sps:$4 sm:$0xff]  }
  0x9b   :  { %3364 = vmatprep.subr.bf16.mxu0 %v5486_v29  ;;  %3339 = vmatprep.mubr.bf16.mxu1 %v4714_v53  ;;  %v5520_v58 = vld [vmem:[#allocation5 + $0x1a4] ss:$16 sps:$4 sm:$0xff]   ;;  %v5524_v60 = vld [vmem:[#allocation5 + $0x1a0] ss:$16 sps:$4 sm:$0xff]   ;;  %v5573_v29 = vld [vmem:[#allocation5 + $0xac] ss:$16 sps:$4 sm:$0xff]  }
  0x9c   :  { %v5522_v59 = vld [vmem:[#allocation5 + $0x3a4] ss:$16 sps:$4 sm:$0xff]   ;;  %v5525_v61 = vld [vmem:[#allocation5 + $0x3a0] ss:$16 sps:$4 sm:$0xff]  }
  0x9d   :  { %3322 = vmatpush1.bf16.msra.mxu1 %v5488_v30  ;;  %v5526_v62 = vld [vmem:[#allocation5 + $0x1c4] ss:$16 sps:$4 sm:$0xff]   ;;  %v5530_v0 = vld [vmem:[#allocation5 + $0x1c0] ss:$16 sps:$4 sm:$0xff]  }
  0x9e   :  { %3365 = vmatpush1.bf16.msra.mxu0 %v5489_v31  ;;  %3323 = vmatprep.subr.bf16.mxu1 %v5490_v32  ;;  %v5528_v63 = vld [vmem:[#allocation5 + $0x3c4] ss:$16 sps:$4 sm:$0xff]   ;;  %v5531_v1 = vld [vmem:[#allocation5 + $0x3c0] ss:$16 sps:$4 sm:$0xff]   ;;  %v5571_v31 = vld [vmem:[#allocation5 + $0xa8] ss:$16 sps:$4 sm:$0xff]  }
  0x9f   :  { %3366 = vmatprep.subr.bf16.mxu0 %v5492_v33  ;;  %v5532_v2 = vld [vmem:[#allocation5 + $0x1e4] ss:$16 sps:$4 sm:$0xff]   ;;  %v5536_v4 = vld [vmem:[#allocation5 + $0x1e0] ss:$16 sps:$4 sm:$0xff]   ;;  %v5579_v33 = vld [vmem:[#allocation5 + $0xcc] ss:$16 sps:$4 sm:$0xff]  }
  0xa0   :  { %v5534_v3 = vld [vmem:[#allocation5 + $0x3e4] ss:$16 sps:$4 sm:$0xff]   ;;  %v5537_v5 = vld [vmem:[#allocation5 + $0x3e0] ss:$16 sps:$4 sm:$0xff]  }
  0xa1   :  { %3324 = vmatpush1.bf16.msra.mxu1 %v5494_v34  ;;  %v5540_v6 = vld [vmem:[#allocation5 + $0x404] ss:$16 sps:$4 sm:$0xff]   ;;  %v5538_v10 = vld [vmem:[#allocation5 + $0x400] ss:$16 sps:$4 sm:$0xff]  }
  0xa2   :  { %3367 = vmatpush1.bf16.msra.mxu0 %v5495_v35  ;;  %3325 = vmatprep.subr.bf16.mxu1 %v5496_v36  ;;  %v5546_v12 = vld [vmem:[#allocation5 + $0x424] ss:$16 sps:$4 sm:$0xff]   ;;  %v5544_v14 = vld [vmem:[#allocation5 + $0x420] ss:$16 sps:$4 sm:$0xff]  }
  0xa3   :  { %3368 = vmatprep.subr.bf16.mxu0 %v5498_v37  ;;  %v5552_v16 = vld [vmem:[#allocation5 + $0x444] ss:$16 sps:$4 sm:$0xff]   ;;  %v5550_v18 = vld [vmem:[#allocation5 + $0x440] ss:$16 sps:$4 sm:$0xff]   ;;  %v5577_v37 = vld [vmem:[#allocation5 + $0xc8] ss:$16 sps:$4 sm:$0xff]  }
  0xa4   :  { %v5558_v20 = vld [vmem:[#allocation5 + $0x464] ss:$16 sps:$4 sm:$0xff]   ;;  %v5556_v22 = vld [vmem:[#allocation5 + $0x460] ss:$16 sps:$4 sm:$0xff]  }
  0xa5   :  { %3326 = vmatpush1.bf16.msra.mxu1 %v5500_v38  ;;  %v5564_v24 = vld [vmem:[#allocation5 + $0x484] ss:$16 sps:$4 sm:$0xff]   ;;  %v5562_v26 = vld [vmem:[#allocation5 + $0x480] ss:$16 sps:$4 sm:$0xff]  }
  0xa6   :  { %3369 = vmatpush1.bf16.msra.mxu0 %v5501_v39  ;;  %3327 = vmatprep.subr.bf16.mxu1 %v5502_v40  ;;  %v5570_v28 = vld [vmem:[#allocation5 + $0x4a4] ss:$16 sps:$4 sm:$0xff]   ;;  %v5568_v30 = vld [vmem:[#allocation5 + $0x4a0] ss:$16 sps:$4 sm:$0xff]   ;;  %v5585_v40 = vld [vmem:[#allocation5 + $0xec] ss:$16 sps:$4 sm:$0xff]  }
  0xa7   :  { %3370 = vmatprep.subr.bf16.mxu0 %v5504_v41  ;;  %v5576_v32 = vld [vmem:[#allocation5 + $0x4c4] ss:$16 sps:$4 sm:$0xff]   ;;  %v5574_v36 = vld [vmem:[#allocation5 + $0x4c0] ss:$16 sps:$4 sm:$0xff]  }
  0xa8   :  { %v6668_v34 = vld [vmem:[#allocation2 + $0x10] sm:$0xff] }
  0xa9   :  { %3328 = vmatpush1.bf16.msra.mxu1 %v5506_v42  ;;  %v6670_v35 = vld [vmem:[#allocation2 + $0x50] sm:$0xff]  ;;  %v5583_v42 = vld [vmem:[#allocation5 + $0xe8] ss:$16 sps:$4 sm:$0xff]  }
  0xaa   :  { %3371 = vmatpush1.bf16.msra.mxu0 %v5507_v43  ;;  %3329 = vmatprep.subr.bf16.mxu1 %v5508_v44  ;;  %v6674_v38 = vcombine.high %v6668_v34, %v6670_v35  ;;  %v5582_v39 = vld [vmem:[#allocation5 + $0x4e4] ss:$16 sps:$4 sm:$0xff]   ;;  %v5580_v41 = vld [vmem:[#allocation5 + $0x4e0] ss:$16 sps:$4 sm:$0xff]   ;;  %v5591_v44 = vld [vmem:[#allocation5 + $0x10c] ss:$16 sps:$4 sm:$0xff]  }
  0xab   :  { %3372 = vmatprep.subr.bf16.mxu0 %v5510_v45  ;;  %v5588_v43 = vld [vmem:[#allocation5 + $0x504] ss:$16 sps:$4 sm:$0xff]   ;;  %v5586_v45 = vld [vmem:[#allocation5 + $0x500] ss:$16 sps:$4 sm:$0xff]  }
  0xac   :  { %v5592_v49 = vld [vmem:[#allocation5 + $0x520] ss:$16 sps:$4 sm:$0xff]   ;;  %v5600_v51 = vld [vmem:[#allocation5 + $0x544] ss:$16 sps:$4 sm:$0xff]  }
  0xad   :  { %3330 = vmatpush1.bf16.msra.mxu1 %v5512_v46  ;;  %v5589_v46 = vld [vmem:[#allocation5 + $0x108] ss:$16 sps:$4 sm:$0xff]  }
  0xae   :  { %3373 = vmatpush1.bf16.msra.mxu0 %v5513_v47  ;;  %3331 = vmatprep.subr.bf16.mxu1 %v5514_v52  ;;  %v5594_v47 = vld [vmem:[#allocation5 + $0x524] ss:$16 sps:$4 sm:$0xff]   ;;  %v5603_v52 = vld [vmem:[#allocation5 + $0x14c] ss:$16 sps:$4 sm:$0xff]  }
  0xaf   :  { %3374 = vmatprep.subr.bf16.mxu0 %v5516_v54  ;;  %v5601_v54 = vld [vmem:[#allocation5 + $0x148] ss:$16 sps:$4 sm:$0xff]  }
  0xb1   :  { %3332 = vmatpush1.bf16.msra.mxu1 %v5518_v56  ;;  %v5606_v56 = vld [vmem:[#allocation5 + $0x564] ss:$16 sps:$4 sm:$0xff]  }
  0xb2   :  { %3375 = vmatpush1.bf16.msra.mxu0 %v5519_v57  ;;  %3333 = vmatprep.subr.bf16.mxu1 %v5520_v58  ;;  %v5609_v57 = vld [vmem:[#allocation5 + $0x16c] ss:$16 sps:$4 sm:$0xff]   ;;  %v5604_v58 = vld [vmem:[#allocation5 + $0x560] ss:$16 sps:$4 sm:$0xff]  }
  0xb3   :  { %3376 = vmatprep.subr.bf16.mxu0 %v5522_v59  ;;  %v5607_v59 = vld [vmem:[#allocation5 + $0x168] ss:$16 sps:$4 sm:$0xff]  }
  0xb5   :  { %3334 = vmatpush1.bf16.msra.mxu1 %v5524_v60  ;;  %v5612_v60 = vld [vmem:[#allocation5 + $0x584] ss:$16 sps:$4 sm:$0xff]  }
  0xb6   :  { %3377 = vmatpush1.bf16.msra.mxu0 %v5525_v61  ;;  %3335 = vmatprep.subr.bf16.mxu1 %v5526_v62  ;;  %v5615_v61 = vld [vmem:[#allocation5 + $0x18c] ss:$16 sps:$4 sm:$0xff]   ;;  %v5610_v62 = vld [vmem:[#allocation5 + $0x580] ss:$16 sps:$4 sm:$0xff]  }
  0xb7   :  { %3378 = vmatprep.subr.bf16.mxu0 %v5528_v63  ;;  %v5613_v63 = vld [vmem:[#allocation5 + $0x188] ss:$16 sps:$4 sm:$0xff]  }
  0xb9   :  { %3336 = vmatpush1.bf16.msra.mxu1 %v5530_v0  ;;  %v5618_v0 = vld [vmem:[#allocation5 + $0x5a4] ss:$16 sps:$4 sm:$0xff]  }
  0xba   :  { %3379 = vmatpush1.bf16.msra.mxu0 %v5531_v1  ;;  %3337 = vmatprep.subr.bf16.mxu1 %v5532_v2  ;;  %v5621_v1 = vld [vmem:[#allocation5 + $0x1ac] ss:$16 sps:$4 sm:$0xff]   ;;  %v5616_v2 = vld [vmem:[#allocation5 + $0x5a0] ss:$16 sps:$4 sm:$0xff]  }
  0xbb   :  { %3380 = vmatprep.subr.bf16.mxu0 %v5534_v3  ;;  %v5619_v3 = vld [vmem:[#allocation5 + $0x1a8] ss:$16 sps:$4 sm:$0xff]  }
  0xbd   :  { %3338 = vmatpush1.bf16.msra.mxu1 %v5536_v4  ;;  %v5624_v4 = vld [vmem:[#allocation5 + $0x5c4] ss:$16 sps:$4 sm:$0xff]  }
  0xbe   :  { %3381 = vmatpush1.bf16.msra.mxu0 %v5537_v5  ;;  %3651 = vmatprep.subr.bf16.mxu1 %v5543_v7  ;;  %v5627_v5 = vld [vmem:[#allocation5 + $0x1cc] ss:$16 sps:$4 sm:$0xff]   ;;  %v5625_v7 = vld [vmem:[#allocation5 + $0x1c8] ss:$16 sps:$4 sm:$0xff]  }
  0xbf   :  { %3393 = vmatprep.subr.bf16.mxu0 %v5540_v6  ;;  %v5622_v6 = vld [vmem:[#allocation5 + $0x5c0] ss:$16 sps:$4 sm:$0xff]  }
  0xc0   :  { %3340 = vmatmul.mubr.bf16.vlgmr.msra.gmra.mrb[0].mxu1 %v6662_v8 }
  0xc1   :  { %3383 = vmatmul.mubr.bf16.vlgmr.msra.gmra.mrb[0].mxu0 %v6664_v9  ;;  %3652 = vmatpush1.bf16.msra.mxu1 %v5541_v11  ;;  %v5633_v11 = vld [vmem:[#allocation5 + $0x1ec] ss:$16 sps:$4 sm:$0xff]  }
  0xc2   :  { %3394 = vmatpush1.bf16.msra.mxu0 %v5538_v10  ;;  %3653 = vmatprep.subr.bf16.mxu1 %v5549_v13  ;;  %v5630_v10 = vld [vmem:[#allocation5 + $0x5e4] ss:$16 sps:$4 sm:$0xff]   ;;  %v5631_v13 = vld [vmem:[#allocation5 + $0x1e8] ss:$16 sps:$4 sm:$0xff]  }
  0xc3   :  { %3395 = vmatprep.subr.bf16.mxu0 %v5546_v12  ;;  %3683 = vmatprep.mubr.bf16.mxu1 %v4714_v53  ;;  %v5598_v53 = vld [vmem:[#allocation5 + $0x540] ss:$16 sps:$4 sm:$0xff]  }
  0xc4   :  { %3425 = vmatprep.mubr.bf16.mxu0 %v6674_v38  ;;  %v5628_v12 = vld [vmem:[#allocation5 + $0x5e0] ss:$16 sps:$4 sm:$0xff]  }
  0xc5   :  { %3654 = vmatpush1.bf16.msra.mxu1 %v5547_v15  ;;  %v5639_v15 = vld [vmem:[#allocation5 + $0x20c] ss:$16 sps:$4 sm:$0xff]  }
  0xc6   :  { %3396 = vmatpush1.bf16.msra.mxu0 %v5544_v14  ;;  %3655 = vmatprep.subr.bf16.mxu1 %v5555_v17  ;;  %v5636_v14 = vld [vmem:[#allocation5 + $0x604] ss:$16 sps:$4 sm:$0xff]   ;;  %v5634_v17 = vld [vmem:[#allocation5 + $0x600] ss:$16 sps:$4 sm:$0xff]  }
  0xc7   :  { %3397 = vmatprep.subr.bf16.mxu0 %v5552_v16  ;;  %v6679_v16 = vcombine.low %v6668_v34, %v6670_v35  ;;  %v5663_v34 = vld [vmem:[#allocation5 + $0x28c] ss:$16 sps:$4 sm:$0xff]   ;;  %v5658_v35 = vld [vmem:[#allocation5 + $0x680] ss:$16 sps:$4 sm:$0xff]  }
  0xc9   :  { %3656 = vmatpush1.bf16.msra.mxu1 %v5553_v19  ;;  %v5642_v19 = vld [vmem:[#allocation5 + $0x624] ss:$16 sps:$4 sm:$0xff]  }
  0xca   :  { %3398 = vmatpush1.bf16.msra.mxu0 %v5550_v18  ;;  %3657 = vmatprep.subr.bf16.mxu1 %v5561_v21  ;;  %v5637_v18 = vld [vmem:[#allocation5 + $0x208] ss:$16 sps:$4 sm:$0xff]  }
  0xcb   :  { %3399 = vmatprep.subr.bf16.mxu0 %v5558_v20  ;;  %v5645_v20 = vld [vmem:[#allocation5 + $0x22c] ss:$16 sps:$4 sm:$0xff]  }
  0xcc   :  { %v6681_v21 = vld [vmem:[#allocation2 + $0x18] sm:$0xff] }
  0xcd   :  { %3658 = vmatpush1.bf16.msra.mxu1 %v5559_v23  ;;  %v5640_v23 = vld [vmem:[#allocation5 + $0x620] ss:$16 sps:$4 sm:$0xff]  }
  0xce   :  { %3400 = vmatpush1.bf16.msra.mxu0 %v5556_v22  ;;  %3659 = vmatprep.subr.bf16.mxu1 %v5567_v25  ;;  %v6683_v22 = vld [vmem:[#allocation2 + $0x58] sm:$0xff] }
  0xcf   :  { %3401 = vmatprep.subr.bf16.mxu0 %v5564_v24  ;;  %v5643_v24 = vld [vmem:[#allocation5 + $0x228] ss:$16 sps:$4 sm:$0xff]   ;;  %v6689_v25 = vcombine.high %v6681_v21, %v6683_v22 }
  0xd1   :  { %3660 = vmatpush1.bf16.msra.mxu1 %v5565_v27  ;;  %v5651_v27 = vld [vmem:[#allocation5 + $0x24c] ss:$16 sps:$4 sm:$0xff]  }
  0xd2   :  { %3402 = vmatpush1.bf16.msra.mxu0 %v5562_v26  ;;  %3661 = vmatprep.subr.bf16.mxu1 %v5573_v29  ;;  %v5648_v26 = vld [vmem:[#allocation5 + $0x644] ss:$16 sps:$4 sm:$0xff]   ;;  %v5649_v29 = vld [vmem:[#allocation5 + $0x248] ss:$16 sps:$4 sm:$0xff]  }
  0xd3   :  { %3403 = vmatprep.subr.bf16.mxu0 %v5570_v28  ;;  %v5646_v28 = vld [vmem:[#allocation5 + $0x640] ss:$16 sps:$4 sm:$0xff]  }
  0xd5   :  { %3662 = vmatpush1.bf16.msra.mxu1 %v5571_v31  ;;  %v5652_v31 = vld [vmem:[#allocation5 + $0x660] ss:$16 sps:$4 sm:$0xff]  }
  0xd6   :  { %3404 = vmatpush1.bf16.msra.mxu0 %v5568_v30  ;;  %3663 = vmatprep.subr.bf16.mxu1 %v5579_v33  ;;  %v5657_v30 = vld [vmem:[#allocation5 + $0x26c] ss:$16 sps:$4 sm:$0xff]   ;;  %v5660_v33 = vld [vmem:[#allocation5 + $0x684] ss:$16 sps:$4 sm:$0xff]  }
  0xd7   :  { %3405 = vmatprep.subr.bf16.mxu0 %v5576_v32  ;;  %v5655_v32 = vld [vmem:[#allocation5 + $0x268] ss:$16 sps:$4 sm:$0xff]  }
  0xd9   :  { %3664 = vmatpush1.bf16.msra.mxu1 %v5577_v37  ;;  %v5669_v37 = vld [vmem:[#allocation5 + $0x2ac] ss:$16 sps:$4 sm:$0xff]  }
  0xda   :  { %3406 = vmatpush1.bf16.msra.mxu0 %v5574_v36  ;;  %3665 = vmatprep.subr.bf16.mxu1 %v5585_v40  ;;  %v5661_v36 = vld [vmem:[#allocation5 + $0x288] ss:$16 sps:$4 sm:$0xff]  }
  0xdb   :  { %3407 = vmatprep.subr.bf16.mxu0 %v5582_v39  ;;  %v5664_v39 = vld [vmem:[#allocation5 + $0x6a0] ss:$16 sps:$4 sm:$0xff]   ;;  %v5667_v40 = vld [vmem:[#allocation5 + $0x2a8] ss:$16 sps:$4 sm:$0xff]  }
  0xdd   :  { %3666 = vmatpush1.bf16.msra.mxu1 %v5583_v42  ;;  %v5675_v42 = vld [vmem:[#allocation5 + $0x2cc] ss:$16 sps:$4 sm:$0xff]  }
  0xde   :  { %3408 = vmatpush1.bf16.msra.mxu0 %v5580_v41  ;;  %3667 = vmatprep.subr.bf16.mxu1 %v5591_v44  ;;  %v5672_v41 = vld [vmem:[#allocation5 + $0x6c4] ss:$16 sps:$4 sm:$0xff]   ;;  %v5673_v44 = vld [vmem:[#allocation5 + $0x2c8] ss:$16 sps:$4 sm:$0xff]  }
  0xdf   :  { %3409 = vmatprep.subr.bf16.mxu0 %v5588_v43  ;;  %v5670_v43 = vld [vmem:[#allocation5 + $0x6c0] ss:$16 sps:$4 sm:$0xff]  }
  0xe1   :  { %3668 = vmatpush1.bf16.msra.mxu1 %v5589_v46  ;;  %v5681_v46 = vld [vmem:[#allocation5 + $0x2ec] ss:$16 sps:$4 sm:$0xff]  }
  0xe2   :  { %3410 = vmatpush1.bf16.msra.mxu0 %v5586_v45  ;;  %3669 = vmatprep.subr.bf16.mxu1 %v5597_v48  ;;  %v5678_v45 = vld [vmem:[#allocation5 + $0x6e4] ss:$16 sps:$4 sm:$0xff]   ;;  %v5679_v48 = vld [vmem:[#allocation5 + $0x2e8] ss:$16 sps:$4 sm:$0xff]  }
  0xe3   :  { %3411 = vmatprep.subr.bf16.mxu0 %v5594_v47  ;;  %v5676_v47 = vld [vmem:[#allocation5 + $0x6e0] ss:$16 sps:$4 sm:$0xff]  }
  0xe5   :  { %3670 = vmatpush1.bf16.msra.mxu1 %v5595_v50  ;;  %v5687_v50 = vld [vmem:[#allocation5 + $0x30c] ss:$16 sps:$4 sm:$0xff]  }
  0xe6   :  { %3412 = vmatpush1.bf16.msra.mxu0 %v5592_v49  ;;  %3671 = vmatprep.subr.bf16.mxu1 %v5603_v52  ;;  %v5684_v49 = vld [vmem:[#allocation5 + $0x704] ss:$16 sps:$4 sm:$0xff]   ;;  %v5685_v52 = vld [vmem:[#allocation5 + $0x308] ss:$16 sps:$4 sm:$0xff]  }
  0xe7   :  { %3413 = vmatprep.subr.bf16.mxu0 %v5600_v51  ;;  %v5682_v51 = vld [vmem:[#allocation5 + $0x700] ss:$16 sps:$4 sm:$0xff]  }
  0xe9   :  { %3672 = vmatpush1.bf16.msra.mxu1 %v5601_v54  ;;  %v5693_v54 = vld [vmem:[#allocation5 + $0x32c] ss:$16 sps:$4 sm:$0xff]  }
  0xea   :  { %3414 = vmatpush1.bf16.msra.mxu0 %v5598_v53  ;;  %3673 = vmatprep.subr.bf16.mxu1 %v5609_v57  ;;  %v5690_v53 = vld [vmem:[#allocation5 + $0x724] ss:$16 sps:$4 sm:$0xff]   ;;  %v5691_v57 = vld [vmem:[#allocation5 + $0x328] ss:$16 sps:$4 sm:$0xff]  }
  0xeb   :  { %3415 = vmatprep.subr.bf16.mxu0 %v5606_v56  ;;  %v5688_v56 = vld [vmem:[#allocation5 + $0x720] ss:$16 sps:$4 sm:$0xff]  }
  0xed   :  { %3674 = vmatpush1.bf16.msra.mxu1 %v5607_v59  ;;  %v5699_v59 = vld [vmem:[#allocation5 + $0x34c] ss:$16 sps:$4 sm:$0xff]  }
  0xee   :  { %3416 = vmatpush1.bf16.msra.mxu0 %v5604_v58  ;;  %3675 = vmatprep.subr.bf16.mxu1 %v5615_v61  ;;  %v5696_v58 = vld [vmem:[#allocation5 + $0x744] ss:$16 sps:$4 sm:$0xff]   ;;  %v5697_v61 = vld [vmem:[#allocation5 + $0x348] ss:$16 sps:$4 sm:$0xff]  }
  0xef   :  { %3417 = vmatprep.subr.bf16.mxu0 %v5612_v60  ;;  %v5694_v60 = vld [vmem:[#allocation5 + $0x740] ss:$16 sps:$4 sm:$0xff]  }
  0xf1   :  { %3676 = vmatpush1.bf16.msra.mxu1 %v5613_v63  ;;  %v5705_v63 = vld [vmem:[#allocation5 + $0x36c] ss:$16 sps:$4 sm:$0xff]  }
  0xf2   :  { %3418 = vmatpush1.bf16.msra.mxu0 %v5610_v62  ;;  %3677 = vmatprep.subr.bf16.mxu1 %v5621_v1  ;;  %v5702_v62 = vld [vmem:[#allocation5 + $0x764] ss:$16 sps:$4 sm:$0xff]   ;;  %v5703_v1 = vld [vmem:[#allocation5 + $0x368] ss:$16 sps:$4 sm:$0xff]  }
  0xf3   :  { %3419 = vmatprep.subr.bf16.mxu0 %v5618_v0  ;;  %v5700_v0 = vld [vmem:[#allocation5 + $0x760] ss:$16 sps:$4 sm:$0xff]  }
  0xf5   :  { %3678 = vmatpush1.bf16.msra.mxu1 %v5619_v3  ;;  %v5711_v3 = vld [vmem:[#allocation5 + $0x38c] ss:$16 sps:$4 sm:$0xff]  }
  0xf6   :  { %3420 = vmatpush1.bf16.msra.mxu0 %v5616_v2  ;;  %3679 = vmatprep.subr.bf16.mxu1 %v5627_v5  ;;  %v5708_v2 = vld [vmem:[#allocation5 + $0x784] ss:$16 sps:$4 sm:$0xff]   ;;  %v5709_v5 = vld [vmem:[#allocation5 + $0x388] ss:$16 sps:$4 sm:$0xff]  }
  0xf7   :  { %3421 = vmatprep.subr.bf16.mxu0 %v5624_v4  ;;  %v5706_v4 = vld [vmem:[#allocation5 + $0x780] ss:$16 sps:$4 sm:$0xff]  }
  0xf9   :  { %3680 = vmatpush1.bf16.msra.mxu1 %v5625_v7  ;;  %v5717_v7 = vld [vmem:[#allocation5 + $0x3ac] ss:$16 sps:$4 sm:$0xff]  }
  0xfa   :  { %3422 = vmatpush1.bf16.msra.mxu0 %v5622_v6  ;;  %3681 = vmatprep.subr.bf16.mxu1 %v5633_v11  ;;  %v5714_v6 = vld [vmem:[#allocation5 + $0x7a4] ss:$16 sps:$4 sm:$0xff]   ;;  %v5715_v11 = vld [vmem:[#allocation5 + $0x3a8] ss:$16 sps:$4 sm:$0xff]  }
  0xfb   :  { %3423 = vmatprep.subr.bf16.mxu0 %v5630_v10  ;;  %v5712_v10 = vld [vmem:[#allocation5 + $0x7a0] ss:$16 sps:$4 sm:$0xff]  }
  0xfd   :  { %3682 = vmatpush1.bf16.msra.mxu1 %v5631_v13  ;;  %v5723_v13 = vld [vmem:[#allocation5 + $0x3cc] ss:$16 sps:$4 sm:$0xff]  }
  0xfe   :  { %3424 = vmatpush1.bf16.msra.mxu0 %v5628_v12  ;;  %3694 = vmatprep.subr.bf16.mxu1 %v5639_v15  ;;  %v5720_v12 = vld [vmem:[#allocation5 + $0x7c4] ss:$16 sps:$4 sm:$0xff]   ;;  %v5721_v15 = vld [vmem:[#allocation5 + $0x3c8] ss:$16 sps:$4 sm:$0xff]  }
  0xff   :  { %3436 = vmatprep.subr.bf16.mxu0 %v5636_v14  ;;  %v5718_v14 = vld [vmem:[#allocation5 + $0x7c0] ss:$16 sps:$4 sm:$0xff]  }
 0x100   :  { %3684 = vmatmul.mubr.bf16.vlgmr.msra.gmra.mrb[4].mxu1 %v6662_v8  ;;  %v5654_v8 = vld [vmem:[#allocation5 + $0x664] ss:$16 sps:$4 sm:$0xff]  }
 0x101   :  { %3426 = vmatmul.mubr.bf16.vlgmr.msra.gmra.mrb[0].mxu0 %v6679_v16  ;;  %3695 = vmatpush1.bf16.msra.mxu1 %v5637_v18  ;;  %v5729_v18 = vld [vmem:[#allocation5 + $0x3ec] ss:$16 sps:$4 sm:$0xff]  }
 0x102   :  { %3437 = vmatpush1.bf16.msra.mxu0 %v5634_v17  ;;  %3696 = vmatprep.subr.bf16.mxu1 %v5645_v20  ;;  %v5726_v17 = vld [vmem:[#allocation5 + $0x7e4] ss:$16 sps:$4 sm:$0xff]   ;;  %v5727_v20 = vld [vmem:[#allocation5 + $0x3e8] ss:$16 sps:$4 sm:$0xff]  }
 0x103   :  { %3438 = vmatprep.subr.bf16.mxu0 %v5642_v19  ;;  %3468 = vmatprep.mubr.bf16.mxu0 %v6689_v25  ;;  %v5724_v19 = vld [vmem:[#allocation5 + $0x7e0] ss:$16 sps:$4 sm:$0xff]  }
 0x104   :  { %3726 = vmatprep.mubr.bf16.mxu1 %v6659_v55  ;;  %v5666_v55 = vld [vmem:[#allocation5 + $0x6a4] ss:$16 sps:$4 sm:$0xff]  }
 0x105   :  { %3697 = vmatpush1.bf16.msra.mxu1 %v5643_v24  ;;  %v5735_v24 = vld [vmem:[#allocation5 + $0x40c] ss:$16 sps:$4 sm:$0xff]  }
 0x106   :  { %3439 = vmatpush1.bf16.msra.mxu0 %v5640_v23  ;;  %3698 = vmatprep.subr.bf16.mxu1 %v5651_v27  ;;  %v5732_v23 = vld [vmem:[#allocation5 + $0x804] ss:$16 sps:$4 sm:$0xff]   ;;  %v6695_v27 = vcombine.low %v6681_v21, %v6683_v22  ;;  %v5736_v21 = vld [vmem:[#allocation5 + $0x820] ss:$16 sps:$4 sm:$0xff]   ;;  %v5739_v22 = vld [vmem:[#allocation5 + $0x428] ss:$16 sps:$4 sm:$0xff]  }
 0x107   :  { %3440 = vmatprep.subr.bf16.mxu0 %v5648_v26  ;;  %v5730_v26 = vld [vmem:[#allocation5 + $0x800] ss:$16 sps:$4 sm:$0xff]  }
 0x109   :  { %3699 = vmatpush1.bf16.msra.mxu1 %v5649_v29  ;;  %v6699_v29 = vld [vmem:[#allocation2 + $0x60] sm:$0xff] }
 0x10a   :  { %3441 = vmatpush1.bf16.msra.mxu0 %v5646_v28  ;;  %3700 = vmatprep.subr.bf16.mxu1 %v5657_v30  ;;  %v6697_v28 = vld [vmem:[#allocation2 + $0x20] sm:$0xff] }
 0x10b   :  { %3442 = vmatprep.subr.bf16.mxu0 %v5654_v8  ;;  %v5733_v8 = vld [vmem:[#allocation5 + $0x408] ss:$16 sps:$4 sm:$0xff]   ;;  %v5738_v30 = vld [vmem:[#allocation5 + $0x824] ss:$16 sps:$4 sm:$0xff]  }
 0x10d   :  { %3701 = vmatpush1.bf16.msra.mxu1 %v5655_v32  ;;  %v6703_v32 = vcombine.high %v6697_v28, %v6699_v29 }
 0x10e   :  { %3443 = vmatpush1.bf16.msra.mxu0 %v5652_v31  ;;  %3702 = vmatprep.subr.bf16.mxu1 %v5663_v34  ;;  %v5741_v31 = vld [vmem:[#allocation5 + $0x42c] ss:$16 sps:$4 sm:$0xff]  }
 0x10f   :  { %3444 = vmatprep.subr.bf16.mxu0 %v5660_v33  ;;  %v5744_v33 = vld [vmem:[#allocation5 + $0x844] ss:$16 sps:$4 sm:$0xff]   ;;  %v5747_v34 = vld [vmem:[#allocation5 + $0x44c] ss:$16 sps:$4 sm:$0xff]  }
 0x111   :  { %3703 = vmatpush1.bf16.msra.mxu1 %v5661_v36  ;;  %v5745_v36 = vld [vmem:[#allocation5 + $0x448] ss:$16 sps:$4 sm:$0xff]  }
 0x112   :  { %3445 = vmatpush1.bf16.msra.mxu0 %v5658_v35  ;;  %3704 = vmatprep.subr.bf16.mxu1 %v5669_v37  ;;  %v5742_v35 = vld [vmem:[#allocation5 + $0x840] ss:$16 sps:$4 sm:$0xff]  }
 0x113   :  { %3446 = vmatprep.subr.bf16.mxu0 %v5666_v55  ;;  %v5750_v55 = vld [vmem:[#allocation5 + $0x864] ss:$16 sps:$4 sm:$0xff]   ;;  %v5748_v37 = vld [vmem:[#allocation5 + $0x860] ss:$16 sps:$4 sm:$0xff]  }
 0x115   :  { %3705 = vmatpush1.bf16.msra.mxu1 %v5667_v40  ;;  %v5756_v40 = vld [vmem:[#allocation5 + $0x884] ss:$16 sps:$4 sm:$0xff]  }
 0x116   :  { %3447 = vmatpush1.bf16.msra.mxu0 %v5664_v39  ;;  %3706 = vmatprep.subr.bf16.mxu1 %v5675_v42  ;;  %v5751_v39 = vld [vmem:[#allocation5 + $0x468] ss:$16 sps:$4 sm:$0xff]   ;;  %v5754_v42 = vld [vmem:[#allocation5 + $0x880] ss:$16 sps:$4 sm:$0xff]  }
 0x117   :  { %3448 = vmatprep.subr.bf16.mxu0 %v5672_v41  ;;  %v5759_v41 = vld [vmem:[#allocation5 + $0x48c] ss:$16 sps:$4 sm:$0xff]  }
 0x119   :  { %3707 = vmatpush1.bf16.msra.mxu1 %v5673_v44  ;;  %v5765_v44 = vld [vmem:[#allocation5 + $0x4ac] ss:$16 sps:$4 sm:$0xff]  }
 0x11a   :  { %3449 = vmatpush1.bf16.msra.mxu0 %v5670_v43  ;;  %3708 = vmatprep.subr.bf16.mxu1 %v5681_v46  ;;  %v5762_v43 = vld [vmem:[#allocation5 + $0x8a4] ss:$16 sps:$4 sm:$0xff]   ;;  %v5763_v46 = vld [vmem:[#allocation5 + $0x4a8] ss:$16 sps:$4 sm:$0xff]  }
 0x11b   :  { %3450 = vmatprep.subr.bf16.mxu0 %v5678_v45  ;;  %v5760_v45 = vld [vmem:[#allocation5 + $0x8a0] ss:$16 sps:$4 sm:$0xff]  }
 0x11d   :  { %3709 = vmatpush1.bf16.msra.mxu1 %v5679_v48  ;;  %v5771_v48 = vld [vmem:[#allocation5 + $0x4cc] ss:$16 sps:$4 sm:$0xff]  }
 0x11e   :  { %3451 = vmatpush1.bf16.msra.mxu0 %v5676_v47  ;;  %3710 = vmatprep.subr.bf16.mxu1 %v5687_v50  ;;  %v5768_v47 = vld [vmem:[#allocation5 + $0x8c4] ss:$16 sps:$4 sm:$0xff]   ;;  %v5769_v50 = vld [vmem:[#allocation5 + $0x4c8] ss:$16 sps:$4 sm:$0xff]  }
 0x11f   :  { %3452 = vmatprep.subr.bf16.mxu0 %v5684_v49  ;;  %v5766_v49 = vld [vmem:[#allocation5 + $0x8c0] ss:$16 sps:$4 sm:$0xff]  }
 0x121   :  { %3711 = vmatpush1.bf16.msra.mxu1 %v5685_v52  ;;  %v5777_v52 = vld [vmem:[#allocation5 + $0x4ec] ss:$16 sps:$4 sm:$0xff]  }
 0x122   :  { %3453 = vmatpush1.bf16.msra.mxu0 %v5682_v51  ;;  %3712 = vmatprep.subr.bf16.mxu1 %v5693_v54  ;;  %v5774_v51 = vld [vmem:[#allocation5 + $0x8e4] ss:$16 sps:$4 sm:$0xff]   ;;  %v5775_v54 = vld [vmem:[#allocation5 + $0x4e8] ss:$16 sps:$4 sm:$0xff]  }
 0x123   :  { %3454 = vmatprep.subr.bf16.mxu0 %v5690_v53  ;;  %v5772_v53 = vld [vmem:[#allocation5 + $0x8e0] ss:$16 sps:$4 sm:$0xff]  }
 0x125   :  { %3713 = vmatpush1.bf16.msra.mxu1 %v5691_v57  ;;  %v5783_v57 = vld [vmem:[#allocation5 + $0x50c] ss:$16 sps:$4 sm:$0xff]  }
 0x126   :  { %3455 = vmatpush1.bf16.msra.mxu0 %v5688_v56  ;;  %3714 = vmatprep.subr.bf16.mxu1 %v5699_v59  ;;  %v5780_v56 = vld [vmem:[#allocation5 + $0x904] ss:$16 sps:$4 sm:$0xff]   ;;  %v5781_v59 = vld [vmem:[#allocation5 + $0x508] ss:$16 sps:$4 sm:$0xff]  }
 0x127   :  { %3456 = vmatprep.subr.bf16.mxu0 %v5696_v58  ;;  %v5778_v58 = vld [vmem:[#allocation5 + $0x900] ss:$16 sps:$4 sm:$0xff]  }
 0x129   :  { %3715 = vmatpush1.bf16.msra.mxu1 %v5697_v61  ;;  %v5789_v61 = vld [vmem:[#allocation5 + $0x52c] ss:$16 sps:$4 sm:$0xff]  }
 0x12a   :  { %3457 = vmatpush1.bf16.msra.mxu0 %v5694_v60  ;;  %3716 = vmatprep.subr.bf16.mxu1 %v5705_v63  ;;  %v5786_v60 = vld [vmem:[#allocation5 + $0x924] ss:$16 sps:$4 sm:$0xff]   ;;  %v5787_v63 = vld [vmem:[#allocation5 + $0x528] ss:$16 sps:$4 sm:$0xff]  }
 0x12b   :  { %3458 = vmatprep.subr.bf16.mxu0 %v5702_v62  ;;  %v5784_v62 = vld [vmem:[#allocation5 + $0x920] ss:$16 sps:$4 sm:$0xff]  }
 0x12d   :  { %3717 = vmatpush1.bf16.msra.mxu1 %v5703_v1  ;;  %v5795_v1 = vld [vmem:[#allocation5 + $0x54c] ss:$16 sps:$4 sm:$0xff]  }
 0x12e   :  { %3459 = vmatpush1.bf16.msra.mxu0 %v5700_v0  ;;  %3718 = vmatprep.subr.bf16.mxu1 %v5711_v3  ;;  %v5792_v0 = vld [vmem:[#allocation5 + $0x944] ss:$16 sps:$4 sm:$0xff]   ;;  %v5793_v3 = vld [vmem:[#allocation5 + $0x548] ss:$16 sps:$4 sm:$0xff]  }
 0x12f   :  { %3460 = vmatprep.subr.bf16.mxu0 %v5708_v2  ;;  %v5790_v2 = vld [vmem:[#allocation5 + $0x940] ss:$16 sps:$4 sm:$0xff]  }
 0x131   :  { %3719 = vmatpush1.bf16.msra.mxu1 %v5709_v5  ;;  %v5801_v5 = vld [vmem:[#allocation5 + $0x56c] ss:$16 sps:$4 sm:$0xff]  }
 0x132   :  { %3461 = vmatpush1.bf16.msra.mxu0 %v5706_v4  ;;  %3720 = vmatprep.subr.bf16.mxu1 %v5717_v7  ;;  %v5798_v4 = vld [vmem:[#allocation5 + $0x964] ss:$16 sps:$4 sm:$0xff]   ;;  %v5799_v7 = vld [vmem:[#allocation5 + $0x568] ss:$16 sps:$4 sm:$0xff]  }
 0x133   :  { %3462 = vmatprep.subr.bf16.mxu0 %v5714_v6  ;;  %v5796_v6 = vld [vmem:[#allocation5 + $0x960] ss:$16 sps:$4 sm:$0xff]  }
 0x135   :  { %3721 = vmatpush1.bf16.msra.mxu1 %v5715_v11  ;;  %v5807_v11 = vld [vmem:[#allocation5 + $0x58c] ss:$16 sps:$4 sm:$0xff]  }
 0x136   :  { %3463 = vmatpush1.bf16.msra.mxu0 %v5712_v10  ;;  %3722 = vmatprep.subr.bf16.mxu1 %v5723_v13  ;;  %v5804_v10 = vld [vmem:[#allocation5 + $0x984] ss:$16 sps:$4 sm:$0xff]   ;;  %v5805_v13 = vld [vmem:[#allocation5 + $0x588] ss:$16 sps:$4 sm:$0xff]  }
 0x137   :  { %3464 = vmatprep.subr.bf16.mxu0 %v5720_v12  ;;  %v5802_v12 = vld [vmem:[#allocation5 + $0x980] ss:$16 sps:$4 sm:$0xff]  }
 0x139   :  { %3723 = vmatpush1.bf16.msra.mxu1 %v5721_v15  ;;  %v5813_v15 = vld [vmem:[#allocation5 + $0x5ac] ss:$16 sps:$4 sm:$0xff]  }
 0x13a   :  { %3465 = vmatpush1.bf16.msra.mxu0 %v5718_v14  ;;  %3724 = vmatprep.subr.bf16.mxu1 %v5729_v18  ;;  %v5810_v14 = vld [vmem:[#allocation5 + $0x9a4] ss:$16 sps:$4 sm:$0xff]   ;;  %v5811_v18 = vld [vmem:[#allocation5 + $0x5a8] ss:$16 sps:$4 sm:$0xff]  }
 0x13b   :  { %3466 = vmatprep.subr.bf16.mxu0 %v5726_v17  ;;  %v5808_v17 = vld [vmem:[#allocation5 + $0x9a0] ss:$16 sps:$4 sm:$0xff]  }
 0x13d   :  { %3725 = vmatpush1.bf16.msra.mxu1 %v5727_v20  ;;  %v5819_v20 = vld [vmem:[#allocation5 + $0x5cc] ss:$16 sps:$4 sm:$0xff]  }
 0x13e   :  { %3467 = vmatpush1.bf16.msra.mxu0 %v5724_v19  ;;  %3737 = vmatprep.subr.bf16.mxu1 %v5735_v24  ;;  %v5816_v19 = vld [vmem:[#allocation5 + $0x9c4] ss:$16 sps:$4 sm:$0xff]   ;;  %v5817_v24 = vld [vmem:[#allocation5 + $0x5c8] ss:$16 sps:$4 sm:$0xff]  }
 0x13f   :  { %3479 = vmatprep.subr.bf16.mxu0 %v5732_v23  ;;  %v5814_v23 = vld [vmem:[#allocation5 + $0x9c0] ss:$16 sps:$4 sm:$0xff]  }
 0x140   :  { %3727 = vmatmul.mubr.bf16.vlgmr.msra.gmra.mrb[4].mxu1 %v6664_v9  ;;  %v5753_v9 = vld [vmem:[#allocation5 + $0x46c] ss:$16 sps:$4 sm:$0xff]  }
 0x141   :  { %3469 = vmatmul.mubr.bf16.vlgmr.msra.gmra.mrb[0].mxu0 %v6695_v27  ;;  %3738 = vmatpush1.bf16.msra.mxu1 %v5733_v8  ;;  %v5825_v8 = vld [vmem:[#allocation5 + $0x5ec] ss:$16 sps:$4 sm:$0xff]  }
 0x142   :  { %3480 = vmatpush1.bf16.msra.mxu0 %v5730_v26  ;;  %3739 = vmatprep.subr.bf16.mxu1 %v5741_v31  ;;  %v5822_v26 = vld [vmem:[#allocation5 + $0x9e4] ss:$16 sps:$4 sm:$0xff]   ;;  %v5823_v31 = vld [vmem:[#allocation5 + $0x5e8] ss:$16 sps:$4 sm:$0xff]  }
 0x143   :  { %3481 = vmatprep.subr.bf16.mxu0 %v5738_v30  ;;  %3511 = vmatprep.mubr.bf16.mxu0 %v6703_v32  ;;  %v5820_v30 = vld [vmem:[#allocation5 + $0x9e0] ss:$16 sps:$4 sm:$0xff]  }
 0x144   :  { %3769 = vmatprep.mubr.bf16.mxu1 %v6674_v38  ;;  %v5757_v38 = vld [vmem:[#allocation5 + $0x488] ss:$16 sps:$4 sm:$0xff]  }
 0x145   :  { %3740 = vmatpush1.bf16.msra.mxu1 %v5739_v22  ;;  %v5831_v22 = vld [vmem:[#allocation5 + $0x60c] ss:$16 sps:$4 sm:$0xff]  }
 0x146   :  { %3482 = vmatpush1.bf16.msra.mxu0 %v5736_v21  ;;  %3741 = vmatprep.subr.bf16.mxu1 %v5747_v34  ;;  %v5828_v21 = vld [vmem:[#allocation5 + $0xa04] ss:$16 sps:$4 sm:$0xff]   ;;  %v6709_v34 = vld [vmem:[#allocation2 + $0x28] sm:$0xff] }
 0x147   :  { %3483 = vmatprep.subr.bf16.mxu0 %v5744_v33  ;;  %v5826_v33 = vld [vmem:[#allocation5 + $0xa00] ss:$16 sps:$4 sm:$0xff]  }
 0x149   :  { %3742 = vmatpush1.bf16.msra.mxu1 %v5745_v36  ;;  %v6715_v36 = vld [vmem:[#allocation2 + $0x68] sm:$0xff] }
 0x14a   :  { %3484 = vmatpush1.bf16.msra.mxu0 %v5742_v35  ;;  %3743 = vmatprep.subr.bf16.mxu1 %v5753_v9  ;;  %v6713_v35 = vcombine.low %v6697_v28, %v6699_v29  ;;  %v5834_v9 = vld [vmem:[#allocation5 + $0xa24] ss:$16 sps:$4 sm:$0xff]   ;;  %v5832_v28 = vld [vmem:[#allocation5 + $0xa20] ss:$16 sps:$4 sm:$0xff]   ;;  %v5835_v29 = vld [vmem:[#allocation5 + $0x628] ss:$16 sps:$4 sm:$0xff]  }
 0x14b   :  { %3485 = vmatprep.subr.bf16.mxu0 %v5750_v55  ;;  %v5829_v55 = vld [vmem:[#allocation5 + $0x608] ss:$16 sps:$4 sm:$0xff]  }
 0x14d   :  { %3744 = vmatpush1.bf16.msra.mxu1 %v5751_v39  ;;  %v6719_v39 = vcombine.high %v6709_v34, %v6715_v36 }
 0x14e   :  { %3486 = vmatpush1.bf16.msra.mxu0 %v5748_v37  ;;  %3745 = vmatprep.subr.bf16.mxu1 %v5759_v41  ;;  %v5837_v37 = vld [vmem:[#allocation5 + $0x62c] ss:$16 sps:$4 sm:$0xff]  }
 0x14f   :  { %3487 = vmatprep.subr.bf16.mxu0 %v5756_v40  ;;  %v5840_v40 = vld [vmem:[#allocation5 + $0xa44] ss:$16 sps:$4 sm:$0xff]   ;;  %v5843_v41 = vld [vmem:[#allocation5 + $0x64c] ss:$16 sps:$4 sm:$0xff]  }
 0x151   :  { %3746 = vmatpush1.bf16.msra.mxu1 %v5757_v38  ;;  %v5841_v38 = vld [vmem:[#allocation5 + $0x648] ss:$16 sps:$4 sm:$0xff]  }
 0x152   :  { %3488 = vmatpush1.bf16.msra.mxu0 %v5754_v42  ;;  %3747 = vmatprep.subr.bf16.mxu1 %v5765_v44  ;;  %v5838_v42 = vld [vmem:[#allocation5 + $0xa40] ss:$16 sps:$4 sm:$0xff]  }
 0x153   :  { %3489 = vmatprep.subr.bf16.mxu0 %v5762_v43  ;;  %v5846_v43 = vld [vmem:[#allocation5 + $0xa64] ss:$16 sps:$4 sm:$0xff]   ;;  %v5844_v44 = vld [vmem:[#allocation5 + $0xa60] ss:$16 sps:$4 sm:$0xff]  }
 0x155   :  { %3748 = vmatpush1.bf16.msra.mxu1 %v5763_v46  ;;  %v5852_v46 = vld [vmem:[#allocation5 + $0xa84] ss:$16 sps:$4 sm:$0xff]  }
 0x156   :  { %3490 = vmatpush1.bf16.msra.mxu0 %v5760_v45  ;;  %3749 = vmatprep.subr.bf16.mxu1 %v5771_v48  ;;  %v5847_v45 = vld [vmem:[#allocation5 + $0x668] ss:$16 sps:$4 sm:$0xff]   ;;  %v5850_v48 = vld [vmem:[#allocation5 + $0xa80] ss:$16 sps:$4 sm:$0xff]  }
 0x157   :  { %3491 = vmatprep.subr.bf16.mxu0 %v5768_v47  ;;  %v5855_v47 = vld [vmem:[#allocation5 + $0x68c] ss:$16 sps:$4 sm:$0xff]  }
 0x159   :  { %3750 = vmatpush1.bf16.msra.mxu1 %v5769_v50  ;;  %v5861_v50 = vld [vmem:[#allocation5 + $0x6ac] ss:$16 sps:$4 sm:$0xff]  }
 0x15a   :  { %3492 = vmatpush1.bf16.msra.mxu0 %v5766_v49  ;;  %3751 = vmatprep.subr.bf16.mxu1 %v5777_v52  ;;  %v5858_v49 = vld [vmem:[#allocation5 + $0xaa4] ss:$16 sps:$4 sm:$0xff]   ;;  %v5859_v52 = vld [vmem:[#allocation5 + $0x6a8] ss:$16 sps:$4 sm:$0xff]  }
 0x15b   :  { %3493 = vmatprep.subr.bf16.mxu0 %v5774_v51  ;;  %v5856_v51 = vld [vmem:[#allocation5 + $0xaa0] ss:$16 sps:$4 sm:$0xff]  }
 0x15d   :  { %3752 = vmatpush1.bf16.msra.mxu1 %v5775_v54  ;;  %v5867_v54 = vld [vmem:[#allocation5 + $0x6cc] ss:$16 sps:$4 sm:$0xff]  }
 0x15e   :  { %3494 = vmatpush1.bf16.msra.mxu0 %v5772_v53  ;;  %3753 = vmatprep.subr.bf16.mxu1 %v5783_v57  ;;  %v5864_v53 = vld [vmem:[#allocation5 + $0xac4] ss:$16 sps:$4 sm:$0xff]  }
 0x15f   :  { %3495 = vmatprep.subr.bf16.mxu0 %v5780_v56 }
 0x161   :  { %3754 = vmatpush1.bf16.msra.mxu1 %v5781_v59  ;;  %v5862_v59 = vld [vmem:[#allocation5 + $0xac0] ss:$16 sps:$4 sm:$0xff]  }
 0x162   :  { %3496 = vmatpush1.bf16.msra.mxu0 %v5778_v58  ;;  %3755 = vmatprep.subr.bf16.mxu1 %v5789_v61 }
 0x163   :  { %3497 = vmatprep.subr.bf16.mxu0 %v5786_v60  ;;  %v5865_v60 = vld [vmem:[#allocation5 + $0x6c8] ss:$16 sps:$4 sm:$0xff]  }
 0x165   :  { %3756 = vmatpush1.bf16.msra.mxu1 %v5787_v63  ;;  %v5873_v63 = vld [vmem:[#allocation5 + $0x6ec] ss:$16 sps:$4 sm:$0xff]  }
 0x166   :  { %3498 = vmatpush1.bf16.msra.mxu0 %v5784_v62  ;;  %3757 = vmatprep.subr.bf16.mxu1 %v5795_v1  ;;  %v5870_v62 = vld [vmem:[#allocation5 + $0xae4] ss:$16 sps:$4 sm:$0xff]   ;;  %v5871_v1 = vld [vmem:[#allocation5 + $0x6e8] ss:$16 sps:$4 sm:$0xff]  }
 0x167   :  { %3499 = vmatprep.subr.bf16.mxu0 %v5792_v0  ;;  %v5868_v0 = vld [vmem:[#allocation5 + $0xae0] ss:$16 sps:$4 sm:$0xff]  }
 0x169   :  { %3758 = vmatpush1.bf16.msra.mxu1 %v5793_v3  ;;  %v5879_v3 = vld [vmem:[#allocation5 + $0x70c] ss:$16 sps:$4 sm:$0xff]  }
 0x16a   :  { %3500 = vmatpush1.bf16.msra.mxu0 %v5790_v2  ;;  %3759 = vmatprep.subr.bf16.mxu1 %v5801_v5  ;;  %v5876_v2 = vld [vmem:[#allocation5 + $0xb04] ss:$16 sps:$4 sm:$0xff]   ;;  %v5877_v5 = vld [vmem:[#allocation5 + $0x708] ss:$16 sps:$4 sm:$0xff]  }
 0x16b   :  { %3501 = vmatprep.subr.bf16.mxu0 %v5798_v4  ;;  %v5874_v4 = vld [vmem:[#allocation5 + $0xb00] ss:$16 sps:$4 sm:$0xff]  }
 0x16d   :  { %3760 = vmatpush1.bf16.msra.mxu1 %v5799_v7  ;;  %v5885_v7 = vld [vmem:[#allocation5 + $0x72c] ss:$16 sps:$4 sm:$0xff]  }
 0x16e   :  { %3502 = vmatpush1.bf16.msra.mxu0 %v5796_v6  ;;  %3761 = vmatprep.subr.bf16.mxu1 %v5807_v11  ;;  %v5882_v6 = vld [vmem:[#allocation5 + $0xb24] ss:$16 sps:$4 sm:$0xff]   ;;  %v5883_v11 = vld [vmem:[#allocation5 + $0x728] ss:$16 sps:$4 sm:$0xff]  }
 0x16f   :  { %3503 = vmatprep.subr.bf16.mxu0 %v5804_v10  ;;  %v5880_v10 = vld [vmem:[#allocation5 + $0xb20] ss:$16 sps:$4 sm:$0xff]  }
 0x171   :  { %3762 = vmatpush1.bf16.msra.mxu1 %v5805_v13  ;;  %v5891_v13 = vld [vmem:[#allocation5 + $0x74c] ss:$16 sps:$4 sm:$0xff]  }
 0x172   :  { %3504 = vmatpush1.bf16.msra.mxu0 %v5802_v12  ;;  %3763 = vmatprep.subr.bf16.mxu1 %v5813_v15  ;;  %v5888_v12 = vld [vmem:[#allocation5 + $0xb44] ss:$16 sps:$4 sm:$0xff]   ;;  %v5889_v15 = vld [vmem:[#allocation5 + $0x748] ss:$16 sps:$4 sm:$0xff]  }
 0x173   :  { %3505 = vmatprep.subr.bf16.mxu0 %v5810_v14  ;;  %v5886_v14 = vld [vmem:[#allocation5 + $0xb40] ss:$16 sps:$4 sm:$0xff]  }
 0x175   :  { %3764 = vmatpush1.bf16.msra.mxu1 %v5811_v18  ;;  %v5897_v18 = vld [vmem:[#allocation5 + $0x76c] ss:$16 sps:$4 sm:$0xff]  }
 0x176   :  { %3506 = vmatpush1.bf16.msra.mxu0 %v5808_v17  ;;  %3765 = vmatprep.subr.bf16.mxu1 %v5819_v20  ;;  %v5894_v17 = vld [vmem:[#allocation5 + $0xb64] ss:$16 sps:$4 sm:$0xff]   ;;  %v5895_v20 = vld [vmem:[#allocation5 + $0x768] ss:$16 sps:$4 sm:$0xff]  }
 0x177   :  { %3507 = vmatprep.subr.bf16.mxu0 %v5816_v19  ;;  %v5892_v19 = vld [vmem:[#allocation5 + $0xb60] ss:$16 sps:$4 sm:$0xff]  }
 0x179   :  { %3766 = vmatpush1.bf16.msra.mxu1 %v5817_v24  ;;  %v5903_v24 = vld [vmem:[#allocation5 + $0x78c] ss:$16 sps:$4 sm:$0xff]  }
 0x17a   :  { %3508 = vmatpush1.bf16.msra.mxu0 %v5814_v23  ;;  %3767 = vmatprep.subr.bf16.mxu1 %v5825_v8  ;;  %v5900_v23 = vld [vmem:[#allocation5 + $0xb84] ss:$16 sps:$4 sm:$0xff]   ;;  %v5901_v8 = vld [vmem:[#allocation5 + $0x788] ss:$16 sps:$4 sm:$0xff]  }
 0x17b   :  { %3509 = vmatprep.subr.bf16.mxu0 %v5822_v26  ;;  %v5898_v26 = vld [vmem:[#allocation5 + $0xb80] ss:$16 sps:$4 sm:$0xff]  }
 0x17d   :  { %3768 = vmatpush1.bf16.msra.mxu1 %v5823_v31  ;;  %v5909_v31 = vld [vmem:[#allocation5 + $0x7ac] ss:$16 sps:$4 sm:$0xff]  }
 0x17e   :  { %3510 = vmatpush1.bf16.msra.mxu0 %v5820_v30  ;;  %3780 = vmatprep.subr.bf16.mxu1 %v5831_v22  ;;  %v5906_v30 = vld [vmem:[#allocation5 + $0xba4] ss:$16 sps:$4 sm:$0xff]   ;;  %v5907_v22 = vld [vmem:[#allocation5 + $0x7a8] ss:$16 sps:$4 sm:$0xff]  }
 0x17f   :  { %3522 = vmatprep.subr.bf16.mxu0 %v5828_v21  ;;  %v5904_v21 = vld [vmem:[#allocation5 + $0xba0] ss:$16 sps:$4 sm:$0xff]  }
 0x180   :  { %3770 = vmatmul.mubr.bf16.vlgmr.msra.gmra.mrb[4].mxu1 %v6679_v16  ;;  %v5849_v16 = vld [vmem:[#allocation5 + $0x66c] ss:$16 sps:$4 sm:$0xff]  }
 0x181   :  { %3512 = vmatmul.mubr.bf16.vlgmr.msra.gmra.mrb[0].mxu0 %v6713_v35  ;;  %3781 = vmatpush1.bf16.msra.mxu1 %v5829_v55  ;;  %v5915_v55 = vld [vmem:[#allocation5 + $0x7cc] ss:$16 sps:$4 sm:$0xff]  }
 0x182   :  { %3523 = vmatpush1.bf16.msra.mxu0 %v5826_v33  ;;  %3782 = vmatprep.subr.bf16.mxu1 %v5837_v37  ;;  %v5912_v33 = vld [vmem:[#allocation5 + $0xbc4] ss:$16 sps:$4 sm:$0xff]   ;;  %v5913_v37 = vld [vmem:[#allocation5 + $0x7c8] ss:$16 sps:$4 sm:$0xff]  }
 0x183   :  { %3524 = vmatprep.subr.bf16.mxu0 %v5834_v9  ;;  %3554 = vmatprep.mubr.bf16.mxu0 %v6719_v39  ;;  %v5910_v9 = vld [vmem:[#allocation5 + $0xbc0] ss:$16 sps:$4 sm:$0xff]  }
 0x184   :  { %3812 = vmatprep.mubr.bf16.mxu1 %v6689_v25  ;;  %v5853_v25 = vld [vmem:[#allocation5 + $0x688] ss:$16 sps:$4 sm:$0xff]  }
 0x185   :  { %3783 = vmatpush1.bf16.msra.mxu1 %v5835_v29  ;;  %v5921_v29 = vld [vmem:[#allocation5 + $0x7ec] ss:$16 sps:$4 sm:$0xff]  }
 0x186   :  { %3525 = vmatpush1.bf16.msra.mxu0 %v5832_v28  ;;  %3784 = vmatprep.subr.bf16.mxu1 %v5843_v41  ;;  %v5918_v28 = vld [vmem:[#allocation5 + $0xbe4] ss:$16 sps:$4 sm:$0xff]   ;;  %v5919_v41 = vld [vmem:[#allocation5 + $0x7e8] ss:$16 sps:$4 sm:$0xff]  }
 0x187   :  { %3526 = vmatprep.subr.bf16.mxu0 %v5840_v40  ;;  %v5916_v40 = vld [vmem:[#allocation5 + $0xbe0] ss:$16 sps:$4 sm:$0xff]  }
 0x189   :  { %3785 = vmatpush1.bf16.msra.mxu1 %v5841_v38  ;;  %v5927_v38 = vld [vmem:[#allocation5 + $0x80c] ss:$16 sps:$4 sm:$0xff]  }
 0x18a   :  { %3527 = vmatpush1.bf16.msra.mxu0 %v5838_v42  ;;  %3786 = vmatprep.subr.bf16.mxu1 %v5849_v16  ;;  %v5924_v42 = vld [vmem:[#allocation5 + $0xc04] ss:$16 sps:$4 sm:$0xff]   ;;  %v5925_v16 = vld [vmem:[#allocation5 + $0x808] ss:$16 sps:$4 sm:$0xff]  }
 0x18b   :  { %3528 = vmatprep.subr.bf16.mxu0 %v5846_v43  ;;  %v5922_v43 = vld [vmem:[#allocation5 + $0xc00] ss:$16 sps:$4 sm:$0xff]  }
 0x18d   :  { %3787 = vmatpush1.bf16.msra.mxu1 %v5847_v45  ;;  %v5930_v45 = vld [vmem:[#allocation5 + $0xc24] ss:$16 sps:$4 sm:$0xff]  }
 0x18e   :  { %3529 = vmatpush1.bf16.msra.mxu0 %v5844_v44  ;;  %3788 = vmatprep.subr.bf16.mxu1 %v5855_v47  ;;  %v6735_v44 = vcombine.low %v6709_v34, %v6715_v36  ;;  %v6739_v47 = vld [vmem:[#allocation2 + $0x70] sm:$0xff]  ;;  %v5939_v36 = vld [vmem:[#allocation5 + $0x84c] ss:$16 sps:$4 sm:$0xff]  }
 0x18f   :  { %3530 = vmatprep.subr.bf16.mxu0 %v5852_v46  ;;  %v6737_v46 = vld [vmem:[#allocation2 + $0x30] sm:$0xff] }
 0x190   :  { %v5936_v34 = vld [vmem:[#allocation5 + $0xc44] ss:$16 sps:$4 sm:$0xff]  }
 0x191   :  { %3789 = vmatpush1.bf16.msra.mxu1 %v5853_v25  ;;  %v5928_v25 = vld [vmem:[#allocation5 + $0xc20] ss:$16 sps:$4 sm:$0xff]  }
 0x192   :  { %3531 = vmatpush1.bf16.msra.mxu0 %v5850_v48  ;;  %3790 = vmatprep.subr.bf16.mxu1 %v5861_v50  ;;  %v5933_v48 = vld [vmem:[#allocation5 + $0x82c] ss:$16 sps:$4 sm:$0xff]   ;;  %v6743_v50 = vcombine.high %v6737_v46, %v6739_v47 }
 0x193   :  { %3532 = vmatprep.subr.bf16.mxu0 %v5858_v49  ;;  %v6725_v56 = vpop.f32.mrb[0].mxu1  ;;  %v5931_v49 = vld [vmem:[#allocation5 + $0x828] ss:$16 sps:$4 sm:$0xff]  }
 0x194   :  { %v6727_v57 = vpop.f32.mrb[1].mxu1 }
 0x195   :  { %v6729_v58 = vpop.f32.mrb[2].mxu1  ;;  %3791 = vmatpush1.bf16.msra.mxu1 %v5859_v52  ;;  %v5937_v52 = vld [vmem:[#allocation5 + $0x848] ss:$16 sps:$4 sm:$0xff]  }
 0x196   :  { %3533 = vmatpush1.bf16.msra.mxu0 %v5856_v51  ;;  %v6731_v61 = vpop.f32.mrb[3].mxu1  ;;  %3792 = vmatprep.subr.bf16.mxu1 %v5867_v54  ;;  %v5934_v51 = vld [vmem:[#allocation5 + $0xc40] ss:$16 sps:$4 sm:$0xff]   ;;  %v5945_v54 = vld [vmem:[#allocation5 + $0x86c] ss:$16 sps:$4 sm:$0xff]  }
 0x197   :  { %3534 = vmatprep.subr.bf16.mxu0 %v5864_v53  ;;  %v5942_v53 = vld [vmem:[#allocation5 + $0xc64] ss:$16 sps:$4 sm:$0xff]  }
 0x199   :  { %3793 = vmatpush1.bf16.msra.mxu1 %v5865_v60  ;;  %v5948_v60 = vld [vmem:[#allocation5 + $0xc84] ss:$16 sps:$4 sm:$0xff]  }
 0x19a   :  { %3535 = vmatpush1.bf16.msra.mxu0 %v5862_v59  ;;  %3794 = vmatprep.subr.bf16.mxu1 %v5873_v63  ;;  %v5940_v59 = vld [vmem:[#allocation5 + $0xc60] ss:$16 sps:$4 sm:$0xff]  }
 0x19b   :  { %3536 = vmatprep.subr.bf16.mxu0 %v5870_v62  ;;  %v5951_v62 = vld [vmem:[#allocation5 + $0x88c] ss:$16 sps:$4 sm:$0xff]   ;;  %v5946_v63 = vld [vmem:[#allocation5 + $0xc80] ss:$16 sps:$4 sm:$0xff]  }
 0x19d   :  { %3795 = vmatpush1.bf16.msra.mxu1 %v5871_v1  ;;  %v5954_v1 = vld [vmem:[#allocation5 + $0xca4] ss:$16 sps:$4 sm:$0xff]  }
 0x19e   :  { %3537 = vmatpush1.bf16.msra.mxu0 %v5868_v0  ;;  %3796 = vmatprep.subr.bf16.mxu1 %v5879_v3  ;;  %v5949_v0 = vld [vmem:[#allocation5 + $0x888] ss:$16 sps:$4 sm:$0xff]  }
 0x19f   :  { %3538 = vmatprep.subr.bf16.mxu0 %v5876_v2  ;;  %v5952_v2 = vld [vmem:[#allocation5 + $0xca0] ss:$16 sps:$4 sm:$0xff]   ;;  %v5955_v3 = vld [vmem:[#allocation5 + $0x8a8] ss:$16 sps:$4 sm:$0xff]  }
 0x1a1   :  { %3797 = vmatpush1.bf16.msra.mxu1 %v5877_v5  ;;  %v5963_v5 = vld [vmem:[#allocation5 + $0x8cc] ss:$16 sps:$4 sm:$0xff]  }
 0x1a2   :  { %3539 = vmatpush1.bf16.msra.mxu0 %v5874_v4  ;;  %3798 = vmatprep.subr.bf16.mxu1 %v5885_v7  ;;  %v5960_v4 = vld [vmem:[#allocation5 + $0xcc4] ss:$16 sps:$4 sm:$0xff]   ;;  %v5961_v7 = vld [vmem:[#allocation5 + $0x8c8] ss:$16 sps:$4 sm:$0xff]  }
 0x1a3   :  { %3540 = vmatprep.subr.bf16.mxu0 %v5882_v6  ;;  %v5958_v6 = vld [vmem:[#allocation5 + $0xcc0] ss:$16 sps:$4 sm:$0xff]  }
 0x1a5   :  { %3799 = vmatpush1.bf16.msra.mxu1 %v5883_v11  ;;  %v5969_v11 = vld [vmem:[#allocation5 + $0x8ec] ss:$16 sps:$4 sm:$0xff]  }
 0x1a6   :  { %3541 = vmatpush1.bf16.msra.mxu0 %v5880_v10  ;;  %3800 = vmatprep.subr.bf16.mxu1 %v5891_v13  ;;  %v5966_v10 = vld [vmem:[#allocation5 + $0xce4] ss:$16 sps:$4 sm:$0xff]   ;;  %v5967_v13 = vld [vmem:[#allocation5 + $0x8e8] ss:$16 sps:$4 sm:$0xff]  }
 0x1a7   :  { %3542 = vmatprep.subr.bf16.mxu0 %v5888_v12  ;;  %v5964_v12 = vld [vmem:[#allocation5 + $0xce0] ss:$16 sps:$4 sm:$0xff]  }
 0x1a9   :  { %3801 = vmatpush1.bf16.msra.mxu1 %v5889_v15  ;;  %v5975_v15 = vld [vmem:[#allocation5 + $0x90c] ss:$16 sps:$4 sm:$0xff]  }
 0x1aa   :  { %3543 = vmatpush1.bf16.msra.mxu0 %v5886_v14  ;;  %3802 = vmatprep.subr.bf16.mxu1 %v5897_v18  ;;  %v5972_v14 = vld [vmem:[#allocation5 + $0xd04] ss:$16 sps:$4 sm:$0xff]   ;;  %v5973_v18 = vld [vmem:[#allocation5 + $0x908] ss:$16 sps:$4 sm:$0xff]  }
 0x1ab   :  { %3544 = vmatprep.subr.bf16.mxu0 %v5894_v17  ;;  %v5970_v17 = vld [vmem:[#allocation5 + $0xd00] ss:$16 sps:$4 sm:$0xff]  }
 0x1ad   :  { %3803 = vmatpush1.bf16.msra.mxu1 %v5895_v20  ;;  %v5981_v20 = vld [vmem:[#allocation5 + $0x92c] ss:$16 sps:$4 sm:$0xff]  }
 0x1ae   :  { %3545 = vmatpush1.bf16.msra.mxu0 %v5892_v19  ;;  %3804 = vmatprep.subr.bf16.mxu1 %v5903_v24  ;;  %v5978_v19 = vld [vmem:[#allocation5 + $0xd24] ss:$16 sps:$4 sm:$0xff]   ;;  %v5979_v24 = vld [vmem:[#allocation5 + $0x928] ss:$16 sps:$4 sm:$0xff]  }
 0x1af   :  { %3546 = vmatprep.subr.bf16.mxu0 %v5900_v23  ;;  %v5976_v23 = vld [vmem:[#allocation5 + $0xd20] ss:$16 sps:$4 sm:$0xff]  }
 0x1b1   :  { %3805 = vmatpush1.bf16.msra.mxu1 %v5901_v8  ;;  %v5987_v8 = vld [vmem:[#allocation5 + $0x94c] ss:$16 sps:$4 sm:$0xff]  }
 0x1b2   :  { %3547 = vmatpush1.bf16.msra.mxu0 %v5898_v26  ;;  %3806 = vmatprep.subr.bf16.mxu1 %v5909_v31  ;;  %v5984_v26 = vld [vmem:[#allocation5 + $0xd44] ss:$16 sps:$4 sm:$0xff]   ;;  %v5985_v31 = vld [vmem:[#allocation5 + $0x948] ss:$16 sps:$4 sm:$0xff]  }
 0x1b3   :  { %3548 = vmatprep.subr.bf16.mxu0 %v5906_v30  ;;  %v5982_v30 = vld [vmem:[#allocation5 + $0xd40] ss:$16 sps:$4 sm:$0xff]  }
 0x1b5   :  { %3807 = vmatpush1.bf16.msra.mxu1 %v5907_v22  ;;  %v5993_v22 = vld [vmem:[#allocation5 + $0x96c] ss:$16 sps:$4 sm:$0xff]  }
 0x1b6   :  { %3549 = vmatpush1.bf16.msra.mxu0 %v5904_v21  ;;  %3808 = vmatprep.subr.bf16.mxu1 %v5915_v55  ;;  %v5990_v21 = vld [vmem:[#allocation5 + $0xd64] ss:$16 sps:$4 sm:$0xff]   ;;  %v5991_v55 = vld [vmem:[#allocation5 + $0x968] ss:$16 sps:$4 sm:$0xff]  }
 0x1b7   :  { %3550 = vmatprep.subr.bf16.mxu0 %v5912_v33  ;;  %v5988_v33 = vld [vmem:[#allocation5 + $0xd60] ss:$16 sps:$4 sm:$0xff]  }
 0x1b9   :  { %3809 = vmatpush1.bf16.msra.mxu1 %v5913_v37  ;;  %v5999_v37 = vld [vmem:[#allocation5 + $0x98c] ss:$16 sps:$4 sm:$0xff]  }
 0x1ba   :  { %3551 = vmatpush1.bf16.msra.mxu0 %v5910_v9  ;;  %3810 = vmatprep.subr.bf16.mxu1 %v5921_v29  ;;  %v5996_v9 = vld [vmem:[#allocation5 + $0xd84] ss:$16 sps:$4 sm:$0xff]   ;;  %v5997_v29 = vld [vmem:[#allocation5 + $0x988] ss:$16 sps:$4 sm:$0xff]  }
 0x1bb   :  { %3552 = vmatprep.subr.bf16.mxu0 %v5918_v28  ;;  %v5994_v28 = vld [vmem:[#allocation5 + $0xd80] ss:$16 sps:$4 sm:$0xff]  }
 0x1bd   :  { %3811 = vmatpush1.bf16.msra.mxu1 %v5919_v41  ;;  %v6005_v41 = vld [vmem:[#allocation5 + $0x9ac] ss:$16 sps:$4 sm:$0xff]  }
 0x1be   :  { %3553 = vmatpush1.bf16.msra.mxu0 %v5916_v40  ;;  %3823 = vmatprep.subr.bf16.mxu1 %v5927_v38  ;;  %v6002_v40 = vld [vmem:[#allocation5 + $0xda4] ss:$16 sps:$4 sm:$0xff]   ;;  %v6003_v38 = vld [vmem:[#allocation5 + $0x9a8] ss:$16 sps:$4 sm:$0xff]  }
 0x1bf   :  { %3565 = vmatprep.subr.bf16.mxu0 %v5924_v42  ;;  %v6000_v42 = vld [vmem:[#allocation5 + $0xda0] ss:$16 sps:$4 sm:$0xff]  }
 0x1c0   :  { %3813 = vmatmul.mubr.bf16.vlgmr.msra.gmra.mrb[4].mxu1 %v6695_v27  ;;  %v5943_v27 = vld [vmem:[#allocation5 + $0x868] ss:$16 sps:$4 sm:$0xff]  }
 0x1c1   :  { %3555 = vmatmul.mubr.bf16.vlgmr.msra.gmra.mrb[0].mxu0 %v6735_v44  ;;  %3824 = vmatpush1.bf16.msra.mxu1 %v5925_v16  ;;  %v6011_v16 = vld [vmem:[#allocation5 + $0x9cc] ss:$16 sps:$4 sm:$0xff]  }
 0x1c2   :  { %3566 = vmatpush1.bf16.msra.mxu0 %v5922_v43  ;;  %3825 = vmatprep.subr.bf16.mxu1 %v5933_v48  ;;  %v6008_v43 = vld [vmem:[#allocation5 + $0xdc4] ss:$16 sps:$4 sm:$0xff]   ;;  %v6009_v48 = vld [vmem:[#allocation5 + $0x9c8] ss:$16 sps:$4 sm:$0xff]  }
 0x1c3   :  { %3567 = vmatprep.subr.bf16.mxu0 %v5930_v45  ;;  %3597 = vmatprep.mubr.bf16.mxu0 %v6743_v50  ;;  %v6006_v45 = vld [vmem:[#allocation5 + $0xdc0] ss:$16 sps:$4 sm:$0xff]  }
 0x1c4   :  { %3855 = vmatprep.mubr.bf16.mxu1 %v6703_v32  ;;  %v5957_v32 = vld [vmem:[#allocation5 + $0x8ac] ss:$16 sps:$4 sm:$0xff]  }
 0x1c5   :  { %3826 = vmatpush1.bf16.msra.mxu1 %v5931_v49  ;;  %v6017_v49 = vld [vmem:[#allocation5 + $0x9ec] ss:$16 sps:$4 sm:$0xff]  }
 0x1c6   :  { %3568 = vmatpush1.bf16.msra.mxu0 %v5928_v25  ;;  %3827 = vmatprep.subr.bf16.mxu1 %v5939_v36  ;;  %v6014_v25 = vld [vmem:[#allocation5 + $0xde4] ss:$16 sps:$4 sm:$0xff]   ;;  %v6015_v36 = vld [vmem:[#allocation5 + $0x9e8] ss:$16 sps:$4 sm:$0xff]  }
 0x1c7   :  { %3569 = vmatprep.subr.bf16.mxu0 %v5936_v34  ;;  %v6012_v34 = vld [vmem:[#allocation5 + $0xde0] ss:$16 sps:$4 sm:$0xff]  }
 0x1c9   :  { %3828 = vmatpush1.bf16.msra.mxu1 %v5937_v52  ;;  %v6023_v52 = vld [vmem:[#allocation5 + $0xa0c] ss:$16 sps:$4 sm:$0xff]  }
 0x1ca   :  { %3570 = vmatpush1.bf16.msra.mxu0 %v5934_v51  ;;  %3829 = vmatprep.subr.bf16.mxu1 %v5945_v54  ;;  %v6020_v51 = vld [vmem:[#allocation5 + $0xe04] ss:$16 sps:$4 sm:$0xff]   ;;  %v6753_v54 = vld [vmem:[#allocation2 + $0x38] sm:$0xff] }
 0x1cb   :  { %3571 = vmatprep.subr.bf16.mxu0 %v5942_v53  ;;  %v6751_v53 = vcombine.low %v6737_v46, %v6739_v47  ;;  %v6024_v46 = vld [vmem:[#allocation5 + $0xe20] ss:$16 sps:$4 sm:$0xff]   ;;  %v6027_v47 = vld [vmem:[#allocation5 + $0xa28] ss:$16 sps:$4 sm:$0xff]  }
 0x1cd   :  { %3830 = vmatpush1.bf16.msra.mxu1 %v5943_v27  ;;  %v6018_v27 = vld [vmem:[#allocation5 + $0xe00] ss:$16 sps:$4 sm:$0xff]  }
 0x1ce   :  { %3572 = vmatpush1.bf16.msra.mxu0 %v5940_v59  ;;  %3831 = vmatprep.subr.bf16.mxu1 %v5951_v62  ;;  %v6755_v59 = vld [vmem:[#allocation2 + $0x78] sm:$0xff]  ;;  %v6026_v62 = vld [vmem:[#allocation5 + $0xe24] ss:$16 sps:$4 sm:$0xff]  }
 0x1cf   :  { %3573 = vmatprep.subr.bf16.mxu0 %v5948_v60  ;;  %v6021_v60 = vld [vmem:[#allocation5 + $0xa08] ss:$16 sps:$4 sm:$0xff]  }
 0x1d1   :  { %3832 = vmatpush1.bf16.msra.mxu1 %v5949_v0  ;;  %v6759_v0 = vcombine.high %v6753_v54, %v6755_v59 }
 0x1d2   :  { %3574 = vmatpush1.bf16.msra.mxu0 %v5946_v63  ;;  %3833 = vmatprep.subr.bf16.mxu1 %v5957_v32  ;;  %v6029_v63 = vld [vmem:[#allocation5 + $0xa2c] ss:$16 sps:$4 sm:$0xff]  }
 0x1d3   :  { %3575 = vmatprep.subr.bf16.mxu0 %v5954_v1  ;;  %v6032_v1 = vld [vmem:[#allocation5 + $0xe44] ss:$16 sps:$4 sm:$0xff]   ;;  %v6035_v32 = vld [vmem:[#allocation5 + $0xa4c] ss:$16 sps:$4 sm:$0xff]  }
 0x1d5   :  { %3834 = vmatpush1.bf16.msra.mxu1 %v5955_v3  ;;  %v6033_v3 = vld [vmem:[#allocation5 + $0xa48] ss:$16 sps:$4 sm:$0xff]  }
 0x1d6   :  { %3576 = vmatpush1.bf16.msra.mxu0 %v5952_v2  ;;  %3835 = vmatprep.subr.bf16.mxu1 %v5963_v5  ;;  %v6030_v2 = vld [vmem:[#allocation5 + $0xe40] ss:$16 sps:$4 sm:$0xff]  }
 0x1d7   :  { %3577 = vmatprep.subr.bf16.mxu0 %v5960_v4  ;;  %v6038_v4 = vld [vmem:[#allocation5 + $0xe64] ss:$16 sps:$4 sm:$0xff]   ;;  %v6036_v5 = vld [vmem:[#allocation5 + $0xe60] ss:$16 sps:$4 sm:$0xff]  }
 0x1d9   :  { %3836 = vmatpush1.bf16.msra.mxu1 %v5961_v7  ;;  %v6044_v7 = vld [vmem:[#allocation5 + $0xe84] ss:$16 sps:$4 sm:$0xff]  }
 0x1da   :  { %3578 = vmatpush1.bf16.msra.mxu0 %v5958_v6  ;;  %3837 = vmatprep.subr.bf16.mxu1 %v5969_v11  ;;  %v6039_v6 = vld [vmem:[#allocation5 + $0xa68] ss:$16 sps:$4 sm:$0xff]   ;;  %v6042_v11 = vld [vmem:[#allocation5 + $0xe80] ss:$16 sps:$4 sm:$0xff]  }
 0x1db   :  { %3579 = vmatprep.subr.bf16.mxu0 %v5966_v10  ;;  %v6047_v10 = vld [vmem:[#allocation5 + $0xa8c] ss:$16 sps:$4 sm:$0xff]  }
 0x1dd   :  { %3838 = vmatpush1.bf16.msra.mxu1 %v5967_v13  ;;  %v6053_v13 = vld [vmem:[#allocation5 + $0xaac] ss:$16 sps:$4 sm:$0xff]  }
 0x1de   :  { %3580 = vmatpush1.bf16.msra.mxu0 %v5964_v12  ;;  %3839 = vmatprep.subr.bf16.mxu1 %v5975_v15  ;;  %v6050_v12 = vld [vmem:[#allocation5 + $0xea4] ss:$16 sps:$4 sm:$0xff]   ;;  %v6051_v15 = vld [vmem:[#allocation5 + $0xaa8] ss:$16 sps:$4 sm:$0xff]  }
 0x1df   :  { %3581 = vmatprep.subr.bf16.mxu0 %v5972_v14  ;;  %v6048_v14 = vld [vmem:[#allocation5 + $0xea0] ss:$16 sps:$4 sm:$0xff]  }
 0x1e1   :  { %3840 = vmatpush1.bf16.msra.mxu1 %v5973_v18  ;;  %v6059_v18 = vld [vmem:[#allocation5 + $0xacc] ss:$16 sps:$4 sm:$0xff]  }
 0x1e2   :  { %3582 = vmatpush1.bf16.msra.mxu0 %v5970_v17  ;;  %3841 = vmatprep.subr.bf16.mxu1 %v5981_v20  ;;  %v6056_v17 = vld [vmem:[#allocation5 + $0xec4] ss:$16 sps:$4 sm:$0xff]   ;;  %v6057_v20 = vld [vmem:[#allocation5 + $0xac8] ss:$16 sps:$4 sm:$0xff]  }
 0x1e3   :  { %3583 = vmatprep.subr.bf16.mxu0 %v5978_v19  ;;  %v6054_v19 = vld [vmem:[#allocation5 + $0xec0] ss:$16 sps:$4 sm:$0xff]  }
 0x1e5   :  { %3842 = vmatpush1.bf16.msra.mxu1 %v5979_v24  ;;  %v6065_v24 = vld [vmem:[#allocation5 + $0xaec] ss:$16 sps:$4 sm:$0xff]  }
 0x1e6   :  { %3584 = vmatpush1.bf16.msra.mxu0 %v5976_v23  ;;  %3843 = vmatprep.subr.bf16.mxu1 %v5987_v8  ;;  %v6062_v23 = vld [vmem:[#allocation5 + $0xee4] ss:$16 sps:$4 sm:$0xff]   ;;  %v6063_v8 = vld [vmem:[#allocation5 + $0xae8] ss:$16 sps:$4 sm:$0xff]  }
 0x1e7   :  { %3585 = vmatprep.subr.bf16.mxu0 %v5984_v26  ;;  %v6060_v26 = vld [vmem:[#allocation5 + $0xee0] ss:$16 sps:$4 sm:$0xff]  }
 0x1e9   :  { %3844 = vmatpush1.bf16.msra.mxu1 %v5985_v31  ;;  %v6071_v31 = vld [vmem:[#allocation5 + $0xb0c] ss:$16 sps:$4 sm:$0xff]  }
 0x1ea   :  { %3586 = vmatpush1.bf16.msra.mxu0 %v5982_v30  ;;  %3845 = vmatprep.subr.bf16.mxu1 %v5993_v22  ;;  %v6068_v30 = vld [vmem:[#allocation5 + $0xf04] ss:$16 sps:$4 sm:$0xff]   ;;  %v6069_v22 = vld [vmem:[#allocation5 + $0xb08] ss:$16 sps:$4 sm:$0xff]  }
 0x1eb   :  { %3587 = vmatprep.subr.bf16.mxu0 %v5990_v21  ;;  %v6066_v21 = vld [vmem:[#allocation5 + $0xf00] ss:$16 sps:$4 sm:$0xff]  }
 0x1ed   :  { %3846 = vmatpush1.bf16.msra.mxu1 %v5991_v55  ;;  %v6077_v55 = vld [vmem:[#allocation5 + $0xb2c] ss:$16 sps:$4 sm:$0xff]  }
 0x1ee   :  { %3588 = vmatpush1.bf16.msra.mxu0 %v5988_v33  ;;  %3847 = vmatprep.subr.bf16.mxu1 %v5999_v37  ;;  %v6074_v33 = vld [vmem:[#allocation5 + $0xf24] ss:$16 sps:$4 sm:$0xff]   ;;  %v6075_v37 = vld [vmem:[#allocation5 + $0xb28] ss:$16 sps:$4 sm:$0xff]  }
 0x1ef   :  { %3589 = vmatprep.subr.bf16.mxu0 %v5996_v9  ;;  %v6072_v9 = vld [vmem:[#allocation5 + $0xf20] ss:$16 sps:$4 sm:$0xff]  }
 0x1f1   :  { %3848 = vmatpush1.bf16.msra.mxu1 %v5997_v29  ;;  %v6083_v29 = vld [vmem:[#allocation5 + $0xb4c] ss:$16 sps:$4 sm:$0xff]  }
 0x1f2   :  { %3590 = vmatpush1.bf16.msra.mxu0 %v5994_v28  ;;  %3849 = vmatprep.subr.bf16.mxu1 %v6005_v41  ;;  %v6080_v28 = vld [vmem:[#allocation5 + $0xf44] ss:$16 sps:$4 sm:$0xff]   ;;  %v6081_v41 = vld [vmem:[#allocation5 + $0xb48] ss:$16 sps:$4 sm:$0xff]  }
 0x1f3   :  { %3591 = vmatprep.subr.bf16.mxu0 %v6002_v40  ;;  %v6078_v40 = vld [vmem:[#allocation5 + $0xf40] ss:$16 sps:$4 sm:$0xff]  }
 0x1f5   :  { %3850 = vmatpush1.bf16.msra.mxu1 %v6003_v38  ;;  %v6089_v38 = vld [vmem:[#allocation5 + $0xb6c] ss:$16 sps:$4 sm:$0xff]  }
 0x1f6   :  { %3592 = vmatpush1.bf16.msra.mxu0 %v6000_v42  ;;  %3851 = vmatprep.subr.bf16.mxu1 %v6011_v16  ;;  %v6086_v42 = vld [vmem:[#allocation5 + $0xf64] ss:$16 sps:$4 sm:$0xff]   ;;  %v6087_v16 = vld [vmem:[#allocation5 + $0xb68] ss:$16 sps:$4 sm:$0xff]  }
 0x1f7   :  { %3593 = vmatprep.subr.bf16.mxu0 %v6008_v43  ;;  %v6084_v43 = vld [vmem:[#allocation5 + $0xf60] ss:$16 sps:$4 sm:$0xff]  }
 0x1f9   :  { %3852 = vmatpush1.bf16.msra.mxu1 %v6009_v48  ;;  %v6095_v48 = vld [vmem:[#allocation5 + $0xb8c] ss:$16 sps:$4 sm:$0xff]  }
 0x1fa   :  { %3594 = vmatpush1.bf16.msra.mxu0 %v6006_v45  ;;  %3853 = vmatprep.subr.bf16.mxu1 %v6017_v49  ;;  %v6092_v45 = vld [vmem:[#allocation5 + $0xf84] ss:$16 sps:$4 sm:$0xff]   ;;  %v6093_v49 = vld [vmem:[#allocation5 + $0xb88] ss:$16 sps:$4 sm:$0xff]  }
 0x1fb   :  { %3595 = vmatprep.subr.bf16.mxu0 %v6014_v25  ;;  %v6090_v25 = vld [vmem:[#allocation5 + $0xf80] ss:$16 sps:$4 sm:$0xff]  }
 0x1fd   :  { %3854 = vmatpush1.bf16.msra.mxu1 %v6015_v36  ;;  %v6101_v36 = vld [vmem:[#allocation5 + $0xbac] ss:$16 sps:$4 sm:$0xff]  }
 0x1fe   :  { %3596 = vmatpush1.bf16.msra.mxu0 %v6012_v34  ;;  %3866 = vmatprep.subr.bf16.mxu1 %v6023_v52  ;;  %v6098_v34 = vld [vmem:[#allocation5 + $0xfa4] ss:$16 sps:$4 sm:$0xff]   ;;  %v6099_v52 = vld [vmem:[#allocation5 + $0xba8] ss:$16 sps:$4 sm:$0xff]  }
 0x1ff   :  { %3608 = vmatprep.subr.bf16.mxu0 %v6020_v51  ;;  %v6096_v51 = vld [vmem:[#allocation5 + $0xfa0] ss:$16 sps:$4 sm:$0xff]  }
 0x200   :  { %3856 = vmatmul.mubr.bf16.vlgmr.msra.gmra.mrb[4].mxu1 %v6713_v35  ;;  %v6041_v35 = vld [vmem:[#allocation5 + $0xa6c] ss:$16 sps:$4 sm:$0xff]  }
 0x201   :  { %3598 = vmatmul.mubr.bf16.vlgmr.msra.gmra.mrb[0].mxu0 %v6751_v53  ;;  %3867 = vmatpush1.bf16.msra.mxu1 %v6021_v60  ;;  %v6107_v60 = vld [vmem:[#allocation5 + $0xbcc] ss:$16 sps:$4 sm:$0xff]  }
 0x202   :  { %3609 = vmatpush1.bf16.msra.mxu0 %v6018_v27  ;;  %3868 = vmatprep.subr.bf16.mxu1 %v6029_v63  ;;  %v6104_v27 = vld [vmem:[#allocation5 + $0xfc4] ss:$16 sps:$4 sm:$0xff]   ;;  %v6105_v63 = vld [vmem:[#allocation5 + $0xbc8] ss:$16 sps:$4 sm:$0xff]  }
 0x203   :  { %3610 = vmatprep.subr.bf16.mxu0 %v6026_v62  ;;  %3640 = vmatprep.mubr.bf16.mxu0 %v6759_v0  ;;  %v6102_v62 = vld [vmem:[#allocation5 + $0xfc0] ss:$16 sps:$4 sm:$0xff]  }
 0x204   :  { %3898 = vmatprep.mubr.bf16.mxu1 %v6719_v39  ;;  %v6045_v39 = vld [vmem:[#allocation5 + $0xa88] ss:$16 sps:$4 sm:$0xff]  }
 0x205   :  { %3869 = vmatpush1.bf16.msra.mxu1 %v6027_v47  ;;  %v6113_v47 = vld [vmem:[#allocation5 + $0xbec] ss:$16 sps:$4 sm:$0xff]  }
 0x206   :  { %3611 = vmatpush1.bf16.msra.mxu0 %v6024_v46  ;;  %3870 = vmatprep.subr.bf16.mxu1 %v6035_v32  ;;  %v6110_v46 = vld [vmem:[#allocation5 + $0xfe4] ss:$16 sps:$4 sm:$0xff]   ;;  %v6111_v32 = vld [vmem:[#allocation5 + $0xbe8] ss:$16 sps:$4 sm:$0xff]  }
 0x207   :  { %3612 = vmatprep.subr.bf16.mxu0 %v6032_v1  ;;  %v6108_v1 = vld [vmem:[#allocation5 + $0xfe0] ss:$16 sps:$4 sm:$0xff]  }
 0x209   :  { %3871 = vmatpush1.bf16.msra.mxu1 %v6033_v3  ;;  %v6767_v3 = vcombine.low %v6753_v54, %v6755_v59  ;;  %v6213_v54 = vld [vmem:[#allocation8 + $0x10] ss:$8 sps:$4 sm:$0xff]   ;;  %v6218_v59 = vld [vmem:[#allocation8 + $0x24] ss:$8 sps:$4 sm:$0xff]  }
 0x20a   :  { %3613 = vmatpush1.bf16.msra.mxu0 %v6030_v2  ;;  %3872 = vmatprep.subr.bf16.mxu1 %v6041_v35  ;;  %v6116_v2 = vld [vmem:[#allocation5 + $0xc0c] ss:$16 sps:$4 sm:$0xff]  }
 0x20b   :  { %3614 = vmatprep.subr.bf16.mxu0 %v6038_v4  ;;  %v6114_v4 = vld [vmem:[#allocation5 + $0xc08] ss:$16 sps:$4 sm:$0xff]   ;;  %v6119_v35 = vld [vmem:[#allocation5 + $0xc2c] ss:$16 sps:$4 sm:$0xff]  }
 0x20d   :  { %3873 = vmatpush1.bf16.msra.mxu1 %v6039_v6  ;;  %v6212_v6 = vld [vmem:[#allocation8 + $0x4] ss:$8 sps:$4 sm:$0xff]  }
 0x20e   :  { %3615 = vmatpush1.bf16.msra.mxu0 %v6036_v5  ;;  %3874 = vmatprep.subr.bf16.mxu1 %v6047_v10  ;;  %v6210_v5 = vld [vmem:[#allocation8] ss:$8 sps:$4 sm:$0xff]   ;;  %v6215_v10 = vld [vmem:[#allocation8 + $0x14] ss:$8 sps:$4 sm:$0xff]  }
 0x20f   :  { %3616 = vmatprep.subr.bf16.mxu0 %v6044_v7  ;;  %v6117_v7 = vld [vmem:[#allocation5 + $0xc28] ss:$16 sps:$4 sm:$0xff]  }
 0x211   :  { %3875 = vmatpush1.bf16.msra.mxu1 %v6045_v39  ;;  %v6120_v39 = vld [vmem:[#allocation5 + $0xc48] ss:$16 sps:$4 sm:$0xff]  }
 0x212   :  { %3617 = vmatpush1.bf16.msra.mxu0 %v6042_v11  ;;  %3876 = vmatprep.subr.bf16.mxu1 %v6053_v13  ;;  %v6122_v11 = vld [vmem:[#allocation5 + $0xc4c] ss:$16 sps:$4 sm:$0xff]   ;;  %v6221_v13 = vld [vmem:[#allocation8 + $0x34] ss:$8 sps:$4 sm:$0xff]  }
 0x213   :  { %3618 = vmatprep.subr.bf16.mxu0 %v6050_v12  ;;  %v6125_v12 = vld [vmem:[#allocation5 + $0xc6c] ss:$16 sps:$4 sm:$0xff]  }
 0x215   :  { %3877 = vmatpush1.bf16.msra.mxu1 %v6051_v15  ;;  %v6219_v15 = vld [vmem:[#allocation8 + $0x30] ss:$8 sps:$4 sm:$0xff]  }
 0x216   :  { %3619 = vmatpush1.bf16.msra.mxu0 %v6048_v14  ;;  %3878 = vmatprep.subr.bf16.mxu1 %v6059_v18  ;;  %v6123_v14 = vld [vmem:[#allocation5 + $0xc68] ss:$16 sps:$4 sm:$0xff]  }
 0x217   :  { %3620 = vmatprep.subr.bf16.mxu0 %v6056_v17  ;;  %v6224_v17 = vld [vmem:[#allocation8 + $0x44] ss:$8 sps:$4 sm:$0xff]  }
 0x218   :  { %v6126_v18 = vld [vmem:[#allocation5 + $0xc88] ss:$16 sps:$4 sm:$0xff]  }
 0x219   :  { %3879 = vmatpush1.bf16.msra.mxu1 %v6057_v20  ;;  %v6222_v20 = vld [vmem:[#allocation8 + $0x40] ss:$8 sps:$4 sm:$0xff]  }
 0x21a   :  { %3621 = vmatpush1.bf16.msra.mxu0 %v6054_v19  ;;  %3880 = vmatprep.subr.bf16.mxu1 %v6065_v24  ;;  %v6131_v19 = vld [vmem:[#allocation5 + $0xcac] ss:$16 sps:$4 sm:$0xff]   ;;  %v6129_v24 = vld [vmem:[#allocation5 + $0xca8] ss:$16 sps:$4 sm:$0xff]  }
 0x21b   :  { %3622 = vmatprep.subr.bf16.mxu0 %v6062_v23  ;;  %v6227_v23 = vld [vmem:[#allocation8 + $0x54] ss:$8 sps:$4 sm:$0xff]  }
 0x21d   :  { %3881 = vmatpush1.bf16.msra.mxu1 %v6063_v8  ;;  %v6225_v8 = vld [vmem:[#allocation8 + $0x50] ss:$8 sps:$4 sm:$0xff]  }
 0x21e   :  { %3623 = vmatpush1.bf16.msra.mxu0 %v6060_v26  ;;  %3882 = vmatprep.subr.bf16.mxu1 %v6071_v31  ;;  %v6134_v26 = vld [vmem:[#allocation5 + $0xccc] ss:$16 sps:$4 sm:$0xff]   ;;  %v6132_v31 = vld [vmem:[#allocation5 + $0xcc8] ss:$16 sps:$4 sm:$0xff]  }
 0x21f   :  { %3624 = vmatprep.subr.bf16.mxu0 %v6068_v30  ;;  %v6230_v30 = vld [vmem:[#allocation8 + $0x64] ss:$8 sps:$4 sm:$0xff]  }
 0x221   :  { %3883 = vmatpush1.bf16.msra.mxu1 %v6069_v22  ;;  %v6228_v22 = vld [vmem:[#allocation8 + $0x60] ss:$8 sps:$4 sm:$0xff]  }
 0x222   :  { %3625 = vmatpush1.bf16.msra.mxu0 %v6066_v21  ;;  %3884 = vmatprep.subr.bf16.mxu1 %v6077_v55  ;;  %v6137_v21 = vld [vmem:[#allocation5 + $0xcec] ss:$16 sps:$4 sm:$0xff]   ;;  %v6135_v55 = vld [vmem:[#allocation5 + $0xce8] ss:$16 sps:$4 sm:$0xff]  }
 0x223   :  { %3626 = vmatprep.subr.bf16.mxu0 %v6074_v33  ;;  %v6233_v33 = vld [vmem:[#allocation8 + $0x74] ss:$8 sps:$4 sm:$0xff]  }
 0x225   :  { %3885 = vmatpush1.bf16.msra.mxu1 %v6075_v37  ;;  %v6231_v37 = vld [vmem:[#allocation8 + $0x70] ss:$8 sps:$4 sm:$0xff]  }
 0x226   :  { %3627 = vmatpush1.bf16.msra.mxu0 %v6072_v9  ;;  %3886 = vmatprep.subr.bf16.mxu1 %v6083_v29  ;;  %v6140_v9 = vld [vmem:[#allocation5 + $0xd0c] ss:$16 sps:$4 sm:$0xff]   ;;  %v6138_v29 = vld [vmem:[#allocation5 + $0xd08] ss:$16 sps:$4 sm:$0xff]  }
 0x227   :  { %3628 = vmatprep.subr.bf16.mxu0 %v6080_v28  ;;  %v6236_v28 = vld [vmem:[#allocation8 + $0x84] ss:$8 sps:$4 sm:$0xff]  }
 0x229   :  { %3887 = vmatpush1.bf16.msra.mxu1 %v6081_v41  ;;  %v6234_v41 = vld [vmem:[#allocation8 + $0x80] ss:$8 sps:$4 sm:$0xff]  }
 0x22a   :  { %3629 = vmatpush1.bf16.msra.mxu0 %v6078_v40  ;;  %3888 = vmatprep.subr.bf16.mxu1 %v6089_v38  ;;  %v6143_v40 = vld [vmem:[#allocation5 + $0xd2c] ss:$16 sps:$4 sm:$0xff]   ;;  %v6141_v38 = vld [vmem:[#allocation5 + $0xd28] ss:$16 sps:$4 sm:$0xff]  }
 0x22b   :  { %3630 = vmatprep.subr.bf16.mxu0 %v6086_v42  ;;  %v6239_v42 = vld [vmem:[#allocation8 + $0x94] ss:$8 sps:$4 sm:$0xff]  }
 0x22d   :  { %3889 = vmatpush1.bf16.msra.mxu1 %v6087_v16  ;;  %v6237_v16 = vld [vmem:[#allocation8 + $0x90] ss:$8 sps:$4 sm:$0xff]  }
 0x22e   :  { %3631 = vmatpush1.bf16.msra.mxu0 %v6084_v43  ;;  %3890 = vmatprep.subr.bf16.mxu1 %v6095_v48  ;;  %v6146_v43 = vld [vmem:[#allocation5 + $0xd4c] ss:$16 sps:$4 sm:$0xff]   ;;  %v6144_v48 = vld [vmem:[#allocation5 + $0xd48] ss:$16 sps:$4 sm:$0xff]  }
 0x22f   :  { %3632 = vmatprep.subr.bf16.mxu0 %v6092_v45  ;;  %v6242_v45 = vld [vmem:[#allocation8 + $0xa4] ss:$8 sps:$4 sm:$0xff]  }
 0x231   :  { %3891 = vmatpush1.bf16.msra.mxu1 %v6093_v49  ;;  %v6240_v49 = vld [vmem:[#allocation8 + $0xa0] ss:$8 sps:$4 sm:$0xff]  }
 0x232   :  { %3633 = vmatpush1.bf16.msra.mxu0 %v6090_v25  ;;  %3892 = vmatprep.subr.bf16.mxu1 %v6101_v36  ;;  %v6149_v25 = vld [vmem:[#allocation5 + $0xd6c] ss:$16 sps:$4 sm:$0xff]   ;;  %v6147_v36 = vld [vmem:[#allocation5 + $0xd68] ss:$16 sps:$4 sm:$0xff]  }
 0x233   :  { %3634 = vmatprep.subr.bf16.mxu0 %v6098_v34  ;;  %v6245_v34 = vld [vmem:[#allocation8 + $0xb4] ss:$8 sps:$4 sm:$0xff]  }
 0x235   :  { %3893 = vmatpush1.bf16.msra.mxu1 %v6099_v52  ;;  %v6243_v52 = vld [vmem:[#allocation8 + $0xb0] ss:$8 sps:$4 sm:$0xff]  }
 0x236   :  { %3635 = vmatpush1.bf16.msra.mxu0 %v6096_v51  ;;  %3894 = vmatprep.subr.bf16.mxu1 %v6107_v60  ;;  %v6152_v51 = vld [vmem:[#allocation5 + $0xd8c] ss:$16 sps:$4 sm:$0xff]   ;;  %v6150_v60 = vld [vmem:[#allocation5 + $0xd88] ss:$16 sps:$4 sm:$0xff]  }
 0x237   :  { %3636 = vmatprep.subr.bf16.mxu0 %v6104_v27  ;;  %v6248_v27 = vld [vmem:[#allocation8 + $0xc4] ss:$8 sps:$4 sm:$0xff]  }
 0x239   :  { %3895 = vmatpush1.bf16.msra.mxu1 %v6105_v63  ;;  %v6246_v63 = vld [vmem:[#allocation8 + $0xc0] ss:$8 sps:$4 sm:$0xff]  }
 0x23a   :  { %3637 = vmatpush1.bf16.msra.mxu0 %v6102_v62  ;;  %3896 = vmatprep.subr.bf16.mxu1 %v6113_v47  ;;  %v6155_v62 = vld [vmem:[#allocation5 + $0xdac] ss:$16 sps:$4 sm:$0xff]   ;;  %v6153_v47 = vld [vmem:[#allocation5 + $0xda8] ss:$16 sps:$4 sm:$0xff]  }
 0x23b   :  { %3638 = vmatprep.subr.bf16.mxu0 %v6110_v46  ;;  %v6251_v46 = vld [vmem:[#allocation8 + $0xd4] ss:$8 sps:$4 sm:$0xff]  }
 0x23d   :  { %3897 = vmatpush1.bf16.msra.mxu1 %v6111_v32  ;;  %v6249_v32 = vld [vmem:[#allocation8 + $0xd0] ss:$8 sps:$4 sm:$0xff]  }
 0x23e   :  { %3639 = vmatpush1.bf16.msra.mxu0 %v6108_v1  ;;  %3909 = vmatprep.subr.bf16.mxu1 %v6116_v2  ;;  %v6158_v1 = vld [vmem:[#allocation5 + $0xdcc] ss:$16 sps:$4 sm:$0xff]   ;;  %v6156_v2 = vld [vmem:[#allocation5 + $0xdc8] ss:$16 sps:$4 sm:$0xff]  }
 0x23f   :  { %4403 = vmatprep.subr.bf16.mxu0 %v6212_v6  ;;  %v6162_v6 = vld [vmem:[#allocation5 + $0xe08] ss:$16 sps:$4 sm:$0xff]  }
 0x240   :  { %3899 = vmatmul.mubr.bf16.vlgmr.msra.gmra.mrb[4].mxu1 %v6735_v44  ;;  %v6216_v44 = vld [vmem:[#allocation8 + $0x20] ss:$8 sps:$4 sm:$0xff]  }
 0x241   :  { %3641 = vmatmul.mubr.bf16.vlgmr.msra.gmra.mrb[0].mxu0 %v6767_v3  ;;  %3910 = vmatpush1.bf16.msra.mxu1 %v6114_v4  ;;  %v6161_v4 = vld [vmem:[#allocation5 + $0xdec] ss:$16 sps:$4 sm:$0xff]  }
 0x242   :  { %3941 = vmatprep.mubr.bf16.mxu1 %v6743_v50  ;;  %3911 = vmatprep.subr.bf16.mxu1 %v6119_v35  ;;  %v6128_v50 = vld [vmem:[#allocation5 + $0xc8c] ss:$16 sps:$4 sm:$0xff]   ;;  %v6159_v35 = vld [vmem:[#allocation5 + $0xde8] ss:$16 sps:$4 sm:$0xff]  }
 0x243   :  { %4404 = vmatpush1.bf16.msra.mxu0 %v6210_v5  ;;  %v6164_v5 = vld [vmem:[#allocation5 + $0xe0c] ss:$16 sps:$4 sm:$0xff]  }
 0x244   :  { %4405 = vmatprep.subr.bf16.mxu0 %v6215_v10  ;;  %v6165_v10 = vld [vmem:[#allocation5 + $0xe28] ss:$16 sps:$4 sm:$0xff]  }
 0x245   :  { %3912 = vmatpush1.bf16.msra.mxu1 %v6117_v7  ;;  %v6167_v7 = vld [vmem:[#allocation5 + $0xe2c] ss:$16 sps:$4 sm:$0xff]  }
 0x246   :  { %3913 = vmatprep.subr.bf16.mxu1 %v6122_v11  ;;  %v6170_v11 = vld [vmem:[#allocation5 + $0xe4c] ss:$16 sps:$4 sm:$0xff]  }
 0x247   :  { %4406 = vmatpush1.bf16.msra.mxu0 %v6213_v54  ;;  %v6168_v54 = vld [vmem:[#allocation5 + $0xe48] ss:$16 sps:$4 sm:$0xff]  }
 0x248   :  { %4407 = vmatprep.subr.bf16.mxu0 %v6218_v59  ;;  %v6173_v59 = vld [vmem:[#allocation5 + $0xe6c] ss:$16 sps:$4 sm:$0xff]  }
 0x249   :  { %3914 = vmatpush1.bf16.msra.mxu1 %v6120_v39  ;;  %v6171_v39 = vld [vmem:[#allocation5 + $0xe68] ss:$16 sps:$4 sm:$0xff]  }
 0x24a   :  { %3915 = vmatprep.subr.bf16.mxu1 %v6125_v12  ;;  %v6176_v12 = vld [vmem:[#allocation5 + $0xe8c] ss:$16 sps:$4 sm:$0xff]  }
 0x24b   :  { %4408 = vmatpush1.bf16.msra.mxu0 %v6216_v44  ;;  %v6174_v44 = vld [vmem:[#allocation5 + $0xe88] ss:$16 sps:$4 sm:$0xff]  }
 0x24c   :  { %4409 = vmatprep.subr.bf16.mxu0 %v6221_v13  ;;  %v6179_v13 = vld [vmem:[#allocation5 + $0xeac] ss:$16 sps:$4 sm:$0xff]  }
 0x24d   :  { %3916 = vmatpush1.bf16.msra.mxu1 %v6123_v14  ;;  %v6182_v14 = vld [vmem:[#allocation5 + $0xecc] ss:$16 sps:$4 sm:$0xff]  }
 0x24e   :  { %3917 = vmatprep.subr.bf16.mxu1 %v6128_v50  ;;  %v6254_v50 = vld [vmem:[#allocation8 + $0xe4] ss:$8 sps:$4 sm:$0xff]  }
 0x24f   :  { %4410 = vmatpush1.bf16.msra.mxu0 %v6219_v15  ;;  %v6252_v15 = vld [vmem:[#allocation8 + $0xe0] ss:$8 sps:$4 sm:$0xff]  }
 0x250   :  { %4411 = vmatprep.subr.bf16.mxu0 %v6224_v17  ;;  %v6185_v17 = vld [vmem:[#allocation5 + $0xeec] ss:$16 sps:$4 sm:$0xff]  }
 0x251   :  { %3918 = vmatpush1.bf16.msra.mxu1 %v6126_v18  ;;  %v6257_v18 = vld [vmem:[#allocation8 + $0xf4] ss:$8 sps:$4 sm:$0xff]  }
 0x252   :  { %3919 = vmatprep.subr.bf16.mxu1 %v6131_v19  ;;  %v6183_v19 = vld [vmem:[#allocation5 + $0xee8] ss:$16 sps:$4 sm:$0xff]  }
 0x253   :  { %4412 = vmatpush1.bf16.msra.mxu0 %v6222_v20  ;;  %v6255_v20 = vld [vmem:[#allocation8 + $0xf0] ss:$8 sps:$4 sm:$0xff]  }
 0x254   :  { %4413 = vmatprep.subr.bf16.mxu0 %v6227_v23  ;;  %v6188_v23 = vld [vmem:[#allocation5 + $0xf0c] ss:$16 sps:$4 sm:$0xff]  }
 0x255   :  { %3920 = vmatpush1.bf16.msra.mxu1 %v6129_v24  ;;  %v6186_v24 = vld [vmem:[#allocation5 + $0xf08] ss:$16 sps:$4 sm:$0xff]  }
 0x256   :  { %3921 = vmatprep.subr.bf16.mxu1 %v6134_v26  ;;  %v6191_v26 = vld [vmem:[#allocation5 + $0xf2c] ss:$16 sps:$4 sm:$0xff]  }
 0x257   :  { %4414 = vmatpush1.bf16.msra.mxu0 %v6225_v8  ;;  %v6260_v8 = vld [vmem:[#allocation8 + $0x104] ss:$8 sps:$4 sm:$0xff]  }
 0x258   :  { %4415 = vmatprep.subr.bf16.mxu0 %v6230_v30  ;;  %v6189_v30 = vld [vmem:[#allocation5 + $0xf28] ss:$16 sps:$4 sm:$0xff]  }
 0x259   :  { %3922 = vmatpush1.bf16.msra.mxu1 %v6132_v31  ;;  %v6194_v31 = vld [vmem:[#allocation5 + $0xf4c] ss:$16 sps:$4 sm:$0xff]  }
 0x25a   :  { %3923 = vmatprep.subr.bf16.mxu1 %v6137_v21  ;;  %v6192_v21 = vld [vmem:[#allocation5 + $0xf48] ss:$16 sps:$4 sm:$0xff]  }
 0x25b   :  { %4416 = vmatpush1.bf16.msra.mxu0 %v6228_v22  ;;  %v6197_v22 = vld [vmem:[#allocation5 + $0xf6c] ss:$16 sps:$4 sm:$0xff]  }
 0x25c   :  { %4417 = vmatprep.subr.bf16.mxu0 %v6233_v33  ;;  %v6195_v33 = vld [vmem:[#allocation5 + $0xf68] ss:$16 sps:$4 sm:$0xff]  }
 0x25d   :  { %3924 = vmatpush1.bf16.msra.mxu1 %v6135_v55  ;;  %v6200_v55 = vld [vmem:[#allocation5 + $0xf8c] ss:$16 sps:$4 sm:$0xff]  }
 0x25e   :  { %3925 = vmatprep.subr.bf16.mxu1 %v6140_v9  ;;  %v6198_v9 = vld [vmem:[#allocation5 + $0xf88] ss:$16 sps:$4 sm:$0xff]  }
 0x25f   :  { %4418 = vmatpush1.bf16.msra.mxu0 %v6231_v37  ;;  %v6203_v37 = vld [vmem:[#allocation5 + $0xfac] ss:$16 sps:$4 sm:$0xff]  }
 0x260   :  { %4419 = vmatprep.subr.bf16.mxu0 %v6236_v28  ;;  %v6201_v28 = vld [vmem:[#allocation5 + $0xfa8] ss:$16 sps:$4 sm:$0xff]  }
 0x261   :  { %3926 = vmatpush1.bf16.msra.mxu1 %v6138_v29  ;;  %v6206_v29 = vld [vmem:[#allocation5 + $0xfcc] ss:$16 sps:$4 sm:$0xff]  }
 0x262   :  { %3927 = vmatprep.subr.bf16.mxu1 %v6143_v40  ;;  %v6204_v40 = vld [vmem:[#allocation5 + $0xfc8] ss:$16 sps:$4 sm:$0xff]  }
 0x263   :  { %4420 = vmatpush1.bf16.msra.mxu0 %v6234_v41  ;;  %v6209_v41 = vld [vmem:[#allocation5 + $0xfec] ss:$16 sps:$4 sm:$0xff]  }
 0x264   :  { %4421 = vmatprep.subr.bf16.mxu0 %v6239_v42  ;;  %v6207_v42 = vld [vmem:[#allocation5 + $0xfe8] ss:$16 sps:$4 sm:$0xff]  }
 0x265   :  { %3928 = vmatpush1.bf16.msra.mxu1 %v6141_v38  ;;  %v647_v38 = vlaneseq }
 0x266   :  { %3929 = vmatprep.subr.bf16.mxu1 %v6146_v43 }
 0x267   :  { %4422 = vmatpush1.bf16.msra.mxu0 %v6237_v16  ;;  %v6775_v43 = vshrl.u32 %v647_v38, 7  ;;  %v6300_v38 = vld [vmem:[#allocation8 + $0x1e0] ss:$8 sps:$4 sm:$0xff]  }
 0x268   :  { %4423 = vmatprep.subr.bf16.mxu0 %v6242_v45  ;;  %v6778_v45 = vld [vmem:[#allocation7] sm:$0xf] }
 0x269   :  { %3930 = vmatpush1.bf16.msra.mxu1 %v6144_v48  ;;  %v649_v16 = vsub.s32 0, %v6775_v43  ;;  %v653_v48 = vsub.s32 1, %v6775_v43 }
 0x26a   :  { %3931 = vmatprep.subr.bf16.mxu1 %v6149_v25 }
 0x26b   :  { %4424 = vmatpush1.bf16.msra.mxu0 %v6240_v49  ;;  %v650_v25 = vrot.slane %v6778_v45, %v649_v16  ;;  %v654_v49 = vrot.slane %v6778_v45, %v653_v48 }
 0x26c   :  { %4425 = vmatprep.subr.bf16.mxu0 %v6245_v34 }
 0x26d   :  { %3932 = vmatpush1.bf16.msra.mxu1 %v6147_v36  ;;  %v3342_v34 = vadd.f32 %v6725_v56, %v650_v25 }
 0x26e   :  { %3933 = vmatprep.subr.bf16.mxu1 %v6152_v51  ;;  %v3346_v51 = vadd.f32 %v6729_v58, %v650_v25  ;;  %v6306_v58 = vld [vmem:[#allocation11 + $0x40] sm:$0xff]   ;;  %v6305_v25 = vld [vmem:[#allocation8 + $0x1f4] ss:$8 sps:$4 sm:$0xff]  }
 0x26f   :  { %4426 = vmatpush1.bf16.msra.mxu0 %v6243_v52 }
 0x270   :  { %4427 = vmatprep.subr.bf16.mxu0 %v6248_v27 }
 0x271   :  { %3934 = vmatpush1.bf16.msra.mxu1 %v6150_v60  ;;  %v3348_v60 = vadd.f32 %v6731_v61, %v654_v49  ;;  %v6261_v61 = vld [vmem:[#allocation8 + $0x110] ss:$8 sps:$4 sm:$0xff]  }
 0x272   :  { %3935 = vmatprep.subr.bf16.mxu1 %v6155_v62 }
 0x273   :  { %4428 = vmatpush1.bf16.msra.mxu0 %v6246_v63 }
 0x274   :  { %4429 = vmatprep.subr.bf16.mxu0 %v6251_v46 }
 0x275   :  { %3936 = vmatpush1.bf16.msra.mxu1 %v6153_v47 }
 0x276   :  { %3937 = vmatprep.subr.bf16.mxu1 %v6158_v1 }
 0x277   :  { %4430 = vmatpush1.bf16.msra.mxu0 %v6249_v32 }
 0x278   :  { %4431 = vmatprep.subr.bf16.mxu0 %v6254_v50  ;;  %v6313_v50 = vld [vmem:[#allocation11 + $0x18] sm:$0xff]  }
 0x279   :  { %3938 = vmatpush1.bf16.msra.mxu1 %v6156_v2 }
 0x27a   :  { %3939 = vmatprep.subr.bf16.mxu1 %v6161_v4 }
 0x27b   :  { %4432 = vmatpush1.bf16.msra.mxu0 %v6252_v15  ;;  %v6270_v15 = vld [vmem:[#allocation8 + $0x140] ss:$8 sps:$4 sm:$0xff]  }
 0x27c   :  { %4433 = vmatprep.subr.bf16.mxu0 %v6257_v18  ;;  %v6315_v18 = vld [vmem:[#allocation11 + $0x20] sm:$0xff]  }
 0x27d   :  { %3940 = vmatpush1.bf16.msra.mxu1 %v6159_v35 }
 0x27e   :  { %3952 = vmatprep.subr.bf16.mxu1 %v6164_v5 }
 0x27f   :  { %4434 = vmatpush1.bf16.msra.mxu0 %v6255_v20  ;;  %v6273_v20 = vld [vmem:[#allocation8 + $0x150] ss:$8 sps:$4 sm:$0xff]  }
 0x280   :  { %3942 = vmatmul.mubr.bf16.vlgmr.msra.gmra.mrb[4].mxu1 %v6751_v53  ;;  %v6177_v53 = vld [vmem:[#allocation5 + $0xea8] ss:$16 sps:$4 sm:$0xff]   ;;  %4446 = vmatprep.subr.bf16.mxu0 %v6260_v8  ;;  %v6279_v8 = vld [vmem:[#allocation8 + $0x170] ss:$8 sps:$4 sm:$0xff]  }
 0x281   :  { %3953 = vmatpush1.bf16.msra.mxu1 %v6162_v6  ;;  %3984 = vmatprep.mubr.bf16.mxu1 %v6759_v0  ;;  %v6180_v0 = vld [vmem:[#allocation5 + $0xec8] ss:$16 sps:$4 sm:$0xff]   ;;  %v6258_v6 = vld [vmem:[#allocation8 + $0x100] ss:$8 sps:$4 sm:$0xff]  }
 0x282   :  { %3954 = vmatprep.subr.bf16.mxu1 %v6167_v7  ;;  %v6307_v7 = vld [vmem:[#allocation11] sm:$0xff]  }
 0x285   :  { %3955 = vmatpush1.bf16.msra.mxu1 %v6165_v10  ;;  %v6308_v10 = vld [vmem:[#allocation11 + $0x48] sm:$0xff]  }
 0x286   :  { %3956 = vmatprep.subr.bf16.mxu1 %v6170_v11  ;;  %v6266_v11 = vld [vmem:[#allocation8 + $0x124] ss:$8 sps:$4 sm:$0xff]  }
 0x289   :  { %3957 = vmatpush1.bf16.msra.mxu1 %v6168_v54  ;;  %v6309_v54 = vld [vmem:[#allocation11 + $0x8] sm:$0xff]  }
 0x28a   :  { %3958 = vmatprep.subr.bf16.mxu1 %v6173_v59  ;;  %v6310_v59 = vld [vmem:[#allocation11 + $0x50] sm:$0xff]  }
 0x28d   :  { %3959 = vmatpush1.bf16.msra.mxu1 %v6171_v39  ;;  %v6264_v39 = vld [vmem:[#allocation8 + $0x120] ss:$8 sps:$4 sm:$0xff]  }
 0x28e   :  { %3960 = vmatprep.subr.bf16.mxu1 %v6176_v12  ;;  %v6269_v12 = vld [vmem:[#allocation8 + $0x134] ss:$8 sps:$4 sm:$0xff]  }
 0x291   :  { %3961 = vmatpush1.bf16.msra.mxu1 %v6174_v44  ;;  %v6311_v44 = vld [vmem:[#allocation11 + $0x10] sm:$0xff]  }
 0x292   :  { %3962 = vmatprep.subr.bf16.mxu1 %v6179_v13  ;;  %v6312_v13 = vld [vmem:[#allocation11 + $0x58] sm:$0xff]  }
 0x295   :  { %3963 = vmatpush1.bf16.msra.mxu1 %v6177_v53  ;;  %v6267_v53 = vld [vmem:[#allocation8 + $0x130] ss:$8 sps:$4 sm:$0xff]  }
 0x296   :  { %3964 = vmatprep.subr.bf16.mxu1 %v6182_v14  ;;  %v6272_v14 = vld [vmem:[#allocation8 + $0x144] ss:$8 sps:$4 sm:$0xff]  }
 0x299   :  { %3965 = vmatpush1.bf16.msra.mxu1 %v6180_v0  ;;  %v6314_v0 = vld [vmem:[#allocation11 + $0x60] sm:$0xff]  }
 0x29a   :  { %3966 = vmatprep.subr.bf16.mxu1 %v6185_v17  ;;  %v6275_v17 = vld [vmem:[#allocation8 + $0x154] ss:$8 sps:$4 sm:$0xff]  }
 0x29d   :  { %3967 = vmatpush1.bf16.msra.mxu1 %v6183_v19  ;;  %v6316_v19 = vld [vmem:[#allocation11 + $0x68] sm:$0xff]  }
 0x29e   :  { %3968 = vmatprep.subr.bf16.mxu1 %v6188_v23  ;;  %v6278_v23 = vld [vmem:[#allocation8 + $0x164] ss:$8 sps:$4 sm:$0xff]  }
 0x2a1   :  { %3969 = vmatpush1.bf16.msra.mxu1 %v6186_v24  ;;  %v6276_v24 = vld [vmem:[#allocation8 + $0x160] ss:$8 sps:$4 sm:$0xff]  }
 0x2a2   :  { %3970 = vmatprep.subr.bf16.mxu1 %v6191_v26  ;;  %v6281_v26 = vld [vmem:[#allocation8 + $0x174] ss:$8 sps:$4 sm:$0xff]  }
 0x2a5   :  { %3971 = vmatpush1.bf16.msra.mxu1 %v6189_v30  ;;  %v6284_v30 = vld [vmem:[#allocation8 + $0x184] ss:$8 sps:$4 sm:$0xff]  }
 0x2a6   :  { %3972 = vmatprep.subr.bf16.mxu1 %v6194_v31  ;;  %v6282_v31 = vld [vmem:[#allocation8 + $0x180] ss:$8 sps:$4 sm:$0xff]  }
 0x2a9   :  { %3973 = vmatpush1.bf16.msra.mxu1 %v6192_v21  ;;  %v6287_v21 = vld [vmem:[#allocation8 + $0x194] ss:$8 sps:$4 sm:$0xff]  }
 0x2aa   :  { %3974 = vmatprep.subr.bf16.mxu1 %v6197_v22  ;;  %v6285_v22 = vld [vmem:[#allocation8 + $0x190] ss:$8 sps:$4 sm:$0xff]  }
 0x2ad   :  { %3975 = vmatpush1.bf16.msra.mxu1 %v6195_v33  ;;  %v6290_v33 = vld [vmem:[#allocation8 + $0x1a4] ss:$8 sps:$4 sm:$0xff]  }
 0x2ae   :  { %3976 = vmatprep.subr.bf16.mxu1 %v6200_v55  ;;  %v6288_v55 = vld [vmem:[#allocation8 + $0x1a0] ss:$8 sps:$4 sm:$0xff]  }
 0x2b1   :  { %3977 = vmatpush1.bf16.msra.mxu1 %v6198_v9  ;;  %v6293_v9 = vld [vmem:[#allocation8 + $0x1b4] ss:$8 sps:$4 sm:$0xff]  }
 0x2b2   :  { %3978 = vmatprep.subr.bf16.mxu1 %v6203_v37  ;;  %v6291_v37 = vld [vmem:[#allocation8 + $0x1b0] ss:$8 sps:$4 sm:$0xff]  }
 0x2b5   :  { %3979 = vmatpush1.bf16.msra.mxu1 %v6201_v28  ;;  %v6296_v28 = vld [vmem:[#allocation8 + $0x1c4] ss:$8 sps:$4 sm:$0xff]  }
 0x2b6   :  { %3980 = vmatprep.subr.bf16.mxu1 %v6206_v29  ;;  %v6294_v29 = vld [vmem:[#allocation8 + $0x1c0] ss:$8 sps:$4 sm:$0xff]  }
 0x2b9   :  { %3981 = vmatpush1.bf16.msra.mxu1 %v6204_v40  ;;  %v6299_v40 = vld [vmem:[#allocation8 + $0x1d4] ss:$8 sps:$4 sm:$0xff]  }
 0x2ba   :  { %3982 = vmatprep.subr.bf16.mxu1 %v6209_v41  ;;  %v6297_v41 = vld [vmem:[#allocation8 + $0x1d0] ss:$8 sps:$4 sm:$0xff]  }
 0x2bd   :  { %3983 = vmatpush1.bf16.msra.mxu1 %v6207_v42  ;;  %v6302_v42 = vld [vmem:[#allocation8 + $0x1e4] ss:$8 sps:$4 sm:$0xff]  }
 0x2be   :  { %5333 = vmatprep.subr.bf16.mxu1 %v6306_v58  ;;  %v6320_v58 = vld [vmem:[#allocation11 + $0x78] sm:$0xff]  }
 0x2c0   :  { %3985 = vmatmul.mubr.bf16.vlgmr.msra.gmra.mrb[4].mxu1 %v6767_v3  ;;  %v3344_v3 = vadd.f32 %v6727_v57, %v654_v49  ;;  %v6263_v57 = vld [vmem:[#allocation8 + $0x114] ss:$8 sps:$4 sm:$0xff]   ;;  %v6303_v49 = vld [vmem:[#allocation8 + $0x1f0] ss:$8 sps:$4 sm:$0xff]  }
 0x2c1   :  { %5334 = vmatpush3.bf16.msra.mxu1 %v6307_v7  ;;  %v6321_v7 = vld [vmem:[#allocation11 + $0x38] sm:$0xff]  }
 0x2c2   :  { %5335 = vmatprep.subr.bf16.mxu1 %v6308_v10  ;;  %v4071_v10 = vld [vmem:[#allocation10] sm:$0x3] }
 0x2c5   :  { %5336 = vmatpush3.bf16.msra.mxu1 %v6309_v54 }
 0x2c6   :  { %5337 = vmatprep.subr.bf16.mxu1 %v6310_v59 }
 0x2c9   :  { %5338 = vmatpush3.bf16.msra.mxu1 %v6311_v44 }
 0x2ca   :  { %5339 = vmatprep.subr.bf16.mxu1 %v6312_v13 }
 0x2cd   :  { %5340 = vmatpush3.bf16.msra.mxu1 %v6313_v50 }
 0x2ce   :  { %5341 = vmatprep.subr.bf16.mxu1 %v6314_v0 }
 0x2d1   :  { %5342 = vmatpush3.bf16.msra.mxu1 %v6315_v18 }
 0x2d2   :  { %5343 = vmatprep.subr.bf16.mxu1 %v6316_v19 }
 0x314   :  { %v3642_v36 = vpop.f32.mrb[0].mxu0 }
 0x315   :  { %v5356_v52 = vadd.f32 %v3642_v36, %v3342_v34  ;;  %v3644_v27 = vpop.f32.mrb[1].mxu0  ;;  %v657_v34 = vsub.s32 2, %v6775_v43 }
 0x316   :  { %v5358_v62 = vadd.f32 %v3644_v27, %v3344_v3  ;;  %v3646_v63 = vpop.f32.mrb[2].mxu0  ;;  %v661_v3 = vsub.s32 3, %v6775_v43 }
 0x317   :  { %v5360_v46 = vadd.f32 %v3646_v63, %v3346_v51  ;;  %v3648_v47 = vpop.f32.mrb[3].mxu0  ;;  %v3995_v32 = vmax.f32 %v5356_v52, 0.0  ;;  %v658_v36 = vrot.slane %v6778_v45, %v657_v34 }
 0x318   :  { %v5362_v1 = vadd.f32 %v3648_v47, %v3348_v60  ;;  %v3996_v4 = vmax.f32 %v5358_v62, 0.0  ;;  %v662_v51 = vrot.slane %v6778_v45, %v661_v3  ;;  %v6319_v45 = vld [vmem:[#allocation11 + $0x30] sm:$0xff]  }
 0x319   :  { %v3999_v2 = vmax.f32 %v5360_v46, 0.0 }
 0x31a   :  { %v4000_v35 = vmax.f32 %v5362_v1, 0.0 }
 0x31b   :  { %v4003_v5 = vpack.c.bf16 %v3999_v2, %v3995_v32 }
 0x31c   :  { %v4004_v56 = vpack.c.bf16 %v4000_v35, %v3996_v4 }
 0x31e   :  { %4435 = vmatprep.mubr.bf16.mxu0 %v4004_v56 }
 0x31f   :  { %4436 = vmatmul.mubr.bf16.vlgmr.msra.gmra.mrb[4].mxu0 %v4003_v5 }
 0x320   :  { %4447 = vmatpush1.bf16.msra.mxu0 %v6258_v6  ;;  %v6317_v6 = vld [vmem:[#allocation11 + $0x28] sm:$0xff]  }
 0x321   :  { %4448 = vmatprep.subr.bf16.mxu0 %v6263_v57  ;;  %5344 = vmatpush3.bf16.msra.mxu1 %v6317_v6  ;;  %v6318_v57 = vld [vmem:[#allocation11 + $0x70] sm:$0xff]  }
 0x322   :  { %5345 = vmatprep.subr.bf16.mxu1 %v6318_v57 }
 0x324   :  { %4449 = vmatpush1.bf16.msra.mxu0 %v6261_v61  ;;  %v4076_v61 = vrot.slane %v4071_v10, %v649_v16 }
 0x325   :  { %4450 = vmatprep.subr.bf16.mxu0 %v6266_v11  ;;  %5346 = vmatpush3.bf16.msra.mxu1 %v6319_v45  ;;  %v4080_v11 = vrot.slane %v4071_v10, %v653_v48 }
 0x326   :  { %5347 = vmatprep.subr.bf16.mxu1 %v6320_v58 }
 0x328   :  { %4451 = vmatpush1.bf16.msra.mxu0 %v6264_v39 }
 0x329   :  { %4452 = vmatprep.subr.bf16.mxu0 %v6269_v12  ;;  %5348 = vmatpush3.bf16.msra.mxu1 %v6321_v7 }
 0x32c   :  { %4453 = vmatpush1.bf16.msra.mxu0 %v6267_v53 }
 0x32d   :  { %4454 = vmatprep.subr.bf16.mxu0 %v6272_v14 }
 0x330   :  { %4455 = vmatpush1.bf16.msra.mxu0 %v6270_v15 }
 0x331   :  { %4456 = vmatprep.subr.bf16.mxu0 %v6275_v17 }
 0x334   :  { %4457 = vmatpush1.bf16.msra.mxu0 %v6273_v20  ;;  %v5305_v20 = vld [vmem:[#allocation13] ss:$0 sm:$0xff] }
 0x335   :  { %4458 = vmatprep.subr.bf16.mxu0 %v6278_v23 }
 0x338   :  { %4459 = vmatpush1.bf16.msra.mxu0 %v6276_v24 }
 0x339   :  { %4460 = vmatprep.subr.bf16.mxu0 %v6281_v26 }
 0x33c   :  { %4461 = vmatpush1.bf16.msra.mxu0 %v6279_v8 }
 0x33d   :  { %4462 = vmatprep.subr.bf16.mxu0 %v6284_v30 }
 0x340   :  { %4463 = vmatpush1.bf16.msra.mxu0 %v6282_v31 }
 0x341   :  { %4464 = vmatprep.subr.bf16.mxu0 %v6287_v21 }
 0x344   :  { %4465 = vmatpush1.bf16.msra.mxu0 %v6285_v22 }
 0x345   :  { %4466 = vmatprep.subr.bf16.mxu0 %v6290_v33 }
 0x348   :  { %4467 = vmatpush1.bf16.msra.mxu0 %v6288_v55 }
 0x349   :  { %4468 = vmatprep.subr.bf16.mxu0 %v6293_v9 }
 0x34c   :  { %4469 = vmatpush1.bf16.msra.mxu0 %v6291_v37 }
 0x34d   :  { %4470 = vmatprep.subr.bf16.mxu0 %v6296_v28 }
 0x350   :  { %4471 = vmatpush1.bf16.msra.mxu0 %v6294_v29 }
 0x351   :  { %4472 = vmatprep.subr.bf16.mxu0 %v6299_v40 }
 0x354   :  { %4473 = vmatpush1.bf16.msra.mxu0 %v6297_v41 }
 0x355   :  { %4474 = vmatprep.subr.bf16.mxu0 %v6302_v42 }
 0x358   :  { %4475 = vmatpush1.bf16.msra.mxu0 %v6300_v38 }
 0x359   :  { %4476 = vmatprep.subr.bf16.mxu0 %v6305_v25 }
 0x35c   :  { %4477 = vmatpush1.bf16.msra.mxu0 %v6303_v49 }
 0x393   :  { %v3986_v52 = vpop.f32.mrb[4].mxu1 }
 0x394   :  { %v5363_v27 = vadd.f32 %v3986_v52, %v658_v36  ;;  %v3988_v60 = vpop.f32.mrb[5].mxu1 }
 0x395   :  { %v5364_v62 = vadd.f32 %v3988_v60, %v662_v51  ;;  %v3990_v63 = vpop.f32.mrb[6].mxu1 }
 0x396   :  { %v5365_v46 = vadd.f32 %v3990_v63, %v658_v36  ;;  %v3992_v47 = vpop.f32.mrb[7].mxu1  ;;  %v3997_v32 = vmax.f32 %v5363_v27, 0.0 }
 0x397   :  { %v5366_v1 = vadd.f32 %v3992_v47, %v662_v51  ;;  %v3998_v4 = vmax.f32 %v5364_v62, 0.0 }
 0x398   :  { %v4001_v2 = vmax.f32 %v5365_v46, 0.0 }
 0x399   :  { %v4002_v35 = vmax.f32 %v5366_v1, 0.0 }
 0x39a   :  { %v4005_v5 = vpack.c.bf16 %v4001_v2, %v3997_v32 }
 0x39b   :  { %v4006_v56 = vpack.c.bf16 %v4002_v35, %v3998_v4 }
 0x39d   :  { %4478 = vmatprep.mubr.bf16.mxu0 %v4006_v56 }
 0x39e   :  { %4479 = vmatmul.mubr.bf16.vlgmr.msra.gmra.mrb[4].mxu0 %v4005_v5 }
 0x471   :  { %v4480_v54 = vpop.f32.mrb[4].mxu0 }
 0x472   :  { %v5367_v59 = vadd.f32 %v4480_v54, %v4076_v61  ;;  %v4482_v39 = vpop.f32.mrb[5].mxu0 }
 0x473   :  { %v5368_v12 = vadd.f32 %v4482_v39, %v4080_v11  ;;  %v4484_v44 = vpop.f32.mrb[6].mxu0 }
 0x474   :  { %v5369_v13 = vadd.f32 %v4484_v44, %v4076_v61  ;;  %v4486_v53 = vpop.f32.mrb[7].mxu0  ;;  %v4489_v50 = vmax.f32 %v5367_v59, 0.0 }
 0x475   :  { %v5370_v14 = vadd.f32 %v4486_v53, %v4080_v11  ;;  %v4490_v15 = vmax.f32 %v5368_v12, 0.0 }
 0x476   :  { %v4491_v0 = vmax.f32 %v5369_v13, 0.0 }
 0x477   :  { %v4492_v17 = vmax.f32 %v5370_v14, 0.0 }
 0x478   :  { %v4493_v18 = vpack.c.bf16 %v4491_v0, %v4489_v50 }
 0x479   :  { %v4494_v19 = vpack.c.bf16 %v4492_v17, %v4490_v15 }
 0x47b   :  { %4662 = vmatprep.mubr.bf16.mxu1 %v4494_v19 }
 0x47c   :  { %4663 = vmatmul.mubr.bf16.vlgmr.msra.gmra.mrb[8].mxu1 %v4493_v18 }
 0x54f   :  { %v5349_v16 = vpop.f32.mrb[8].mxu1 }
 0x550   :  { %v5350_v43 = vpop.f32.mrb[9].mxu1 }
 0x551   :  { %v5351_v48 = vadd.f32 %v5350_v43, %v5349_v16  ;;  %v5352_v23 = vpop.f32.mrb[10].mxu1 }
 0x552   :  { %v5353_v24 = vpop.f32.mrb[11].mxu1 }
 0x553   :  { %v4665_v26 = vadd.f32 %v5351_v48, %v5305_v20  ;;  %v5354_v8 = vadd.f32 %v5353_v24, %v5352_v23 }
 0x555   :  { %v5322_v30 = vmul.f32 -1.442695, %v4665_v26  ;;  %v4668_v31 = vadd.f32 %v5354_v8, %v5305_v20 }
 0x557   :  { %6322 = vpow2.f32 %v5322_v30  ;;  %v5323_v21 = vmul.f32 -1.442695, %v4668_v31 }
 0x559   :  { %6324 = vpow2.f32 %v5323_v21 }
 0x561   :  { %v6323_v22 = vpop.eup %6322 }
 0x562   :  { %v4677_v33 = vadd.f32 1.0, %v6323_v22 }
 0x563   :  { %v6325_v55 = vpop.eup %6324 }
 0x564   :  { %v4678_v9 = vadd.f32 1.0, %v6325_v55  ;;  %6326 = vrcp.f32 %v4677_v33 }
 0x566   :  { %6328 = vrcp.f32 %v4678_v9 }
 0x56e   :  { %v6327_v37 = vpop.eup %6326 }
 0x570   :  { %v6329_v28 = vpop.eup %6328 }
 0x571   :  { %v5331_v29 = vpack.c.bf16 %v6329_v28, %v6327_v37 }
 0x573   :  { %5332 = vst [vmem:[#allocation14] sm:$0xff] %v5331_v29  }
 0x574   :  { %6495 = shalt.err (!%p6492_p4)
}
 0x575   :  { %s6496_s20 = scalar_lea.hbm %s6821_s7, 128 }
 0x576   :  { %p6497_p5 = scmp.ne.s32.totalorder %s6821_s7, %s6496_s20  ;;  %p6500_p6 = scmp.lt.u32.totalorder %s6496_s20, %s6821_s7 }
 0x578   :  { %p6502_p7 = pnand %p6500_p6, %p6497_p5 }
 0x57a   :  { %6505 = shalt.err (!%p6502_p7)
}
 0x57b   :  { %4704 = dma.vmem_to_hbm [thread:$0]  %s4699_s17, 128, %s6821_s7, [#allocation4], %s6523_s3, %s6523_s3, %s6524_s15  }
 0x57c   :  { %6514 = dma.done.wait [#allocation4], 128  }
 0x57d   :  { %6515 = vsyncadd [#allocation4], 4294967168 }
 0x57e   :  { %4708 = vsyncpa [#allocation3], 1 }
 0x57f   :  { %4709 = vsyncpa [#allocation6], 1 }
 0x580   :  { %4710 = vsyncpa [#allocation9], 1 }
 0x581   :  { %4711 = vsyncpa [#allocation12], 1 }
 0x582   :  { %4712 = vsyncpa [#allocation4], 1 }

// kernel: tpu_custom_call.1
= control target key start
LH: loop header
LB: loop body
LE: loop exit
PB: predicated region body
PF: predicated region fallthrough
CT: control target
= control target key end

     0   :  { %12 = vsyncpa [#allocation3], 0  ;;  %s6814_s0 = inlined_call_operand.hbm [shape: bf16[16,2048], index: 0, kind: input, shape index: {}]   ;;  %s6815_s1 = inlined_call_operand.hbm [shape: bf16[2048,512], index: 1, kind: input, shape index: {}]   ;;  %s6816_s2 = inlined_call_operand.hbm [shape: f32[1,512], index: 2, kind: input, shape index: {}]   ;;  %s6817_s3 = inlined_call_operand.hbm [shape: bf16[512,256], index: 3, kind: input, shape index: {}]   ;;  %s6818_s4 = inlined_call_operand.hbm [shape: f32[1,256], index: 4, kind: input, shape index: {}]   ;;  %s6819_s5 = inlined_call_operand.hbm [shape: bf16[256,128], index: 5, kind: input, shape index: {}]   ;;  %s6820_s6 = inlined_call_operand.hbm [shape: f32[1,128], index: 6, kind: input, shape index: {}]   ;;  %s6821_s7 = inlined_call_operand.hbm [shape: bf16[16,128], index: 7, kind: output, shape index: {}]  }
   0x1   :  { %13 = vsyncpa [#allocation6], 0 }
   0x2   :  { %14 = vsyncpa [#allocation9], 0 }
   0x3   :  { %15 = vsyncpa [#allocation12], 0 }
   0x4   :  { %16 = vsyncpa [#allocation4], 0  ;;  %s6516_s24 = smov [#allocation5]   ;;  %s6330_s28 = scalar_lea.hbm %s6815_s1, 65536 }
   0x5   :  { %s34_s25 = sshll.u32 %s6516_s24, 4  ;;  %p6331_p0 = scmp.ne.s32.totalorder %s6815_s1, %s6330_s28  ;;  %s35_s25 = int_to_ptr.vmem [resolvable:$true] %s34_s25 }
   0x6   :  { %p6334_p1 = scmp.lt.u32.totalorder %s6330_s28, %s6815_s1 }
   0x8   :  { %p6336_p2 = pnand %p6334_p1, %p6331_p0 }
   0xa   :  { %6339 = shalt.err (!%p6336_p2)
}
   0xb   :  { %s6340_s10 = scalar_lea.vmem %s35_s25, 65536  ;;  %p6345_p4 = scmp.lt.s32.totalorder %s35_s25, %s35_s25 }
   0xc   :  { %p6341_p3 = scmp.ne.s32.totalorder %s35_s25, %s6340_s10  ;;  %p6346_p5 = scmp.lt.s32.totalorder %s6340_s10, %s6340_s10 }
   0xe   :  { %p6347_p6 = por %p6346_p5, %p6345_p4 }
  0x10   :  { %p6348_p7 = pnand %p6347_p6, %p6341_p3 }
  0x12   :  { %6351 = shalt.err (!%p6348_p7)
}
  0x13   :  { %s6517_s11 = smov 256   ;;  %s6518_s12 = smov 16  }
  0x14   :  { %40 = dma.hbm_to_vmem [thread:$0]  %s6815_s1, 65536, %s35_s25, [#allocation6], %s6517_s11, %s6517_s11, %s6518_s12  }
  0x15   :  { %s6519_s15 = smov [#allocation8]   ;;  %s6352_s19 = scalar_lea.hbm %s6817_s3, 8192 }
  0x16   :  { %s56_s16 = sshll.u32 %s6519_s15, 4  ;;  %p6353_p8 = scmp.ne.s32.totalorder %s6817_s3, %s6352_s19  ;;  %s57_s16 = int_to_ptr.vmem [resolvable:$true] %s56_s16 }
  0x17   :  { %p6356_p9 = scmp.lt.u32.totalorder %s6352_s19, %s6817_s3 }
  0x19   :  { %p6358_p10 = pnand %p6356_p9, %p6353_p8 }
  0x1b   :  { %6361 = shalt.err (!%p6358_p10)
}
  0x1c   :  { %s6362_s24 = scalar_lea.vmem %s57_s16, 8192  ;;  %p6367_p12 = scmp.lt.s32.totalorder %s57_s16, %s57_s16 }
  0x1d   :  { %p6363_p11 = scmp.ne.s32.totalorder %s57_s16, %s6362_s24  ;;  %p6368_p13 = scmp.lt.s32.totalorder %s6362_s24, %s6362_s24 }
  0x1f   :  { %p6369_p0 = por %p6368_p13, %p6367_p12 }
  0x21   :  { %p6370_p1 = pnand %p6369_p0, %p6363_p11 }
  0x23   :  { %6373 = shalt.err (!%p6370_p1)
}
  0x24   :  { %s6520_s1 = smov 128   ;;  %s6521_s25 = smov 8  }
  0x25   :  { %62 = dma.hbm_to_vmem [thread:$0]  %s6817_s3, 8192, %s57_s16, [#allocation9], %s6520_s1, %s6520_s1, %s6521_s25  }
  0x26   :  { %s6522_s28 = smov [#allocation11]   ;;  %s6374_s9 = scalar_lea.hbm %s6819_s5, 2048 }
  0x27   :  { %s78_s29 = sshll.u32 %s6522_s28, 4  ;;  %p6375_p2 = scmp.ne.s32.totalorder %s6819_s5, %s6374_s9  ;;  %s79_s29 = int_to_ptr.vmem [resolvable:$true] %s78_s29 }
  0x28   :  { %p6378_p3 = scmp.lt.u32.totalorder %s6374_s9, %s6819_s5 }
  0x2a   :  { %p6380_p4 = pnand %p6378_p3, %p6375_p2 }
  0x2c   :  { %6383 = shalt.err (!%p6380_p4)
}
  0x2d   :  { %s6384_s14 = scalar_lea.vmem %s79_s29, 2048  ;;  %p6389_p6 = scmp.lt.s32.totalorder %s79_s29, %s79_s29 }
  0x2e   :  { %p6385_p5 = scmp.ne.s32.totalorder %s79_s29, %s6384_s14  ;;  %p6390_p7 = scmp.lt.s32.totalorder %s6384_s14, %s6384_s14 }
  0x30   :  { %p6391_p8 = por %p6390_p7, %p6389_p6 }
  0x32   :  { %p6392_p9 = pnand %p6391_p8, %p6385_p5 }
  0x34   :  { %6395 = shalt.err (!%p6392_p9)
}
  0x35   :  { %s6523_s3 = smov 64   ;;  %s6524_s15 = smov 4  }
  0x36   :  { %84 = dma.hbm_to_vmem [thread:$0]  %s6819_s5, 2048, %s79_s29, [#allocation12], %s6523_s3, %s6523_s3, %s6524_s15  }
  0x37   :  { %s6525_s18 = smov [#allocation2]   ;;  %s6396_s22 = scalar_lea.hbm %s6814_s0, 2048 }
  0x38   :  { %s22_s19 = sshll.u32 %s6525_s18, 4  ;;  %p6397_p10 = scmp.ne.s32.totalorder %s6814_s0, %s6396_s22  ;;  %s23_s19 = int_to_ptr.vmem [resolvable:$true] %s22_s19 }
  0x39   :  { %p6400_p11 = scmp.lt.u32.totalorder %s6396_s22, %s6814_s0 }
  0x3b   :  { %p6402_p12 = pnand %p6400_p11, %p6397_p10 }
  0x3d   :  { %6405 = shalt.err (!%p6402_p12)
}
  0x3e   :  { %s6406_s26 = scalar_lea.vmem %s23_s19, 2048  ;;  %p6411_p0 = scmp.lt.s32.totalorder %s23_s19, %s23_s19 }
  0x3f   :  { %p6407_p13 = scmp.ne.s32.totalorder %s23_s19, %s6406_s26  ;;  %p6412_p1 = scmp.lt.s32.totalorder %s6406_s26, %s6406_s26 }
  0x41   :  { %p6413_p2 = por %p6412_p1, %p6411_p0 }
  0x43   :  { %p6414_p3 = pnand %p6413_p2, %p6407_p13 }
  0x45   :  { %6417 = shalt.err (!%p6414_p3)
}
  0x46   :  { %s6526_s5 = smov 1024   ;;  %s6527_s29 = smov [#allocation7]  }
  0x47   :  { %28 = dma.hbm_to_vmem [thread:$0]  %s6814_s0, 2048, %s23_s19, [#allocation3], %s6526_s5, %s6526_s5, %s6523_s3  }
  0x48   :  { %s47_s30 = sshll.u32 %s6527_s29, 4  ;;  %s6528_s8 = smov [#allocation10]   ;;  %s48_s30 = int_to_ptr.vmem [resolvable:$true] %s47_s30 }
  0x49   :  { %s69_s9 = sshll.u32 %s6528_s8, 4  ;;  %s6418_s12 = scalar_lea.hbm %s6816_s2, 64  ;;  %s70_s9 = int_to_ptr.vmem [resolvable:$true] %s69_s9 }
  0x4a   :  { %p6419_p4 = scmp.ne.s32.totalorder %s6816_s2, %s6418_s12  ;;  %p6422_p5 = scmp.lt.u32.totalorder %s6418_s12, %s6816_s2 }
  0x4c   :  { %p6424_p6 = pnand %p6422_p5, %p6419_p4 }
  0x4e   :  { %6427 = shalt.err (!%p6424_p6)
}
  0x4f   :  { %s6428_s0 = scalar_lea.vmem %s48_s30, 64  ;;  %p6433_p8 = scmp.lt.s32.totalorder %s48_s30, %s48_s30 }
  0x50   :  { %p6429_p7 = scmp.ne.s32.totalorder %s48_s30, %s6428_s0  ;;  %p6434_p9 = scmp.lt.s32.totalorder %s6428_s0, %s6428_s0 }
  0x52   :  { %p6435_p10 = por %p6434_p9, %p6433_p8 }
  0x54   :  { %p6436_p11 = pnand %p6435_p10, %p6429_p7 }
  0x56   :  { %6439 = shalt.err (!%p6436_p11)
}
  0x57   :  { %50 = dma.hbm_to_vmem [thread:$0]  %s6816_s2, 64, %s48_s30, [#allocation6]  }
  0x58   :  { %s6440_s22 = scalar_lea.hbm %s6818_s4, 32 }
  0x59   :  { %p6441_p12 = scmp.ne.s32.totalorder %s6818_s4, %s6440_s22  ;;  %p6444_p13 = scmp.lt.u32.totalorder %s6440_s22, %s6818_s4 }
  0x5b   :  { %p6446_p0 = pnand %p6444_p13, %p6441_p12 }
  0x5d   :  { %6449 = shalt.err (!%p6446_p0)
}
  0x5e   :  { %s6450_s26 = scalar_lea.vmem %s70_s9, 32  ;;  %p6455_p2 = scmp.lt.s32.totalorder %s70_s9, %s70_s9 }
  0x5f   :  { %p6451_p1 = scmp.ne.s32.totalorder %s70_s9, %s6450_s26  ;;  %p6456_p3 = scmp.lt.s32.totalorder %s6450_s26, %s6450_s26 }
  0x61   :  { %p6457_p4 = por %p6456_p3, %p6455_p2 }
  0x63   :  { %p6458_p5 = pnand %p6457_p4, %p6451_p1 }
  0x65   :  { %6461 = shalt.err (!%p6458_p5)
}
  0x66   :  { %72 = dma.hbm_to_vmem [thread:$0]  %s6818_s4, 32, %s70_s9, [#allocation9]  }
  0x67   :  { %s6529_s27 = smov [#allocation13]   ;;  %s6462_s8 = scalar_lea.hbm %s6820_s6, 16 }
  0x68   :  { %s91_s28 = sshll.u32 %s6529_s27, 4  ;;  %p6463_p6 = scmp.ne.s32.totalorder %s6820_s6, %s6462_s8  ;;  %s92_s28 = int_to_ptr.vmem [resolvable:$true] %s91_s28 }
  0x69   :  { %p6466_p7 = scmp.lt.u32.totalorder %s6462_s8, %s6820_s6 }
  0x6b   :  { %p6468_p8 = pnand %p6466_p7, %p6463_p6 }
  0x6d   :  { %6471 = shalt.err (!%p6468_p8)
}
  0x6e   :  { %s6472_s14 = scalar_lea.vmem %s92_s28, 16  ;;  %s6476_s4 = scalar_lea.vmem %s92_s28, 32 }
  0x6f   :  { %p6473_p9 = scmp.ne.s32.totalorder %s92_s28, %s6472_s14  ;;  %p6477_p10 = scmp.lt.s32.totalorder %s92_s28, %s92_s28 }
  0x70   :  { %p6478_p11 = scmp.lt.s32.totalorder %s6476_s4, %s6472_s14 }
  0x72   :  { %p6479_p12 = por %p6478_p11, %p6477_p10 }
  0x74   :  { %p6480_p13 = pnand %p6479_p12, %p6473_p9 }
  0x76   :  { %6483 = shalt.err (!%p6480_p13)
}
  0x77   :  { %94 = dma.hbm_to_vmem [thread:$0]  %s6820_s6, 16, %s92_s28, [#allocation12]  }
  0x78   :  { %6506 = dma.done.wait [#allocation3], 2048  }
  0x79   :  { %6507 = vsyncadd [#allocation3], 4294965248 }
  0x7a   :  { %6508 = dma.done.wait [#allocation6], 65600  }
  0x7b   :  { %6509 = vsyncadd [#allocation6], 4294901696 }
  0x7c   :  { %6510 = dma.done.wait [#allocation9], 8224  }
  0x7d   :  { %6511 = vsyncadd [#allocation9], 4294959072 }
  0x7e   :  { %6512 = dma.done.wait [#allocation12], 2064  }
  0x7f   :  { %6513 = vsyncadd [#allocation12], 4294965232  ;;  %v5442_v0 = vld [vmem:[#allocation5 + $0x4] ss:$16 sps:$4 sm:$0xff]   ;;  %v5446_v2 = vld [vmem:[#allocation5] ss:$16 sps:$4 sm:$0xff]  }
  0x80   :  { %v5444_v1 = vld [vmem:[#allocation5 + $0x204] ss:$16 sps:$4 sm:$0xff]   ;;  %3307 = vmatprep.subr.bf16.mxu1 %v5442_v0  ;;  %v5447_v3 = vld [vmem:[#allocation5 + $0x200] ss:$16 sps:$4 sm:$0xff]   ;;  %v118_v50 = vld [vmem:[#allocation2 + $0x8] sm:$0xff]  ;;  %s6530_s6 = smov [#allocation14]  }
  0x81   :  { %3350 = vmatprep.subr.bf16.mxu0 %v5444_v1  ;;  %v5448_v4 = vld [vmem:[#allocation5 + $0x24] ss:$16 sps:$4 sm:$0xff]   ;;  %3308 = vmatpush1.bf16.msra.mxu1 %v5446_v2  ;;  %v5452_v6 = vld [vmem:[#allocation5 + $0x20] ss:$16 sps:$4 sm:$0xff]   ;;  %v126_v51 = vld [vmem:[#allocation2 + $0x48] sm:$0xff]  ;;  %s4698_s17 = sshll.u32 %s6530_s6, 4  ;;  %s4699_s17 = int_to_ptr.vmem [resolvable:$true] %s4698_s17 }
  0x82   :  { %3351 = vmatpush1.bf16.msra.mxu0 %v5447_v3  ;;  %v5450_v5 = vld [vmem:[#allocation5 + $0x224] ss:$16 sps:$4 sm:$0xff]   ;;  %3309 = vmatprep.subr.bf16.mxu1 %v5448_v4  ;;  %v5453_v7 = vld [vmem:[#allocation5 + $0x220] ss:$16 sps:$4 sm:$0xff]   ;;  %v6659_v55 = vcombine.high %v118_v50, %v126_v51  ;;  %s6484_s0 = scalar_lea.vmem %s4699_s17, 128  ;;  %p6489_p1 = scmp.lt.s32.totalorder %s4699_s17, %s4699_s17 }
  0x83   :  { %3352 = vmatprep.subr.bf16.mxu0 %v5450_v5  ;;  %v5454_v8 = vld [vmem:[#allocation5 + $0x44] ss:$16 sps:$4 sm:$0xff]   ;;  %v5458_v10 = vld [vmem:[#allocation5 + $0x40] ss:$16 sps:$4 sm:$0xff]   ;;  %p6485_p0 = scmp.ne.s32.totalorder %s4699_s17, %s6484_s0  ;;  %p6490_p2 = scmp.lt.s32.totalorder %s6484_s0, %s6484_s0 }
  0x84   :  { %v5456_v9 = vld [vmem:[#allocation5 + $0x244] ss:$16 sps:$4 sm:$0xff]   ;;  %v5459_v11 = vld [vmem:[#allocation5 + $0x240] ss:$16 sps:$4 sm:$0xff]   ;;  %3382 = vmatprep.mubr.bf16.mxu0 %v6659_v55 }
  0x85   :  { %3310 = vmatpush1.bf16.msra.mxu1 %v5452_v6  ;;  %v5460_v12 = vld [vmem:[#allocation5 + $0x64] ss:$16 sps:$4 sm:$0xff]   ;;  %v5464_v14 = vld [vmem:[#allocation5 + $0x60] ss:$16 sps:$4 sm:$0xff]   ;;  %p6491_p3 = por %p6490_p2, %p6489_p1 }
  0x86   :  { %3353 = vmatpush1.bf16.msra.mxu0 %v5453_v7  ;;  %3311 = vmatprep.subr.bf16.mxu1 %v5454_v8  ;;  %v5462_v13 = vld [vmem:[#allocation5 + $0x264] ss:$16 sps:$4 sm:$0xff]   ;;  %v5465_v15 = vld [vmem:[#allocation5 + $0x260] ss:$16 sps:$4 sm:$0xff]   ;;  %v5543_v7 = vld [vmem:[#allocation5 + $0xc] ss:$16 sps:$4 sm:$0xff]  }
  0x87   :  { %3354 = vmatprep.subr.bf16.mxu0 %v5456_v9  ;;  %v5466_v16 = vld [vmem:[#allocation5 + $0x84] ss:$16 sps:$4 sm:$0xff]   ;;  %v5470_v18 = vld [vmem:[#allocation5 + $0x80] ss:$16 sps:$4 sm:$0xff]   ;;  %v6664_v9 = vcombine.low %v118_v50, %v126_v51  ;;  %v5595_v50 = vld [vmem:[#allocation5 + $0x128] ss:$16 sps:$4 sm:$0xff]   ;;  %p6492_p4 = pnand %p6491_p3, %p6485_p0 }
  0x88   :  { %v5468_v17 = vld [vmem:[#allocation5 + $0x284] ss:$16 sps:$4 sm:$0xff]   ;;  %v5471_v19 = vld [vmem:[#allocation5 + $0x280] ss:$16 sps:$4 sm:$0xff]  }
  0x89   :  { %3312 = vmatpush1.bf16.msra.mxu1 %v5458_v10  ;;  %v5472_v20 = vld [vmem:[#allocation5 + $0xa4] ss:$16 sps:$4 sm:$0xff]   ;;  %v5476_v22 = vld [vmem:[#allocation5 + $0xa0] ss:$16 sps:$4 sm:$0xff]  }
  0x8a   :  { %3355 = vmatpush1.bf16.msra.mxu0 %v5459_v11  ;;  %3313 = vmatprep.subr.bf16.mxu1 %v5460_v12  ;;  %v5474_v21 = vld [vmem:[#allocation5 + $0x2a4] ss:$16 sps:$4 sm:$0xff]   ;;  %v5477_v23 = vld [vmem:[#allocation5 + $0x2a0] ss:$16 sps:$4 sm:$0xff]   ;;  %v5541_v11 = vld [vmem:[#allocation5 + $0x8] ss:$16 sps:$4 sm:$0xff]  }
  0x8b   :  { %3356 = vmatprep.subr.bf16.mxu0 %v5462_v13  ;;  %v5478_v24 = vld [vmem:[#allocation5 + $0xc4] ss:$16 sps:$4 sm:$0xff]   ;;  %v5482_v26 = vld [vmem:[#allocation5 + $0xc0] ss:$16 sps:$4 sm:$0xff]   ;;  %v5549_v13 = vld [vmem:[#allocation5 + $0x2c] ss:$16 sps:$4 sm:$0xff]  }
  0x8c   :  { %v5480_v25 = vld [vmem:[#allocation5 + $0x2c4] ss:$16 sps:$4 sm:$0xff]   ;;  %v5483_v27 = vld [vmem:[#allocation5 + $0x2c0] ss:$16 sps:$4 sm:$0xff]  }
  0x8d   :  { %3314 = vmatpush1.bf16.msra.mxu1 %v5464_v14  ;;  %v5484_v28 = vld [vmem:[#allocation5 + $0xe4] ss:$16 sps:$4 sm:$0xff]   ;;  %v5488_v30 = vld [vmem:[#allocation5 + $0xe0] ss:$16 sps:$4 sm:$0xff]  }
  0x8e   :  { %3357 = vmatpush1.bf16.msra.mxu0 %v5465_v15  ;;  %3315 = vmatprep.subr.bf16.mxu1 %v5466_v16  ;;  %v5486_v29 = vld [vmem:[#allocation5 + $0x2e4] ss:$16 sps:$4 sm:$0xff]   ;;  %v5489_v31 = vld [vmem:[#allocation5 + $0x2e0] ss:$16 sps:$4 sm:$0xff]   ;;  %v5547_v15 = vld [vmem:[#allocation5 + $0x28] ss:$16 sps:$4 sm:$0xff]  }
  0x8f   :  { %3358 = vmatprep.subr.bf16.mxu0 %v5468_v17  ;;  %v5490_v32 = vld [vmem:[#allocation5 + $0x104] ss:$16 sps:$4 sm:$0xff]   ;;  %v5494_v34 = vld [vmem:[#allocation5 + $0x100] ss:$16 sps:$4 sm:$0xff]   ;;  %v5555_v17 = vld [vmem:[#allocation5 + $0x4c] ss:$16 sps:$4 sm:$0xff]  }
  0x90   :  { %v5492_v33 = vld [vmem:[#allocation5 + $0x304] ss:$16 sps:$4 sm:$0xff]   ;;  %v5495_v35 = vld [vmem:[#allocation5 + $0x300] ss:$16 sps:$4 sm:$0xff]  }
  0x91   :  { %3316 = vmatpush1.bf16.msra.mxu1 %v5470_v18  ;;  %v5496_v36 = vld [vmem:[#allocation5 + $0x124] ss:$16 sps:$4 sm:$0xff]   ;;  %v5500_v38 = vld [vmem:[#allocation5 + $0x120] ss:$16 sps:$4 sm:$0xff]  }
  0x92   :  { %3359 = vmatpush1.bf16.msra.mxu0 %v5471_v19  ;;  %3317 = vmatprep.subr.bf16.mxu1 %v5472_v20  ;;  %v5498_v37 = vld [vmem:[#allocation5 + $0x324] ss:$16 sps:$4 sm:$0xff]   ;;  %v5501_v39 = vld [vmem:[#allocation5 + $0x320] ss:$16 sps:$4 sm:$0xff]   ;;  %v5553_v19 = vld [vmem:[#allocation5 + $0x48] ss:$16 sps:$4 sm:$0xff]  }
  0x93   :  { %3360 = vmatprep.subr.bf16.mxu0 %v5474_v21  ;;  %v5502_v40 = vld [vmem:[#allocation5 + $0x144] ss:$16 sps:$4 sm:$0xff]   ;;  %v5506_v42 = vld [vmem:[#allocation5 + $0x140] ss:$16 sps:$4 sm:$0xff]   ;;  %v5561_v21 = vld [vmem:[#allocation5 + $0x6c] ss:$16 sps:$4 sm:$0xff]  }
  0x94   :  { %v5504_v41 = vld [vmem:[#allocation5 + $0x344] ss:$16 sps:$4 sm:$0xff]   ;;  %v5507_v43 = vld [vmem:[#allocation5 + $0x340] ss:$16 sps:$4 sm:$0xff]  }
  0x95   :  { %3318 = vmatpush1.bf16.msra.mxu1 %v5476_v22  ;;  %v5508_v44 = vld [vmem:[#allocation5 + $0x164] ss:$16 sps:$4 sm:$0xff]   ;;  %v5512_v46 = vld [vmem:[#allocation5 + $0x160] ss:$16 sps:$4 sm:$0xff]  }
  0x96   :  { %3361 = vmatpush1.bf16.msra.mxu0 %v5477_v23  ;;  %3319 = vmatprep.subr.bf16.mxu1 %v5478_v24  ;;  %v5510_v45 = vld [vmem:[#allocation5 + $0x364] ss:$16 sps:$4 sm:$0xff]   ;;  %v5513_v47 = vld [vmem:[#allocation5 + $0x360] ss:$16 sps:$4 sm:$0xff]   ;;  %v5559_v23 = vld [vmem:[#allocation5 + $0x68] ss:$16 sps:$4 sm:$0xff]  }
  0x97   :  { %3362 = vmatprep.subr.bf16.mxu0 %v5480_v25  ;;  %v117_v48 = vld [vmem:[#allocation2] sm:$0xff]  ;;  %v5567_v25 = vld [vmem:[#allocation5 + $0x8c] ss:$16 sps:$4 sm:$0xff]  }
  0x98   :  { %v125_v49 = vld [vmem:[#allocation2 + $0x40] sm:$0xff] }
  0x99   :  { %3320 = vmatpush1.bf16.msra.mxu1 %v5482_v26  ;;  %v5514_v52 = vld [vmem:[#allocation5 + $0x184] ss:$16 sps:$4 sm:$0xff]   ;;  %v4714_v53 = vcombine.high %v117_v48, %v125_v49  ;;  %v5518_v56 = vld [vmem:[#allocation5 + $0x180] ss:$16 sps:$4 sm:$0xff]   ;;  %v6662_v8 = vcombine.low %v117_v48, %v125_v49  ;;  %v5597_v48 = vld [vmem:[#allocation5 + $0x12c] ss:$16 sps:$4 sm:$0xff]  }
  0x9a   :  { %3363 = vmatpush1.bf16.msra.mxu0 %v5483_v27  ;;  %3321 = vmatprep.subr.bf16.mxu1 %v5484_v28  ;;  %v5516_v54 = vld [vmem:[#allocation5 + $0x384] ss:$16 sps:$4 sm:$0xff]   ;;  %v5519_v57 = vld [vmem:[#allocation5 + $0x380] ss:$16 sps:$4 sm:$0xff]   ;;  %v5565_v27 = vld [vmem:[#allocation5 + $0x88] ss:$16 sps:$4 sm:$0xff]  }
  0x9b   :  { %3364 = vmatprep.subr.bf16.mxu0 %v5486_v29  ;;  %3339 = vmatprep.mubr.bf16.mxu1 %v4714_v53  ;;  %v5520_v58 = vld [vmem:[#allocation5 + $0x1a4] ss:$16 sps:$4 sm:$0xff]   ;;  %v5524_v60 = vld [vmem:[#allocation5 + $0x1a0] ss:$16 sps:$4 sm:$0xff]   ;;  %v5573_v29 = vld [vmem:[#allocation5 + $0xac] ss:$16 sps:$4 sm:$0xff]  }
  0x9c   :  { %v5522_v59 = vld [vmem:[#allocation5 + $0x3a4] ss:$16 sps:$4 sm:$0xff]   ;;  %v5525_v61 = vld [vmem:[#allocation5 + $0x3a0] ss:$16 sps:$4 sm:$0xff]  }
  0x9d   :  { %3322 = vmatpush1.bf16.msra.mxu1 %v5488_v30  ;;  %v5526_v62 = vld [vmem:[#allocation5 + $0x1c4] ss:$16 sps:$4 sm:$0xff]   ;;  %v5530_v0 = vld [vmem:[#allocation5 + $0x1c0] ss:$16 sps:$4 sm:$0xff]  }
  0x9e   :  { %3365 = vmatpush1.bf16.msra.mxu0 %v5489_v31  ;;  %3323 = vmatprep.subr.bf16.mxu1 %v5490_v32  ;;  %v5528_v63 = vld [vmem:[#allocation5 + $0x3c4] ss:$16 sps:$4 sm:$0xff]   ;;  %v5531_v1 = vld [vmem:[#allocation5 + $0x3c0] ss:$16 sps:$4 sm:$0xff]   ;;  %v5571_v31 = vld [vmem:[#allocation5 + $0xa8] ss:$16 sps:$4 sm:$0xff]  }
  0x9f   :  { %3366 = vmatprep.subr.bf16.mxu0 %v5492_v33  ;;  %v5532_v2 = vld [vmem:[#allocation5 + $0x1e4] ss:$16 sps:$4 sm:$0xff]   ;;  %v5536_v4 = vld [vmem:[#allocation5 + $0x1e0] ss:$16 sps:$4 sm:$0xff]   ;;  %v5579_v33 = vld [vmem:[#allocation5 + $0xcc] ss:$16 sps:$4 sm:$0xff]  }
  0xa0   :  { %v5534_v3 = vld [vmem:[#allocation5 + $0x3e4] ss:$16 sps:$4 sm:$0xff]   ;;  %v5537_v5 = vld [vmem:[#allocation5 + $0x3e0] ss:$16 sps:$4 sm:$0xff]  }
  0xa1   :  { %3324 = vmatpush1.bf16.msra.mxu1 %v5494_v34  ;;  %v5540_v6 = vld [vmem:[#allocation5 + $0x404] ss:$16 sps:$4 sm:$0xff]   ;;  %v5538_v10 = vld [vmem:[#allocation5 + $0x400] ss:$16 sps:$4 sm:$0xff]  }
  0xa2   :  { %3367 = vmatpush1.bf16.msra.mxu0 %v5495_v35  ;;  %3325 = vmatprep.subr.bf16.mxu1 %v5496_v36  ;;  %v5546_v12 = vld [vmem:[#allocation5 + $0x424] ss:$16 sps:$4 sm:$0xff]   ;;  %v5544_v14 = vld [vmem:[#allocation5 + $0x420] ss:$16 sps:$4 sm:$0xff]  }
  0xa3   :  { %3368 = vmatprep.subr.bf16.mxu0 %v5498_v37  ;;  %v5552_v16 = vld [vmem:[#allocation5 + $0x444] ss:$16 sps:$4 sm:$0xff]   ;;  %v5550_v18 = vld [vmem:[#allocation5 + $0x440] ss:$16 sps:$4 sm:$0xff]   ;;  %v5577_v37 = vld [vmem:[#allocation5 + $0xc8] ss:$16 sps:$4 sm:$0xff]  }
  0xa4   :  { %v5558_v20 = vld [vmem:[#allocation5 + $0x464] ss:$16 sps:$4 sm:$0xff]   ;;  %v5556_v22 = vld [vmem:[#allocation5 + $0x460] ss:$16 sps:$4 sm:$0xff]  }
  0xa5   :  { %3326 = vmatpush1.bf16.msra.mxu1 %v5500_v38  ;;  %v5564_v24 = vld [vmem:[#allocation5 + $0x484] ss:$16 sps:$4 sm:$0xff]   ;;  %v5562_v26 = vld [vmem:[#allocation5 + $0x480] ss:$16 sps:$4 sm:$0xff]  }
  0xa6   :  { %3369 = vmatpush1.bf16.msra.mxu0 %v5501_v39  ;;  %3327 = vmatprep.subr.bf16.mxu1 %v5502_v40  ;;  %v5570_v28 = vld [vmem:[#allocation5 + $0x4a4] ss:$16 sps:$4 sm:$0xff]   ;;  %v5568_v30 = vld [vmem:[#allocation5 + $0x4a0] ss:$16 sps:$4 sm:$0xff]   ;;  %v5585_v40 = vld [vmem:[#allocation5 + $0xec] ss:$16 sps:$4 sm:$0xff]  }
  0xa7   :  { %3370 = vmatprep.subr.bf16.mxu0 %v5504_v41  ;;  %v5576_v32 = vld [vmem:[#allocation5 + $0x4c4] ss:$16 sps:$4 sm:$0xff]   ;;  %v5574_v36 = vld [vmem:[#allocation5 + $0x4c0] ss:$16 sps:$4 sm:$0xff]  }
  0xa8   :  { %v6668_v34 = vld [vmem:[#allocation2 + $0x10] sm:$0xff] }
  0xa9   :  { %3328 = vmatpush1.bf16.msra.mxu1 %v5506_v42  ;;  %v6670_v35 = vld [vmem:[#allocation2 + $0x50] sm:$0xff]  ;;  %v5583_v42 = vld [vmem:[#allocation5 + $0xe8] ss:$16 sps:$4 sm:$0xff]  }
  0xaa   :  { %3371 = vmatpush1.bf16.msra.mxu0 %v5507_v43  ;;  %3329 = vmatprep.subr.bf16.mxu1 %v5508_v44  ;;  %v6674_v38 = vcombine.high %v6668_v34, %v6670_v35  ;;  %v5582_v39 = vld [vmem:[#allocation5 + $0x4e4] ss:$16 sps:$4 sm:$0xff]   ;;  %v5580_v41 = vld [vmem:[#allocation5 + $0x4e0] ss:$16 sps:$4 sm:$0xff]   ;;  %v5591_v44 = vld [vmem:[#allocation5 + $0x10c] ss:$16 sps:$4 sm:$0xff]  }
  0xab   :  { %3372 = vmatprep.subr.bf16.mxu0 %v5510_v45  ;;  %v5588_v43 = vld [vmem:[#allocation5 + $0x504] ss:$16 sps:$4 sm:$0xff]   ;;  %v5586_v45 = vld [vmem:[#allocation5 + $0x500] ss:$16 sps:$4 sm:$0xff]  }
  0xac   :  { %v5592_v49 = vld [vmem:[#allocation5 + $0x520] ss:$16 sps:$4 sm:$0xff]   ;;  %v5600_v51 = vld [vmem:[#allocation5 + $0x544] ss:$16 sps:$4 sm:$0xff]  }
  0xad   :  { %3330 = vmatpush1.bf16.msra.mxu1 %v5512_v46  ;;  %v5589_v46 = vld [vmem:[#allocation5 + $0x108] ss:$16 sps:$4 sm:$0xff]  }
  0xae   :  { %3373 = vmatpush1.bf16.msra.mxu0 %v5513_v47  ;;  %3331 = vmatprep.subr.bf16.mxu1 %v5514_v52  ;;  %v5594_v47 = vld [vmem:[#allocation5 + $0x524] ss:$16 sps:$4 sm:$0xff]   ;;  %v5603_v52 = vld [vmem:[#allocation5 + $0x14c] ss:$16 sps:$4 sm:$0xff]  }
  0xaf   :  { %3374 = vmatprep.subr.bf16.mxu0 %v5516_v54  ;;  %v5601_v54 = vld [vmem:[#allocation5 + $0x148] ss:$16 sps:$4 sm:$0xff]  }
  0xb1   :  { %3332 = vmatpush1.bf16.msra.mxu1 %v5518_v56  ;;  %v5606_v56 = vld [vmem:[#allocation5 + $0x564] ss:$16 sps:$4 sm:$0xff]  }
  0xb2   :  { %3375 = vmatpush1.bf16.msra.mxu0 %v5519_v57  ;;  %3333 = vmatprep.subr.bf16.mxu1 %v5520_v58  ;;  %v5609_v57 = vld [vmem:[#allocation5 + $0x16c] ss:$16 sps:$4 sm:$0xff]   ;;  %v5604_v58 = vld [vmem:[#allocation5 + $0x560] ss:$16 sps:$4 sm:$0xff]  }
  0xb3   :  { %3376 = vmatprep.subr.bf16.mxu0 %v5522_v59  ;;  %v5607_v59 = vld [vmem:[#allocation5 + $0x168] ss:$16 sps:$4 sm:$0xff]  }
  0xb5   :  { %3334 = vmatpush1.bf16.msra.mxu1 %v5524_v60  ;;  %v5612_v60 = vld [vmem:[#allocation5 + $0x584] ss:$16 sps:$4 sm:$0xff]  }
  0xb6   :  { %3377 = vmatpush1.bf16.msra.mxu0 %v5525_v61  ;;  %3335 = vmatprep.subr.bf16.mxu1 %v5526_v62  ;;  %v5615_v61 = vld [vmem:[#allocation5 + $0x18c] ss:$16 sps:$4 sm:$0xff]   ;;  %v5610_v62 = vld [vmem:[#allocation5 + $0x580] ss:$16 sps:$4 sm:$0xff]  }
  0xb7   :  { %3378 = vmatprep.subr.bf16.mxu0 %v5528_v63  ;;  %v5613_v63 = vld [vmem:[#allocation5 + $0x188] ss:$16 sps:$4 sm:$0xff]  }
  0xb9   :  { %3336 = vmatpush1.bf16.msra.mxu1 %v5530_v0  ;;  %v5618_v0 = vld [vmem:[#allocation5 + $0x5a4] ss:$16 sps:$4 sm:$0xff]  }
  0xba   :  { %3379 = vmatpush1.bf16.msra.mxu0 %v5531_v1  ;;  %3337 = vmatprep.subr.bf16.mxu1 %v5532_v2  ;;  %v5621_v1 = vld [vmem:[#allocation5 + $0x1ac] ss:$16 sps:$4 sm:$0xff]   ;;  %v5616_v2 = vld [vmem:[#allocation5 + $0x5a0] ss:$16 sps:$4 sm:$0xff]  }
  0xbb   :  { %3380 = vmatprep.subr.bf16.mxu0 %v5534_v3  ;;  %v5619_v3 = vld [vmem:[#allocation5 + $0x1a8] ss:$16 sps:$4 sm:$0xff]  }
  0xbd   :  { %3338 = vmatpush1.bf16.msra.mxu1 %v5536_v4  ;;  %v5624_v4 = vld [vmem:[#allocation5 + $0x5c4] ss:$16 sps:$4 sm:$0xff]  }
  0xbe   :  { %3381 = vmatpush1.bf16.msra.mxu0 %v5537_v5  ;;  %3651 = vmatprep.subr.bf16.mxu1 %v5543_v7  ;;  %v5627_v5 = vld [vmem:[#allocation5 + $0x1cc] ss:$16 sps:$4 sm:$0xff]   ;;  %v5625_v7 = vld [vmem:[#allocation5 + $0x1c8] ss:$16 sps:$4 sm:$0xff]  }
  0xbf   :  { %3393 = vmatprep.subr.bf16.mxu0 %v5540_v6  ;;  %v5622_v6 = vld [vmem:[#allocation5 + $0x5c0] ss:$16 sps:$4 sm:$0xff]  }
  0xc0   :  { %3340 = vmatmul.mubr.bf16.vlgmr.msra.gmra.mrb[0].mxu1 %v6662_v8 }
  0xc1   :  { %3383 = vmatmul.mubr.bf16.vlgmr.msra.gmra.mrb[0].mxu0 %v6664_v9  ;;  %3652 = vmatpush1.bf16.msra.mxu1 %v5541_v11  ;;  %v5633_v11 = vld [vmem:[#allocation5 + $0x1ec] ss:$16 sps:$4 sm:$0xff]  }
  0xc2   :  { %3394 = vmatpush1.bf16.msra.mxu0 %v5538_v10  ;;  %3653 = vmatprep.subr.bf16.mxu1 %v5549_v13  ;;  %v5630_v10 = vld [vmem:[#allocation5 + $0x5e4] ss:$16 sps:$4 sm:$0xff]   ;;  %v5631_v13 = vld [vmem:[#allocation5 + $0x1e8] ss:$16 sps:$4 sm:$0xff]  }
  0xc3   :  { %3395 = vmatprep.subr.bf16.mxu0 %v5546_v12  ;;  %3683 = vmatprep.mubr.bf16.mxu1 %v4714_v53  ;;  %v5598_v53 = vld [vmem:[#allocation5 + $0x540] ss:$16 sps:$4 sm:$0xff]  }
  0xc4   :  { %3425 = vmatprep.mubr.bf16.mxu0 %v6674_v38  ;;  %v5628_v12 = vld [vmem:[#allocation5 + $0x5e0] ss:$16 sps:$4 sm:$0xff]  }
  0xc5   :  { %3654 = vmatpush1.bf16.msra.mxu1 %v5547_v15  ;;  %v5639_v15 = vld [vmem:[#allocation5 + $0x20c] ss:$16 sps:$4 sm:$0xff]  }
  0xc6   :  { %3396 = vmatpush1.bf16.msra.mxu0 %v5544_v14  ;;  %3655 = vmatprep.subr.bf16.mxu1 %v5555_v17  ;;  %v5636_v14 = vld [vmem:[#allocation5 + $0x604] ss:$16 sps:$4 sm:$0xff]   ;;  %v5634_v17 = vld [vmem:[#allocation5 + $0x600] ss:$16 sps:$4 sm:$0xff]  }
  0xc7   :  { %3397 = vmatprep.subr.bf16.mxu0 %v5552_v16  ;;  %v6679_v16 = vcombine.low %v6668_v34, %v6670_v35  ;;  %v5663_v34 = vld [vmem:[#allocation5 + $0x28c] ss:$16 sps:$4 sm:$0xff]   ;;  %v5658_v35 = vld [vmem:[#allocation5 + $0x680] ss:$16 sps:$4 sm:$0xff]  }
  0xc9   :  { %3656 = vmatpush1.bf16.msra.mxu1 %v5553_v19  ;;  %v5642_v19 = vld [vmem:[#allocation5 + $0x624] ss:$16 sps:$4 sm:$0xff]  }
  0xca   :  { %3398 = vmatpush1.bf16.msra.mxu0 %v5550_v18  ;;  %3657 = vmatprep.subr.bf16.mxu1 %v5561_v21  ;;  %v5637_v18 = vld [vmem:[#allocation5 + $0x208] ss:$16 sps:$4 sm:$0xff]  }
  0xcb   :  { %3399 = vmatprep.subr.bf16.mxu0 %v5558_v20  ;;  %v5645_v20 = vld [vmem:[#allocation5 + $0x22c] ss:$16 sps:$4 sm:$0xff]  }
  0xcc   :  { %v6681_v21 = vld [vmem:[#allocation2 + $0x18] sm:$0xff] }
  0xcd   :  { %3658 = vmatpush1.bf16.msra.mxu1 %v5559_v23  ;;  %v5640_v23 = vld [vmem:[#allocation5 + $0x620] ss:$16 sps:$4 sm:$0xff]  }
  0xce   :  { %3400 = vmatpush1.bf16.msra.mxu0 %v5556_v22  ;;  %3659 = vmatprep.subr.bf16.mxu1 %v5567_v25  ;;  %v6683_v22 = vld [vmem:[#allocation2 + $0x58] sm:$0xff] }
  0xcf   :  { %3401 = vmatprep.subr.bf16.mxu0 %v5564_v24  ;;  %v5643_v24 = vld [vmem:[#allocation5 + $0x228] ss:$16 sps:$4 sm:$0xff]   ;;  %v6689_v25 = vcombine.high %v6681_v21, %v6683_v22 }
  0xd1   :  { %3660 = vmatpush1.bf16.msra.mxu1 %v5565_v27  ;;  %v5651_v27 = vld [vmem:[#allocation5 + $0x24c] ss:$16 sps:$4 sm:$0xff]  }
  0xd2   :  { %3402 = vmatpush1.bf16.msra.mxu0 %v5562_v26  ;;  %3661 = vmatprep.subr.bf16.mxu1 %v5573_v29  ;;  %v5648_v26 = vld [vmem:[#allocation5 + $0x644] ss:$16 sps:$4 sm:$0xff]   ;;  %v5649_v29 = vld [vmem:[#allocation5 + $0x248] ss:$16 sps:$4 sm:$0xff]  }
  0xd3   :  { %3403 = vmatprep.subr.bf16.mxu0 %v5570_v28  ;;  %v5646_v28 = vld [vmem:[#allocation5 + $0x640] ss:$16 sps:$4 sm:$0xff]  }
  0xd5   :  { %3662 = vmatpush1.bf16.msra.mxu1 %v5571_v31  ;;  %v5652_v31 = vld [vmem:[#allocation5 + $0x660] ss:$16 sps:$4 sm:$0xff]  }
  0xd6   :  { %3404 = vmatpush1.bf16.msra.mxu0 %v5568_v30  ;;  %3663 = vmatprep.subr.bf16.mxu1 %v5579_v33  ;;  %v5657_v30 = vld [vmem:[#allocation5 + $0x26c] ss:$16 sps:$4 sm:$0xff]   ;;  %v5660_v33 = vld [vmem:[#allocation5 + $0x684] ss:$16 sps:$4 sm:$0xff]  }
  0xd7   :  { %3405 = vmatprep.subr.bf16.mxu0 %v5576_v32  ;;  %v5655_v32 = vld [vmem:[#allocation5 + $0x268] ss:$16 sps:$4 sm:$0xff]  }
  0xd9   :  { %3664 = vmatpush1.bf16.msra.mxu1 %v5577_v37  ;;  %v5669_v37 = vld [vmem:[#allocation5 + $0x2ac] ss:$16 sps:$4 sm:$0xff]  }
  0xda   :  { %3406 = vmatpush1.bf16.msra.mxu0 %v5574_v36  ;;  %3665 = vmatprep.subr.bf16.mxu1 %v5585_v40  ;;  %v5661_v36 = vld [vmem:[#allocation5 + $0x288] ss:$16 sps:$4 sm:$0xff]  }
  0xdb   :  { %3407 = vmatprep.subr.bf16.mxu0 %v5582_v39  ;;  %v5664_v39 = vld [vmem:[#allocation5 + $0x6a0] ss:$16 sps:$4 sm:$0xff]   ;;  %v5667_v40 = vld [vmem:[#allocation5 + $0x2a8] ss:$16 sps:$4 sm:$0xff]  }
  0xdd   :  { %3666 = vmatpush1.bf16.msra.mxu1 %v5583_v42  ;;  %v5675_v42 = vld [vmem:[#allocation5 + $0x2cc] ss:$16 sps:$4 sm:$0xff]  }
  0xde   :  { %3408 = vmatpush1.bf16.msra.mxu0 %v5580_v41  ;;  %3667 = vmatprep.subr.bf16.mxu1 %v5591_v44  ;;  %v5672_v41 = vld [vmem:[#allocation5 + $0x6c4] ss:$16 sps:$4 sm:$0xff]   ;;  %v5673_v44 = vld [vmem:[#allocation5 + $0x2c8] ss:$16 sps:$4 sm:$0xff]  }
  0xdf   :  { %3409 = vmatprep.subr.bf16.mxu0 %v5588_v43  ;;  %v5670_v43 = vld [vmem:[#allocation5 + $0x6c0] ss:$16 sps:$4 sm:$0xff]  }
  0xe1   :  { %3668 = vmatpush1.bf16.msra.mxu1 %v5589_v46  ;;  %v5681_v46 = vld [vmem:[#allocation5 + $0x2ec] ss:$16 sps:$4 sm:$0xff]  }
  0xe2   :  { %3410 = vmatpush1.bf16.msra.mxu0 %v5586_v45  ;;  %3669 = vmatprep.subr.bf16.mxu1 %v5597_v48  ;;  %v5678_v45 = vld [vmem:[#allocation5 + $0x6e4] ss:$16 sps:$4 sm:$0xff]   ;;  %v5679_v48 = vld [vmem:[#allocation5 + $0x2e8] ss:$16 sps:$4 sm:$0xff]  }
  0xe3   :  { %3411 = vmatprep.subr.bf16.mxu0 %v5594_v47  ;;  %v5676_v47 = vld [vmem:[#allocation5 + $0x6e0] ss:$16 sps:$4 sm:$0xff]  }
  0xe5   :  { %3670 = vmatpush1.bf16.msra.mxu1 %v5595_v50  ;;  %v5687_v50 = vld [vmem:[#allocation5 + $0x30c] ss:$16 sps:$4 sm:$0xff]  }
  0xe6   :  { %3412 = vmatpush1.bf16.msra.mxu0 %v5592_v49  ;;  %3671 = vmatprep.subr.bf16.mxu1 %v5603_v52  ;;  %v5684_v49 = vld [vmem:[#allocation5 + $0x704] ss:$16 sps:$4 sm:$0xff]   ;;  %v5685_v52 = vld [vmem:[#allocation5 + $0x308] ss:$16 sps:$4 sm:$0xff]  }
  0xe7   :  { %3413 = vmatprep.subr.bf16.mxu0 %v5600_v51  ;;  %v5682_v51 = vld [vmem:[#allocation5 + $0x700] ss:$16 sps:$4 sm:$0xff]  }
  0xe9   :  { %3672 = vmatpush1.bf16.msra.mxu1 %v5601_v54  ;;  %v5693_v54 = vld [vmem:[#allocation5 + $0x32c] ss:$16 sps:$4 sm:$0xff]  }
  0xea   :  { %3414 = vmatpush1.bf16.msra.mxu0 %v5598_v53  ;;  %3673 = vmatprep.subr.bf16.mxu1 %v5609_v57  ;;  %v5690_v53 = vld [vmem:[#allocation5 + $0x724] ss:$16 sps:$4 sm:$0xff]   ;;  %v5691_v57 = vld [vmem:[#allocation5 + $0x328] ss:$16 sps:$4 sm:$0xff]  }
  0xeb   :  { %3415 = vmatprep.subr.bf16.mxu0 %v5606_v56  ;;  %v5688_v56 = vld [vmem:[#allocation5 + $0x720] ss:$16 sps:$4 sm:$0xff]  }
  0xed   :  { %3674 = vmatpush1.bf16.msra.mxu1 %v5607_v59  ;;  %v5699_v59 = vld [vmem:[#allocation5 + $0x34c] ss:$16 sps:$4 sm:$0xff]  }
  0xee   :  { %3416 = vmatpush1.bf16.msra.mxu0 %v5604_v58  ;;  %3675 = vmatprep.subr.bf16.mxu1 %v5615_v61  ;;  %v5696_v58 = vld [vmem:[#allocation5 + $0x744] ss:$16 sps:$4 sm:$0xff]   ;;  %v5697_v61 = vld [vmem:[#allocation5 + $0x348] ss:$16 sps:$4 sm:$0xff]  }
  0xef   :  { %3417 = vmatprep.subr.bf16.mxu0 %v5612_v60  ;;  %v5694_v60 = vld [vmem:[#allocation5 + $0x740] ss:$16 sps:$4 sm:$0xff]  }
  0xf1   :  { %3676 = vmatpush1.bf16.msra.mxu1 %v5613_v63  ;;  %v5705_v63 = vld [vmem:[#allocation5 + $0x36c] ss:$16 sps:$4 sm:$0xff]  }
  0xf2   :  { %3418 = vmatpush1.bf16.msra.mxu0 %v5610_v62  ;;  %3677 = vmatprep.subr.bf16.mxu1 %v5621_v1  ;;  %v5702_v62 = vld [vmem:[#allocation5 + $0x764] ss:$16 sps:$4 sm:$0xff]   ;;  %v5703_v1 = vld [vmem:[#allocation5 + $0x368] ss:$16 sps:$4 sm:$0xff]  }
  0xf3   :  { %3419 = vmatprep.subr.bf16.mxu0 %v5618_v0  ;;  %v5700_v0 = vld [vmem:[#allocation5 + $0x760] ss:$16 sps:$4 sm:$0xff]  }
  0xf5   :  { %3678 = vmatpush1.bf16.msra.mxu1 %v5619_v3  ;;  %v5711_v3 = vld [vmem:[#allocation5 + $0x38c] ss:$16 sps:$4 sm:$0xff]  }
  0xf6   :  { %3420 = vmatpush1.bf16.msra.mxu0 %v5616_v2  ;;  %3679 = vmatprep.subr.bf16.mxu1 %v5627_v5  ;;  %v5708_v2 = vld [vmem:[#allocation5 + $0x784] ss:$16 sps:$4 sm:$0xff]   ;;  %v5709_v5 = vld [vmem:[#allocation5 + $0x388] ss:$16 sps:$4 sm:$0xff]  }
  0xf7   :  { %3421 = vmatprep.subr.bf16.mxu0 %v5624_v4  ;;  %v5706_v4 = vld [vmem:[#allocation5 + $0x780] ss:$16 sps:$4 sm:$0xff]  }
  0xf9   :  { %3680 = vmatpush1.bf16.msra.mxu1 %v5625_v7  ;;  %v5717_v7 = vld [vmem:[#allocation5 + $0x3ac] ss:$16 sps:$4 sm:$0xff]  }
  0xfa   :  { %3422 = vmatpush1.bf16.msra.mxu0 %v5622_v6  ;;  %3681 = vmatprep.subr.bf16.mxu1 %v5633_v11  ;;  %v5714_v6 = vld [vmem:[#allocation5 + $0x7a4] ss:$16 sps:$4 sm:$0xff]   ;;  %v5715_v11 = vld [vmem:[#allocation5 + $0x3a8] ss:$16 sps:$4 sm:$0xff]  }
  0xfb   :  { %3423 = vmatprep.subr.bf16.mxu0 %v5630_v10  ;;  %v5712_v10 = vld [vmem:[#allocation5 + $0x7a0] ss:$16 sps:$4 sm:$0xff]  }
  0xfd   :  { %3682 = vmatpush1.bf16.msra.mxu1 %v5631_v13  ;;  %v5723_v13 = vld [vmem:[#allocation5 + $0x3cc] ss:$16 sps:$4 sm:$0xff]  }
  0xfe   :  { %3424 = vmatpush1.bf16.msra.mxu0 %v5628_v12  ;;  %3694 = vmatprep.subr.bf16.mxu1 %v5639_v15  ;;  %v5720_v12 = vld [vmem:[#allocation5 + $0x7c4] ss:$16 sps:$4 sm:$0xff]   ;;  %v5721_v15 = vld [vmem:[#allocation5 + $0x3c8] ss:$16 sps:$4 sm:$0xff]  }
  0xff   :  { %3436 = vmatprep.subr.bf16.mxu0 %v5636_v14  ;;  %v5718_v14 = vld [vmem:[#allocation5 + $0x7c0] ss:$16 sps:$4 sm:$0xff]  }
 0x100   :  { %3684 = vmatmul.mubr.bf16.vlgmr.msra.gmra.mrb[4].mxu1 %v6662_v8  ;;  %v5654_v8 = vld [vmem:[#allocation5 + $0x664] ss:$16 sps:$4 sm:$0xff]  }
 0x101   :  { %3426 = vmatmul.mubr.bf16.vlgmr.msra.gmra.mrb[0].mxu0 %v6679_v16  ;;  %3695 = vmatpush1.bf16.msra.mxu1 %v5637_v18  ;;  %v5729_v18 = vld [vmem:[#allocation5 + $0x3ec] ss:$16 sps:$4 sm:$0xff]  }
 0x102   :  { %3437 = vmatpush1.bf16.msra.mxu0 %v5634_v17  ;;  %3696 = vmatprep.subr.bf16.mxu1 %v5645_v20  ;;  %v5726_v17 = vld [vmem:[#allocation5 + $0x7e4] ss:$16 sps:$4 sm:$0xff]   ;;  %v5727_v20 = vld [vmem:[#allocation5 + $0x3e8] ss:$16 sps:$4 sm:$0xff]  }
 0x103   :  { %3438 = vmatprep.subr.bf16.mxu0 %v5642_v19  ;;  %3468 = vmatprep.mubr.bf16.mxu0 %v6689_v25  ;;  %v5724_v19 = vld [vmem:[#allocation5 + $0x7e0] ss:$16 sps:$4 sm:$0xff]  }
 0x104   :  { %3726 = vmatprep.mubr.bf16.mxu1 %v6659_v55  ;;  %v5666_v55 = vld [vmem:[#allocation5 + $0x6a4] ss:$16 sps:$4 sm:$0xff]  }
 0x105   :  { %3697 = vmatpush1.bf16.msra.mxu1 %v5643_v24  ;;  %v5735_v24 = vld [vmem:[#allocation5 + $0x40c] ss:$16 sps:$4 sm:$0xff]  }
 0x106   :  { %3439 = vmatpush1.bf16.msra.mxu0 %v5640_v23  ;;  %3698 = vmatprep.subr.bf16.mxu1 %v5651_v27  ;;  %v5732_v23 = vld [vmem:[#allocation5 + $0x804] ss:$16 sps:$4 sm:$0xff]   ;;  %v6695_v27 = vcombine.low %v6681_v21, %v6683_v22  ;;  %v5736_v21 = vld [vmem:[#allocation5 + $0x820] ss:$16 sps:$4 sm:$0xff]   ;;  %v5739_v22 = vld [vmem:[#allocation5 + $0x428] ss:$16 sps:$4 sm:$0xff]  }
 0x107   :  { %3440 = vmatprep.subr.bf16.mxu0 %v5648_v26  ;;  %v5730_v26 = vld [vmem:[#allocation5 + $0x800] ss:$16 sps:$4 sm:$0xff]  }
 0x109   :  { %3699 = vmatpush1.bf16.msra.mxu1 %v5649_v29  ;;  %v6699_v29 = vld [vmem:[#allocation2 + $0x60] sm:$0xff] }
 0x10a   :  { %3441 = vmatpush1.bf16.msra.mxu0 %v5646_v28  ;;  %3700 = vmatprep.subr.bf16.mxu1 %v5657_v30  ;;  %v6697_v28 = vld [vmem:[#allocation2 + $0x20] sm:$0xff] }
 0x10b   :  { %3442 = vmatprep.subr.bf16.mxu0 %v5654_v8  ;;  %v5733_v8 = vld [vmem:[#allocation5 + $0x408] ss:$16 sps:$4 sm:$0xff]   ;;  %v5738_v30 = vld [vmem:[#allocation5 + $0x824] ss:$16 sps:$4 sm:$0xff]  }
 0x10d   :  { %3701 = vmatpush1.bf16.msra.mxu1 %v5655_v32  ;;  %v6703_v32 = vcombine.high %v6697_v28, %v6699_v29 }
 0x10e   :  { %3443 = vmatpush1.bf16.msra.mxu0 %v5652_v31  ;;  %3702 = vmatprep.subr.bf16.mxu1 %v5663_v34  ;;  %v5741_v31 = vld [vmem:[#allocation5 + $0x42c] ss:$16 sps:$4 sm:$0xff]  }
 0x10f   :  { %3444 = vmatprep.subr.bf16.mxu0 %v5660_v33  ;;  %v5744_v33 = vld [vmem:[#allocation5 + $0x844] ss:$16 sps:$4 sm:$0xff]   ;;  %v5747_v34 = vld [vmem:[#allocation5 + $0x44c] ss:$16 sps:$4 sm:$0xff]  }
 0x111   :  { %3703 = vmatpush1.bf16.msra.mxu1 %v5661_v36  ;;  %v5745_v36 = vld [vmem:[#allocation5 + $0x448] ss:$16 sps:$4 sm:$0xff]  }
 0x112   :  { %3445 = vmatpush1.bf16.msra.mxu0 %v5658_v35  ;;  %3704 = vmatprep.subr.bf16.mxu1 %v5669_v37  ;;  %v5742_v35 = vld [vmem:[#allocation5 + $0x840] ss:$16 sps:$4 sm:$0xff]  }
 0x113   :  { %3446 = vmatprep.subr.bf16.mxu0 %v5666_v55  ;;  %v5750_v55 = vld [vmem:[#allocation5 + $0x864] ss:$16 sps:$4 sm:$0xff]   ;;  %v5748_v37 = vld [vmem:[#allocation5 + $0x860] ss:$16 sps:$4 sm:$0xff]  }
 0x115   :  { %3705 = vmatpush1.bf16.msra.mxu1 %v5667_v40  ;;  %v5756_v40 = vld [vmem:[#allocation5 + $0x884] ss:$16 sps:$4 sm:$0xff]  }
 0x116   :  { %3447 = vmatpush1.bf16.msra.mxu0 %v5664_v39  ;;  %3706 = vmatprep.subr.bf16.mxu1 %v5675_v42  ;;  %v5751_v39 = vld [vmem:[#allocation5 + $0x468] ss:$16 sps:$4 sm:$0xff]   ;;  %v5754_v42 = vld [vmem:[#allocation5 + $0x880] ss:$16 sps:$4 sm:$0xff]  }
 0x117   :  { %3448 = vmatprep.subr.bf16.mxu0 %v5672_v41  ;;  %v5759_v41 = vld [vmem:[#allocation5 + $0x48c] ss:$16 sps:$4 sm:$0xff]  }
 0x119   :  { %3707 = vmatpush1.bf16.msra.mxu1 %v5673_v44  ;;  %v5765_v44 = vld [vmem:[#allocation5 + $0x4ac] ss:$16 sps:$4 sm:$0xff]  }
 0x11a   :  { %3449 = vmatpush1.bf16.msra.mxu0 %v5670_v43  ;;  %3708 = vmatprep.subr.bf16.mxu1 %v5681_v46  ;;  %v5762_v43 = vld [vmem:[#allocation5 + $0x8a4] ss:$16 sps:$4 sm:$0xff]   ;;  %v5763_v46 = vld [vmem:[#allocation5 + $0x4a8] ss:$16 sps:$4 sm:$0xff]  }
 0x11b   :  { %3450 = vmatprep.subr.bf16.mxu0 %v5678_v45  ;;  %v5760_v45 = vld [vmem:[#allocation5 + $0x8a0] ss:$16 sps:$4 sm:$0xff]  }
 0x11d   :  { %3709 = vmatpush1.bf16.msra.mxu1 %v5679_v48  ;;  %v5771_v48 = vld [vmem:[#allocation5 + $0x4cc] ss:$16 sps:$4 sm:$0xff]  }
 0x11e   :  { %3451 = vmatpush1.bf16.msra.mxu0 %v5676_v47  ;;  %3710 = vmatprep.subr.bf16.mxu1 %v5687_v50  ;;  %v5768_v47 = vld [vmem:[#allocation5 + $0x8c4] ss:$16 sps:$4 sm:$0xff]   ;;  %v5769_v50 = vld [vmem:[#allocation5 + $0x4c8] ss:$16 sps:$4 sm:$0xff]  }
 0x11f   :  { %3452 = vmatprep.subr.bf16.mxu0 %v5684_v49  ;;  %v5766_v49 = vld [vmem:[#allocation5 + $0x8c0] ss:$16 sps:$4 sm:$0xff]  }
 0x121   :  { %3711 = vmatpush1.bf16.msra.mxu1 %v5685_v52  ;;  %v5777_v52 = vld [vmem:[#allocation5 + $0x4ec] ss:$16 sps:$4 sm:$0xff]  }
 0x122   :  { %3453 = vmatpush1.bf16.msra.mxu0 %v5682_v51  ;;  %3712 = vmatprep.subr.bf16.mxu1 %v5693_v54  ;;  %v5774_v51 = vld [vmem:[#allocation5 + $0x8e4] ss:$16 sps:$4 sm:$0xff]   ;;  %v5775_v54 = vld [vmem:[#allocation5 + $0x4e8] ss:$16 sps:$4 sm:$0xff]  }
 0x123   :  { %3454 = vmatprep.subr.bf16.mxu0 %v5690_v53  ;;  %v5772_v53 = vld [vmem:[#allocation5 + $0x8e0] ss:$16 sps:$4 sm:$0xff]  }
 0x125   :  { %3713 = vmatpush1.bf16.msra.mxu1 %v5691_v57  ;;  %v5783_v57 = vld [vmem:[#allocation5 + $0x50c] ss:$16 sps:$4 sm:$0xff]  }
 0x126   :  { %3455 = vmatpush1.bf16.msra.mxu0 %v5688_v56  ;;  %3714 = vmatprep.subr.bf16.mxu1 %v5699_v59  ;;  %v5780_v56 = vld [vmem:[#allocation5 + $0x904] ss:$16 sps:$4 sm:$0xff]   ;;  %v5781_v59 = vld [vmem:[#allocation5 + $0x508] ss:$16 sps:$4 sm:$0xff]  }
 0x127   :  { %3456 = vmatprep.subr.bf16.mxu0 %v5696_v58  ;;  %v5778_v58 = vld [vmem:[#allocation5 + $0x900] ss:$16 sps:$4 sm:$0xff]  }
 0x129   :  { %3715 = vmatpush1.bf16.msra.mxu1 %v5697_v61  ;;  %v5789_v61 = vld [vmem:[#allocation5 + $0x52c] ss:$16 sps:$4 sm:$0xff]  }
 0x12a   :  { %3457 = vmatpush1.bf16.msra.mxu0 %v5694_v60  ;;  %3716 = vmatprep.subr.bf16.mxu1 %v5705_v63  ;;  %v5786_v60 = vld [vmem:[#allocation5 + $0x924] ss:$16 sps:$4 sm:$0xff]   ;;  %v5787_v63 = vld [vmem:[#allocation5 + $0x528] ss:$16 sps:$4 sm:$0xff]  }
 0x12b   :  { %3458 = vmatprep.subr.bf16.mxu0 %v5702_v62  ;;  %v5784_v62 = vld [vmem:[#allocation5 + $0x920] ss:$16 sps:$4 sm:$0xff]  }
 0x12d   :  { %3717 = vmatpush1.bf16.msra.mxu1 %v5703_v1  ;;  %v5795_v1 = vld [vmem:[#allocation5 + $0x54c] ss:$16 sps:$4 sm:$0xff]  }
 0x12e   :  { %3459 = vmatpush1.bf16.msra.mxu0 %v5700_v0  ;;  %3718 = vmatprep.subr.bf16.mxu1 %v5711_v3  ;;  %v5792_v0 = vld [vmem:[#allocation5 + $0x944] ss:$16 sps:$4 sm:$0xff]   ;;  %v5793_v3 = vld [vmem:[#allocation5 + $0x548] ss:$16 sps:$4 sm:$0xff]  }
 0x12f   :  { %3460 = vmatprep.subr.bf16.mxu0 %v5708_v2  ;;  %v5790_v2 = vld [vmem:[#allocation5 + $0x940] ss:$16 sps:$4 sm:$0xff]  }
 0x131   :  { %3719 = vmatpush1.bf16.msra.mxu1 %v5709_v5  ;;  %v5801_v5 = vld [vmem:[#allocation5 + $0x56c] ss:$16 sps:$4 sm:$0xff]  }
 0x132   :  { %3461 = vmatpush1.bf16.msra.mxu0 %v5706_v4  ;;  %3720 = vmatprep.subr.bf16.mxu1 %v5717_v7  ;;  %v5798_v4 = vld [vmem:[#allocation5 + $0x964] ss:$16 sps:$4 sm:$0xff]   ;;  %v5799_v7 = vld [vmem:[#allocation5 + $0x568] ss:$16 sps:$4 sm:$0xff]  }
 0x133   :  { %3462 = vmatprep.subr.bf16.mxu0 %v5714_v6  ;;  %v5796_v6 = vld [vmem:[#allocation5 + $0x960] ss:$16 sps:$4 sm:$0xff]  }
 0x135   :  { %3721 = vmatpush1.bf16.msra.mxu1 %v5715_v11  ;;  %v5807_v11 = vld [vmem:[#allocation5 + $0x58c] ss:$16 sps:$4 sm:$0xff]  }
 0x136   :  { %3463 = vmatpush1.bf16.msra.mxu0 %v5712_v10  ;;  %3722 = vmatprep.subr.bf16.mxu1 %v5723_v13  ;;  %v5804_v10 = vld [vmem:[#allocation5 + $0x984] ss:$16 sps:$4 sm:$0xff]   ;;  %v5805_v13 = vld [vmem:[#allocation5 + $0x588] ss:$16 sps:$4 sm:$0xff]  }
 0x137   :  { %3464 = vmatprep.subr.bf16.mxu0 %v5720_v12  ;;  %v5802_v12 = vld [vmem:[#allocation5 + $0x980] ss:$16 sps:$4 sm:$0xff]  }
 0x139   :  { %3723 = vmatpush1.bf16.msra.mxu1 %v5721_v15  ;;  %v5813_v15 = vld [vmem:[#allocation5 + $0x5ac] ss:$16 sps:$4 sm:$0xff]  }
 0x13a   :  { %3465 = vmatpush1.bf16.msra.mxu0 %v5718_v14  ;;  %3724 = vmatprep.subr.bf16.mxu1 %v5729_v18  ;;  %v5810_v14 = vld [vmem:[#allocation5 + $0x9a4] ss:$16 sps:$4 sm:$0xff]   ;;  %v5811_v18 = vld [vmem:[#allocation5 + $0x5a8] ss:$16 sps:$4 sm:$0xff]  }
 0x13b   :  { %3466 = vmatprep.subr.bf16.mxu0 %v5726_v17  ;;  %v5808_v17 = vld [vmem:[#allocation5 + $0x9a0] ss:$16 sps:$4 sm:$0xff]  }
 0x13d   :  { %3725 = vmatpush1.bf16.msra.mxu1 %v5727_v20  ;;  %v5819_v20 = vld [vmem:[#allocation5 + $0x5cc] ss:$16 sps:$4 sm:$0xff]  }
 0x13e   :  { %3467 = vmatpush1.bf16.msra.mxu0 %v5724_v19  ;;  %3737 = vmatprep.subr.bf16.mxu1 %v5735_v24  ;;  %v5816_v19 = vld [vmem:[#allocation5 + $0x9c4] ss:$16 sps:$4 sm:$0xff]   ;;  %v5817_v24 = vld [vmem:[#allocation5 + $0x5c8] ss:$16 sps:$4 sm:$0xff]  }
 0x13f   :  { %3479 = vmatprep.subr.bf16.mxu0 %v5732_v23  ;;  %v5814_v23 = vld [vmem:[#allocation5 + $0x9c0] ss:$16 sps:$4 sm:$0xff]  }
 0x140   :  { %3727 = vmatmul.mubr.bf16.vlgmr.msra.gmra.mrb[4].mxu1 %v6664_v9  ;;  %v5753_v9 = vld [vmem:[#allocation5 + $0x46c] ss:$16 sps:$4 sm:$0xff]  }
 0x141   :  { %3469 = vmatmul.mubr.bf16.vlgmr.msra.gmra.mrb[0].mxu0 %v6695_v27  ;;  %3738 = vmatpush1.bf16.msra.mxu1 %v5733_v8  ;;  %v5825_v8 = vld [vmem:[#allocation5 + $0x5ec] ss:$16 sps:$4 sm:$0xff]  }
 0x142   :  { %3480 = vmatpush1.bf16.msra.mxu0 %v5730_v26  ;;  %3739 = vmatprep.subr.bf16.mxu1 %v5741_v31  ;;  %v5822_v26 = vld [vmem:[#allocation5 + $0x9e4] ss:$16 sps:$4 sm:$0xff]   ;;  %v5823_v31 = vld [vmem:[#allocation5 + $0x5e8] ss:$16 sps:$4 sm:$0xff]  }
 0x143   :  { %3481 = vmatprep.subr.bf16.mxu0 %v5738_v30  ;;  %3511 = vmatprep.mubr.bf16.mxu0 %v6703_v32  ;;  %v5820_v30 = vld [vmem:[#allocation5 + $0x9e0] ss:$16 sps:$4 sm:$0xff]  }
 0x144   :  { %3769 = vmatprep.mubr.bf16.mxu1 %v6674_v38  ;;  %v5757_v38 = vld [vmem:[#allocation5 + $0x488] ss:$16 sps:$4 sm:$0xff]  }
 0x145   :  { %3740 = vmatpush1.bf16.msra.mxu1 %v5739_v22  ;;  %v5831_v22 = vld [vmem:[#allocation5 + $0x60c] ss:$16 sps:$4 sm:$0xff]  }
 0x146   :  { %3482 = vmatpush1.bf16.msra.mxu0 %v5736_v21  ;;  %3741 = vmatprep.subr.bf16.mxu1 %v5747_v34  ;;  %v5828_v21 = vld [vmem:[#allocation5 + $0xa04] ss:$16 sps:$4 sm:$0xff]   ;;  %v6709_v34 = vld [vmem:[#allocation2 + $0x28] sm:$0xff] }
 0x147   :  { %3483 = vmatprep.subr.bf16.mxu0 %v5744_v33  ;;  %v5826_v33 = vld [vmem:[#allocation5 + $0xa00] ss:$16 sps:$4 sm:$0xff]  }
 0x149   :  { %3742 = vmatpush1.bf16.msra.mxu1 %v5745_v36  ;;  %v6715_v36 = vld [vmem:[#allocation2 + $0x68] sm:$0xff] }
 0x14a   :  { %3484 = vmatpush1.bf16.msra.mxu0 %v5742_v35  ;;  %3743 = vmatprep.subr.bf16.mxu1 %v5753_v9  ;;  %v6713_v35 = vcombine.low %v6697_v28, %v6699_v29  ;;  %v5834_v9 = vld [vmem:[#allocation5 + $0xa24] ss:$16 sps:$4 sm:$0xff]   ;;  %v5832_v28 = vld [vmem:[#allocation5 + $0xa20] ss:$16 sps:$4 sm:$0xff]   ;;  %v5835_v29 = vld [vmem:[#allocation5 + $0x628] ss:$16 sps:$4 sm:$0xff]  }
 0x14b   :  { %3485 = vmatprep.subr.bf16.mxu0 %v5750_v55  ;;  %v5829_v55 = vld [vmem:[#allocation5 + $0x608] ss:$16 sps:$4 sm:$0xff]  }
 0x14d   :  { %3744 = vmatpush1.bf16.msra.mxu1 %v5751_v39  ;;  %v6719_v39 = vcombine.high %v6709_v34, %v6715_v36 }
 0x14e   :  { %3486 = vmatpush1.bf16.msra.mxu0 %v5748_v37  ;;  %3745 = vmatprep.subr.bf16.mxu1 %v5759_v41  ;;  %v5837_v37 = vld [vmem:[#allocation5 + $0x62c] ss:$16 sps:$4 sm:$0xff]  }
 0x14f   :  { %3487 = vmatprep.subr.bf16.mxu0 %v5756_v40  ;;  %v5840_v40 = vld [vmem:[#allocation5 + $0xa44] ss:$16 sps:$4 sm:$0xff]   ;;  %v5843_v41 = vld [vmem:[#allocation5 + $0x64c] ss:$16 sps:$4 sm:$0xff]  }
 0x151   :  { %3746 = vmatpush1.bf16.msra.mxu1 %v5757_v38  ;;  %v5841_v38 = vld [vmem:[#allocation5 + $0x648] ss:$16 sps:$4 sm:$0xff]  }
 0x152   :  { %3488 = vmatpush1.bf16.msra.mxu0 %v5754_v42  ;;  %3747 = vmatprep.subr.bf16.mxu1 %v5765_v44  ;;  %v5838_v42 = vld [vmem:[#allocation5 + $0xa40] ss:$16 sps:$4 sm:$0xff]  }
 0x153   :  { %3489 = vmatprep.subr.bf16.mxu0 %v5762_v43  ;;  %v5846_v43 = vld [vmem:[#allocation5 + $0xa64] ss:$16 sps:$4 sm:$0xff]   ;;  %v5844_v44 = vld [vmem:[#allocation5 + $0xa60] ss:$16 sps:$4 sm:$0xff]  }
 0x155   :  { %3748 = vmatpush1.bf16.msra.mxu1 %v5763_v46  ;;  %v5852_v46 = vld [vmem:[#allocation5 + $0xa84] ss:$16 sps:$4 sm:$0xff]  }
 0x156   :  { %3490 = vmatpush1.bf16.msra.mxu0 %v5760_v45  ;;  %3749 = vmatprep.subr.bf16.mxu1 %v5771_v48  ;;  %v5847_v45 = vld [vmem:[#allocation5 + $0x668] ss:$16 sps:$4 sm:$0xff]   ;;  %v5850_v48 = vld [vmem:[#allocation5 + $0xa80] ss:$16 sps:$4 sm:$0xff]  }
 0x157   :  { %3491 = vmatprep.subr.bf16.mxu0 %v5768_v47  ;;  %v5855_v47 = vld [vmem:[#allocation5 + $0x68c] ss:$16 sps:$4 sm:$0xff]  }
 0x159   :  { %3750 = vmatpush1.bf16.msra.mxu1 %v5769_v50  ;;  %v5861_v50 = vld [vmem:[#allocation5 + $0x6ac] ss:$16 sps:$4 sm:$0xff]  }
 0x15a   :  { %3492 = vmatpush1.bf16.msra.mxu0 %v5766_v49  ;;  %3751 = vmatprep.subr.bf16.mxu1 %v5777_v52  ;;  %v5858_v49 = vld [vmem:[#allocation5 + $0xaa4] ss:$16 sps:$4 sm:$0xff]   ;;  %v5859_v52 = vld [vmem:[#allocation5 + $0x6a8] ss:$16 sps:$4 sm:$0xff]  }
 0x15b   :  { %3493 = vmatprep.subr.bf16.mxu0 %v5774_v51  ;;  %v5856_v51 = vld [vmem:[#allocation5 + $0xaa0] ss:$16 sps:$4 sm:$0xff]  }
 0x15d   :  { %3752 = vmatpush1.bf16.msra.mxu1 %v5775_v54  ;;  %v5867_v54 = vld [vmem:[#allocation5 + $0x6cc] ss:$16 sps:$4 sm:$0xff]  }
 0x15e   :  { %3494 = vmatpush1.bf16.msra.mxu0 %v5772_v53  ;;  %3753 = vmatprep.subr.bf16.mxu1 %v5783_v57  ;;  %v5864_v53 = vld [vmem:[#allocation5 + $0xac4] ss:$16 sps:$4 sm:$0xff]  }
 0x15f   :  { %3495 = vmatprep.subr.bf16.mxu0 %v5780_v56 }
 0x161   :  { %3754 = vmatpush1.bf16.msra.mxu1 %v5781_v59  ;;  %v5862_v59 = vld [vmem:[#allocation5 + $0xac0] ss:$16 sps:$4 sm:$0xff]  }
 0x162   :  { %3496 = vmatpush1.bf16.msra.mxu0 %v5778_v58  ;;  %3755 = vmatprep.subr.bf16.mxu1 %v5789_v61 }
 0x163   :  { %3497 = vmatprep.subr.bf16.mxu0 %v5786_v60  ;;  %v5865_v60 = vld [vmem:[#allocation5 + $0x6c8] ss:$16 sps:$4 sm:$0xff]  }
 0x165   :  { %3756 = vmatpush1.bf16.msra.mxu1 %v5787_v63  ;;  %v5873_v63 = vld [vmem:[#allocation5 + $0x6ec] ss:$16 sps:$4 sm:$0xff]  }
 0x166   :  { %3498 = vmatpush1.bf16.msra.mxu0 %v5784_v62  ;;  %3757 = vmatprep.subr.bf16.mxu1 %v5795_v1  ;;  %v5870_v62 = vld [vmem:[#allocation5 + $0xae4] ss:$16 sps:$4 sm:$0xff]   ;;  %v5871_v1 = vld [vmem:[#allocation5 + $0x6e8] ss:$16 sps:$4 sm:$0xff]  }
 0x167   :  { %3499 = vmatprep.subr.bf16.mxu0 %v5792_v0  ;;  %v5868_v0 = vld [vmem:[#allocation5 + $0xae0] ss:$16 sps:$4 sm:$0xff]  }
 0x169   :  { %3758 = vmatpush1.bf16.msra.mxu1 %v5793_v3  ;;  %v5879_v3 = vld [vmem:[#allocation5 + $0x70c] ss:$16 sps:$4 sm:$0xff]  }
 0x16a   :  { %3500 = vmatpush1.bf16.msra.mxu0 %v5790_v2  ;;  %3759 = vmatprep.subr.bf16.mxu1 %v5801_v5  ;;  %v5876_v2 = vld [vmem:[#allocation5 + $0xb04] ss:$16 sps:$4 sm:$0xff]   ;;  %v5877_v5 = vld [vmem:[#allocation5 + $0x708] ss:$16 sps:$4 sm:$0xff]  }
 0x16b   :  { %3501 = vmatprep.subr.bf16.mxu0 %v5798_v4  ;;  %v5874_v4 = vld [vmem:[#allocation5 + $0xb00] ss:$16 sps:$4 sm:$0xff]  }
 0x16d   :  { %3760 = vmatpush1.bf16.msra.mxu1 %v5799_v7  ;;  %v5885_v7 = vld [vmem:[#allocation5 + $0x72c] ss:$16 sps:$4 sm:$0xff]  }
 0x16e   :  { %3502 = vmatpush1.bf16.msra.mxu0 %v5796_v6  ;;  %3761 = vmatprep.subr.bf16.mxu1 %v5807_v11  ;;  %v5882_v6 = vld [vmem:[#allocation5 + $0xb24] ss:$16 sps:$4 sm:$0xff]   ;;  %v5883_v11 = vld [vmem:[#allocation5 + $0x728] ss:$16 sps:$4 sm:$0xff]  }
 0x16f   :  { %3503 = vmatprep.subr.bf16.mxu0 %v5804_v10  ;;  %v5880_v10 = vld [vmem:[#allocation5 + $0xb20] ss:$16 sps:$4 sm:$0xff]  }
 0x171   :  { %3762 = vmatpush1.bf16.msra.mxu1 %v5805_v13  ;;  %v5891_v13 = vld [vmem:[#allocation5 + $0x74c] ss:$16 sps:$4 sm:$0xff]  }
 0x172   :  { %3504 = vmatpush1.bf16.msra.mxu0 %v5802_v12  ;;  %3763 = vmatprep.subr.bf16.mxu1 %v5813_v15  ;;  %v5888_v12 = vld [vmem:[#allocation5 + $0xb44] ss:$16 sps:$4 sm:$0xff]   ;;  %v5889_v15 = vld [vmem:[#allocation5 + $0x748] ss:$16 sps:$4 sm:$0xff]  }
 0x173   :  { %3505 = vmatprep.subr.bf16.mxu0 %v5810_v14  ;;  %v5886_v14 = vld [vmem:[#allocation5 + $0xb40] ss:$16 sps:$4 sm:$0xff]  }
 0x175   :  { %3764 = vmatpush1.bf16.msra.mxu1 %v5811_v18  ;;  %v5897_v18 = vld [vmem:[#allocation5 + $0x76c] ss:$16 sps:$4 sm:$0xff]  }
 0x176   :  { %3506 = vmatpush1.bf16.msra.mxu0 %v5808_v17  ;;  %3765 = vmatprep.subr.bf16.mxu1 %v5819_v20  ;;  %v5894_v17 = vld [vmem:[#allocation5 + $0xb64] ss:$16 sps:$4 sm:$0xff]   ;;  %v5895_v20 = vld [vmem:[#allocation5 + $0x768] ss:$16 sps:$4 sm:$0xff]  }
 0x177   :  { %3507 = vmatprep.subr.bf16.mxu0 %v5816_v19  ;;  %v5892_v19 = vld [vmem:[#allocation5 + $0xb60] ss:$16 sps:$4 sm:$0xff]  }
 0x179   :  { %3766 = vmatpush1.bf16.msra.mxu1 %v5817_v24  ;;  %v5903_v24 = vld [vmem:[#allocation5 + $0x78c] ss:$16 sps:$4 sm:$0xff]  }
 0x17a   :  { %3508 = vmatpush1.bf16.msra.mxu0 %v5814_v23  ;;  %3767 = vmatprep.subr.bf16.mxu1 %v5825_v8  ;;  %v5900_v23 = vld [vmem:[#allocation5 + $0xb84] ss:$16 sps:$4 sm:$0xff]   ;;  %v5901_v8 = vld [vmem:[#allocation5 + $0x788] ss:$16 sps:$4 sm:$0xff]  }
 0x17b   :  { %3509 = vmatprep.subr.bf16.mxu0 %v5822_v26  ;;  %v5898_v26 = vld [vmem:[#allocation5 + $0xb80] ss:$16 sps:$4 sm:$0xff]  }
 0x17d   :  { %3768 = vmatpush1.bf16.msra.mxu1 %v5823_v31  ;;  %v5909_v31 = vld [vmem:[#allocation5 + $0x7ac] ss:$16 sps:$4 sm:$0xff]  }
 0x17e   :  { %3510 = vmatpush1.bf16.msra.mxu0 %v5820_v30  ;;  %3780 = vmatprep.subr.bf16.mxu1 %v5831_v22  ;;  %v5906_v30 = vld [vmem:[#allocation5 + $0xba4] ss:$16 sps:$4 sm:$0xff]   ;;  %v5907_v22 = vld [vmem:[#allocation5 + $0x7a8] ss:$16 sps:$4 sm:$0xff]  }
 0x17f   :  { %3522 = vmatprep.subr.bf16.mxu0 %v5828_v21  ;;  %v5904_v21 = vld [vmem:[#allocation5 + $0xba0] ss:$16 sps:$4 sm:$0xff]  }
 0x180   :  { %3770 = vmatmul.mubr.bf16.vlgmr.msra.gmra.mrb[4].mxu1 %v6679_v16  ;;  %v5849_v16 = vld [vmem:[#allocation5 + $0x66c] ss:$16 sps:$4 sm:$0xff]  }
 0x181   :  { %3512 = vmatmul.mubr.bf16.vlgmr.msra.gmra.mrb[0].mxu0 %v6713_v35  ;;  %3781 = vmatpush1.bf16.msra.mxu1 %v5829_v55  ;;  %v5915_v55 = vld [vmem:[#allocation5 + $0x7cc] ss:$16 sps:$4 sm:$0xff]  }
 0x182   :  { %3523 = vmatpush1.bf16.msra.mxu0 %v5826_v33  ;;  %3782 = vmatprep.subr.bf16.mxu1 %v5837_v37  ;;  %v5912_v33 = vld [vmem:[#allocation5 + $0xbc4] ss:$16 sps:$4 sm:$0xff]   ;;  %v5913_v37 = vld [vmem:[#allocation5 + $0x7c8] ss:$16 sps:$4 sm:$0xff]  }
 0x183   :  { %3524 = vmatprep.subr.bf16.mxu0 %v5834_v9  ;;  %3554 = vmatprep.mubr.bf16.mxu0 %v6719_v39  ;;  %v5910_v9 = vld [vmem:[#allocation5 + $0xbc0] ss:$16 sps:$4 sm:$0xff]  }
 0x184   :  { %3812 = vmatprep.mubr.bf16.mxu1 %v6689_v25  ;;  %v5853_v25 = vld [vmem:[#allocation5 + $0x688] ss:$16 sps:$4 sm:$0xff]  }
 0x185   :  { %3783 = vmatpush1.bf16.msra.mxu1 %v5835_v29  ;;  %v5921_v29 = vld [vmem:[#allocation5 + $0x7ec] ss:$16 sps:$4 sm:$0xff]  }
 0x186   :  { %3525 = vmatpush1.bf16.msra.mxu0 %v5832_v28  ;;  %3784 = vmatprep.subr.bf16.mxu1 %v5843_v41  ;;  %v5918_v28 = vld [vmem:[#allocation5 + $0xbe4] ss:$16 sps:$4 sm:$0xff]   ;;  %v5919_v41 = vld [vmem:[#allocation5 + $0x7e8] ss:$16 sps:$4 sm:$0xff]  }
 0x187   :  { %3526 = vmatprep.subr.bf16.mxu0 %v5840_v40  ;;  %v5916_v40 = vld [vmem:[#allocation5 + $0xbe0] ss:$16 sps:$4 sm:$0xff]  }
 0x189   :  { %3785 = vmatpush1.bf16.msra.mxu1 %v5841_v38  ;;  %v5927_v38 = vld [vmem:[#allocation5 + $0x80c] ss:$16 sps:$4 sm:$0xff]  }
 0x18a   :  { %3527 = vmatpush1.bf16.msra.mxu0 %v5838_v42  ;;  %3786 = vmatprep.subr.bf16.mxu1 %v5849_v16  ;;  %v5924_v42 = vld [vmem:[#allocation5 + $0xc04] ss:$16 sps:$4 sm:$0xff]   ;;  %v5925_v16 = vld [vmem:[#allocation5 + $0x808] ss:$16 sps:$4 sm:$0xff]  }
 0x18b   :  { %3528 = vmatprep.subr.bf16.mxu0 %v5846_v43  ;;  %v5922_v43 = vld [vmem:[#allocation5 + $0xc00] ss:$16 sps:$4 sm:$0xff]  }
 0x18d   :  { %3787 = vmatpush1.bf16.msra.mxu1 %v5847_v45  ;;  %v5930_v45 = vld [vmem:[#allocation5 + $0xc24] ss:$16 sps:$4 sm:$0xff]  }
 0x18e   :  { %3529 = vmatpush1.bf16.msra.mxu0 %v5844_v44  ;;  %3788 = vmatprep.subr.bf16.mxu1 %v5855_v47  ;;  %v6735_v44 = vcombine.low %v6709_v34, %v6715_v36  ;;  %v6739_v47 = vld [vmem:[#allocation2 + $0x70] sm:$0xff]  ;;  %v5939_v36 = vld [vmem:[#allocation5 + $0x84c] ss:$16 sps:$4 sm:$0xff]  }
 0x18f   :  { %3530 = vmatprep.subr.bf16.mxu0 %v5852_v46  ;;  %v6737_v46 = vld [vmem:[#allocation2 + $0x30] sm:$0xff] }
 0x190   :  { %v5936_v34 = vld [vmem:[#allocation5 + $0xc44] ss:$16 sps:$4 sm:$0xff]  }
 0x191   :  { %3789 = vmatpush1.bf16.msra.mxu1 %v5853_v25  ;;  %v5928_v25 = vld [vmem:[#allocation5 + $0xc20] ss:$16 sps:$4 sm:$0xff]  }
 0x192   :  { %3531 = vmatpush1.bf16.msra.mxu0 %v5850_v48  ;;  %3790 = vmatprep.subr.bf16.mxu1 %v5861_v50  ;;  %v5933_v48 = vld [vmem:[#allocation5 + $0x82c] ss:$16 sps:$4 sm:$0xff]   ;;  %v6743_v50 = vcombine.high %v6737_v46, %v6739_v47 }
 0x193   :  { %3532 = vmatprep.subr.bf16.mxu0 %v5858_v49  ;;  %v6725_v56 = vpop.f32.mrb[0].mxu1  ;;  %v5931_v49 = vld [vmem:[#allocation5 + $0x828] ss:$16 sps:$4 sm:$0xff]  }
 0x194   :  { %v6727_v57 = vpop.f32.mrb[1].mxu1 }
 0x195   :  { %v6729_v58 = vpop.f32.mrb[2].mxu1  ;;  %3791 = vmatpush1.bf16.msra.mxu1 %v5859_v52  ;;  %v5937_v52 = vld [vmem:[#allocation5 + $0x848] ss:$16 sps:$4 sm:$0xff]  }
 0x196   :  { %3533 = vmatpush1.bf16.msra.mxu0 %v5856_v51  ;;  %v6731_v61 = vpop.f32.mrb[3].mxu1  ;;  %3792 = vmatprep.subr.bf16.mxu1 %v5867_v54  ;;  %v5934_v51 = vld [vmem:[#allocation5 + $0xc40] ss:$16 sps:$4 sm:$0xff]   ;;  %v5945_v54 = vld [vmem:[#allocation5 + $0x86c] ss:$16 sps:$4 sm:$0xff]  }
 0x197   :  { %3534 = vmatprep.subr.bf16.mxu0 %v5864_v53  ;;  %v5942_v53 = vld [vmem:[#allocation5 + $0xc64] ss:$16 sps:$4 sm:$0xff]  }
 0x199   :  { %3793 = vmatpush1.bf16.msra.mxu1 %v5865_v60  ;;  %v5948_v60 = vld [vmem:[#allocation5 + $0xc84] ss:$16 sps:$4 sm:$0xff]  }
 0x19a   :  { %3535 = vmatpush1.bf16.msra.mxu0 %v5862_v59  ;;  %3794 = vmatprep.subr.bf16.mxu1 %v5873_v63  ;;  %v5940_v59 = vld [vmem:[#allocation5 + $0xc60] ss:$16 sps:$4 sm:$0xff]  }
 0x19b   :  { %3536 = vmatprep.subr.bf16.mxu0 %v5870_v62  ;;  %v5951_v62 = vld [vmem:[#allocation5 + $0x88c] ss:$16 sps:$4 sm:$0xff]   ;;  %v5946_v63 = vld [vmem:[#allocation5 + $0xc80] ss:$16 sps:$4 sm:$0xff]  }
 0x19d   :  { %3795 = vmatpush1.bf16.msra.mxu1 %v5871_v1  ;;  %v5954_v1 = vld [vmem:[#allocation5 + $0xca4] ss:$16 sps:$4 sm:$0xff]  }
 0x19e   :  { %3537 = vmatpush1.bf16.msra.mxu0 %v5868_v0  ;;  %3796 = vmatprep.subr.bf16.mxu1 %v5879_v3  ;;  %v5949_v0 = vld [vmem:[#allocation5 + $0x888] ss:$16 sps:$4 sm:$0xff]  }
 0x19f   :  { %3538 = vmatprep.subr.bf16.mxu0 %v5876_v2  ;;  %v5952_v2 = vld [vmem:[#allocation5 + $0xca0] ss:$16 sps:$4 sm:$0xff]   ;;  %v5955_v3 = vld [vmem:[#allocation5 + $0x8a8] ss:$16 sps:$4 sm:$0xff]  }
 0x1a1   :  { %3797 = vmatpush1.bf16.msra.mxu1 %v5877_v5  ;;  %v5963_v5 = vld [vmem:[#allocation5 + $0x8cc] ss:$16 sps:$4 sm:$0xff]  }
 0x1a2   :  { %3539 = vmatpush1.bf16.msra.mxu0 %v5874_v4  ;;  %3798 = vmatprep.subr.bf16.mxu1 %v5885_v7  ;;  %v5960_v4 = vld [vmem:[#allocation5 + $0xcc4] ss:$16 sps:$4 sm:$0xff]   ;;  %v5961_v7 = vld [vmem:[#allocation5 + $0x8c8] ss:$16 sps:$4 sm:$0xff]  }
 0x1a3   :  { %3540 = vmatprep.subr.bf16.mxu0 %v5882_v6  ;;  %v5958_v6 = vld [vmem:[#allocation5 + $0xcc0] ss:$16 sps:$4 sm:$0xff]  }
 0x1a5   :  { %3799 = vmatpush1.bf16.msra.mxu1 %v5883_v11  ;;  %v5969_v11 = vld [vmem:[#allocation5 + $0x8ec] ss:$16 sps:$4 sm:$0xff]  }
 0x1a6   :  { %3541 = vmatpush1.bf16.msra.mxu0 %v5880_v10  ;;  %3800 = vmatprep.subr.bf16.mxu1 %v5891_v13  ;;  %v5966_v10 = vld [vmem:[#allocation5 + $0xce4] ss:$16 sps:$4 sm:$0xff]   ;;  %v5967_v13 = vld [vmem:[#allocation5 + $0x8e8] ss:$16 sps:$4 sm:$0xff]  }
 0x1a7   :  { %3542 = vmatprep.subr.bf16.mxu0 %v5888_v12  ;;  %v5964_v12 = vld [vmem:[#allocation5 + $0xce0] ss:$16 sps:$4 sm:$0xff]  }
 0x1a9   :  { %3801 = vmatpush1.bf16.msra.mxu1 %v5889_v15  ;;  %v5975_v15 = vld [vmem:[#allocation5 + $0x90c] ss:$16 sps:$4 sm:$0xff]  }
 0x1aa   :  { %3543 = vmatpush1.bf16.msra.mxu0 %v5886_v14  ;;  %3802 = vmatprep.subr.bf16.mxu1 %v5897_v18  ;;  %v5972_v14 = vld [vmem:[#allocation5 + $0xd04] ss:$16 sps:$4 sm:$0xff]   ;;  %v5973_v18 = vld [vmem:[#allocation5 + $0x908] ss:$16 sps:$4 sm:$0xff]  }
 0x1ab   :  { %3544 = vmatprep.subr.bf16.mxu0 %v5894_v17  ;;  %v5970_v17 = vld [vmem:[#allocation5 + $0xd00] ss:$16 sps:$4 sm:$0xff]  }
 0x1ad   :  { %3803 = vmatpush1.bf16.msra.mxu1 %v5895_v20  ;;  %v5981_v20 = vld [vmem:[#allocation5 + $0x92c] ss:$16 sps:$4 sm:$0xff]  }
 0x1ae   :  { %3545 = vmatpush1.bf16.msra.mxu0 %v5892_v19  ;;  %3804 = vmatprep.subr.bf16.mxu1 %v5903_v24  ;;  %v5978_v19 = vld [vmem:[#allocation5 + $0xd24] ss:$16 sps:$4 sm:$0xff]   ;;  %v5979_v24 = vld [vmem:[#allocation5 + $0x928] ss:$16 sps:$4 sm:$0xff]  }
 0x1af   :  { %3546 = vmatprep.subr.bf16.mxu0 %v5900_v23  ;;  %v5976_v23 = vld [vmem:[#allocation5 + $0xd20] ss:$16 sps:$4 sm:$0xff]  }
 0x1b1   :  { %3805 = vmatpush1.bf16.msra.mxu1 %v5901_v8  ;;  %v5987_v8 = vld [vmem:[#allocation5 + $0x94c] ss:$16 sps:$4 sm:$0xff]  }
 0x1b2   :  { %3547 = vmatpush1.bf16.msra.mxu0 %v5898_v26  ;;  %3806 = vmatprep.subr.bf16.mxu1 %v5909_v31  ;;  %v5984_v26 = vld [vmem:[#allocation5 + $0xd44] ss:$16 sps:$4 sm:$0xff]   ;;  %v5985_v31 = vld [vmem:[#allocation5 + $0x948] ss:$16 sps:$4 sm:$0xff]  }
 0x1b3   :  { %3548 = vmatprep.subr.bf16.mxu0 %v5906_v30  ;;  %v5982_v30 = vld [vmem:[#allocation5 + $0xd40] ss:$16 sps:$4 sm:$0xff]  }
 0x1b5   :  { %3807 = vmatpush1.bf16.msra.mxu1 %v5907_v22  ;;  %v5993_v22 = vld [vmem:[#allocation5 + $0x96c] ss:$16 sps:$4 sm:$0xff]  }
 0x1b6   :  { %3549 = vmatpush1.bf16.msra.mxu0 %v5904_v21  ;;  %3808 = vmatprep.subr.bf16.mxu1 %v5915_v55  ;;  %v5990_v21 = vld [vmem:[#allocation5 + $0xd64] ss:$16 sps:$4 sm:$0xff]   ;;  %v5991_v55 = vld [vmem:[#allocation5 + $0x968] ss:$16 sps:$4 sm:$0xff]  }
 0x1b7   :  { %3550 = vmatprep.subr.bf16.mxu0 %v5912_v33  ;;  %v5988_v33 = vld [vmem:[#allocation5 + $0xd60] ss:$16 sps:$4 sm:$0xff]  }
 0x1b9   :  { %3809 = vmatpush1.bf16.msra.mxu1 %v5913_v37  ;;  %v5999_v37 = vld [vmem:[#allocation5 + $0x98c] ss:$16 sps:$4 sm:$0xff]  }
 0x1ba   :  { %3551 = vmatpush1.bf16.msra.mxu0 %v5910_v9  ;;  %3810 = vmatprep.subr.bf16.mxu1 %v5921_v29  ;;  %v5996_v9 = vld [vmem:[#allocation5 + $0xd84] ss:$16 sps:$4 sm:$0xff]   ;;  %v5997_v29 = vld [vmem:[#allocation5 + $0x988] ss:$16 sps:$4 sm:$0xff]  }
 0x1bb   :  { %3552 = vmatprep.subr.bf16.mxu0 %v5918_v28  ;;  %v5994_v28 = vld [vmem:[#allocation5 + $0xd80] ss:$16 sps:$4 sm:$0xff]  }
 0x1bd   :  { %3811 = vmatpush1.bf16.msra.mxu1 %v5919_v41  ;;  %v6005_v41 = vld [vmem:[#allocation5 + $0x9ac] ss:$16 sps:$4 sm:$0xff]  }
 0x1be   :  { %3553 = vmatpush1.bf16.msra.mxu0 %v5916_v40  ;;  %3823 = vmatprep.subr.bf16.mxu1 %v5927_v38  ;;  %v6002_v40 = vld [vmem:[#allocation5 + $0xda4] ss:$16 sps:$4 sm:$0xff]   ;;  %v6003_v38 = vld [vmem:[#allocation5 + $0x9a8] ss:$16 sps:$4 sm:$0xff]  }
 0x1bf   :  { %3565 = vmatprep.subr.bf16.mxu0 %v5924_v42  ;;  %v6000_v42 = vld [vmem:[#allocation5 + $0xda0] ss:$16 sps:$4 sm:$0xff]  }
 0x1c0   :  { %3813 = vmatmul.mubr.bf16.vlgmr.msra.gmra.mrb[4].mxu1 %v6695_v27  ;;  %v5943_v27 = vld [vmem:[#allocation5 + $0x868] ss:$16 sps:$4 sm:$0xff]  }
 0x1c1   :  { %3555 = vmatmul.mubr.bf16.vlgmr.msra.gmra.mrb[0].mxu0 %v6735_v44  ;;  %3824 = vmatpush1.bf16.msra.mxu1 %v5925_v16  ;;  %v6011_v16 = vld [vmem:[#allocation5 + $0x9cc] ss:$16 sps:$4 sm:$0xff]  }
 0x1c2   :  { %3566 = vmatpush1.bf16.msra.mxu0 %v5922_v43  ;;  %3825 = vmatprep.subr.bf16.mxu1 %v5933_v48  ;;  %v6008_v43 = vld [vmem:[#allocation5 + $0xdc4] ss:$16 sps:$4 sm:$0xff]   ;;  %v6009_v48 = vld [vmem:[#allocation5 + $0x9c8] ss:$16 sps:$4 sm:$0xff]  }
 0x1c3   :  { %3567 = vmatprep.subr.bf16.mxu0 %v5930_v45  ;;  %3597 = vmatprep.mubr.bf16.mxu0 %v6743_v50  ;;  %v6006_v45 = vld [vmem:[#allocation5 + $0xdc0] ss:$16 sps:$4 sm:$0xff]  }
 0x1c4   :  { %3855 = vmatprep.mubr.bf16.mxu1 %v6703_v32  ;;  %v5957_v32 = vld [vmem:[#allocation5 + $0x8ac] ss:$16 sps:$4 sm:$0xff]  }
 0x1c5   :  { %3826 = vmatpush1.bf16.msra.mxu1 %v5931_v49  ;;  %v6017_v49 = vld [vmem:[#allocation5 + $0x9ec] ss:$16 sps:$4 sm:$0xff]  }
 0x1c6   :  { %3568 = vmatpush1.bf16.msra.mxu0 %v5928_v25  ;;  %3827 = vmatprep.subr.bf16.mxu1 %v5939_v36  ;;  %v6014_v25 = vld [vmem:[#allocation5 + $0xde4] ss:$16 sps:$4 sm:$0xff]   ;;  %v6015_v36 = vld [vmem:[#allocation5 + $0x9e8] ss:$16 sps:$4 sm:$0xff]  }
 0x1c7   :  { %3569 = vmatprep.subr.bf16.mxu0 %v5936_v34  ;;  %v6012_v34 = vld [vmem:[#allocation5 + $0xde0] ss:$16 sps:$4 sm:$0xff]  }
 0x1c9   :  { %3828 = vmatpush1.bf16.msra.mxu1 %v5937_v52  ;;  %v6023_v52 = vld [vmem:[#allocation5 + $0xa0c] ss:$16 sps:$4 sm:$0xff]  }
 0x1ca   :  { %3570 = vmatpush1.bf16.msra.mxu0 %v5934_v51  ;;  %3829 = vmatprep.subr.bf16.mxu1 %v5945_v54  ;;  %v6020_v51 = vld [vmem:[#allocation5 + $0xe04] ss:$16 sps:$4 sm:$0xff]   ;;  %v6753_v54 = vld [vmem:[#allocation2 + $0x38] sm:$0xff] }
 0x1cb   :  { %3571 = vmatprep.subr.bf16.mxu0 %v5942_v53  ;;  %v6751_v53 = vcombine.low %v6737_v46, %v6739_v47  ;;  %v6024_v46 = vld [vmem:[#allocation5 + $0xe20] ss:$16 sps:$4 sm:$0xff]   ;;  %v6027_v47 = vld [vmem:[#allocation5 + $0xa28] ss:$16 sps:$4 sm:$0xff]  }
 0x1cd   :  { %3830 = vmatpush1.bf16.msra.mxu1 %v5943_v27  ;;  %v6018_v27 = vld [vmem:[#allocation5 + $0xe00] ss:$16 sps:$4 sm:$0xff]  }
 0x1ce   :  { %3572 = vmatpush1.bf16.msra.mxu0 %v5940_v59  ;;  %3831 = vmatprep.subr.bf16.mxu1 %v5951_v62  ;;  %v6755_v59 = vld [vmem:[#allocation2 + $0x78] sm:$0xff]  ;;  %v6026_v62 = vld [vmem:[#allocation5 + $0xe24] ss:$16 sps:$4 sm:$0xff]  }
 0x1cf   :  { %3573 = vmatprep.subr.bf16.mxu0 %v5948_v60  ;;  %v6021_v60 = vld [vmem:[#allocation5 + $0xa08] ss:$16 sps:$4 sm:$0xff]  }
 0x1d1   :  { %3832 = vmatpush1.bf16.msra.mxu1 %v5949_v0  ;;  %v6759_v0 = vcombine.high %v6753_v54, %v6755_v59 }
 0x1d2   :  { %3574 = vmatpush1.bf16.msra.mxu0 %v5946_v63  ;;  %3833 = vmatprep.subr.bf16.mxu1 %v5957_v32  ;;  %v6029_v63 = vld [vmem:[#allocation5 + $0xa2c] ss:$16 sps:$4 sm:$0xff]  }
 0x1d3   :  { %3575 = vmatprep.subr.bf16.mxu0 %v5954_v1  ;;  %v6032_v1 = vld [vmem:[#allocation5 + $0xe44] ss:$16 sps:$4 sm:$0xff]   ;;  %v6035_v32 = vld [vmem:[#allocation5 + $0xa4c] ss:$16 sps:$4 sm:$0xff]  }
 0x1d5   :  { %3834 = vmatpush1.bf16.msra.mxu1 %v5955_v3  ;;  %v6033_v3 = vld [vmem:[#allocation5 + $0xa48] ss:$16 sps:$4 sm:$0xff]  }
 0x1d6   :  { %3576 = vmatpush1.bf16.msra.mxu0 %v5952_v2  ;;  %3835 = vmatprep.subr.bf16.mxu1 %v5963_v5  ;;  %v6030_v2 = vld [vmem:[#allocation5 + $0xe40] ss:$16 sps:$4 sm:$0xff]  }
 0x1d7   :  { %3577 = vmatprep.subr.bf16.mxu0 %v5960_v4  ;;  %v6038_v4 = vld [vmem:[#allocation5 + $0xe64] ss:$16 sps:$4 sm:$0xff]   ;;  %v6036_v5 = vld [vmem:[#allocation5 + $0xe60] ss:$16 sps:$4 sm:$0xff]  }
 0x1d9   :  { %3836 = vmatpush1.bf16.msra.mxu1 %v5961_v7  ;;  %v6044_v7 = vld [vmem:[#allocation5 + $0xe84] ss:$16 sps:$4 sm:$0xff]  }
 0x1da   :  { %3578 = vmatpush1.bf16.msra.mxu0 %v5958_v6  ;;  %3837 = vmatprep.subr.bf16.mxu1 %v5969_v11  ;;  %v6039_v6 = vld [vmem:[#allocation5 + $0xa68] ss:$16 sps:$4 sm:$0xff]   ;;  %v6042_v11 = vld [vmem:[#allocation5 + $0xe80] ss:$16 sps:$4 sm:$0xff]  }
 0x1db   :  { %3579 = vmatprep.subr.bf16.mxu0 %v5966_v10  ;;  %v6047_v10 = vld [vmem:[#allocation5 + $0xa8c] ss:$16 sps:$4 sm:$0xff]  }
 0x1dd   :  { %3838 = vmatpush1.bf16.msra.mxu1 %v5967_v13  ;;  %v6053_v13 = vld [vmem:[#allocation5 + $0xaac] ss:$16 sps:$4 sm:$0xff]  }
 0x1de   :  { %3580 = vmatpush1.bf16.msra.mxu0 %v5964_v12  ;;  %3839 = vmatprep.subr.bf16.mxu1 %v5975_v15  ;;  %v6050_v12 = vld [vmem:[#allocation5 + $0xea4] ss:$16 sps:$4 sm:$0xff]   ;;  %v6051_v15 = vld [vmem:[#allocation5 + $0xaa8] ss:$16 sps:$4 sm:$0xff]  }
 0x1df   :  { %3581 = vmatprep.subr.bf16.mxu0 %v5972_v14  ;;  %v6048_v14 = vld [vmem:[#allocation5 + $0xea0] ss:$16 sps:$4 sm:$0xff]  }
 0x1e1   :  { %3840 = vmatpush1.bf16.msra.mxu1 %v5973_v18  ;;  %v6059_v18 = vld [vmem:[#allocation5 + $0xacc] ss:$16 sps:$4 sm:$0xff]  }
 0x1e2   :  { %3582 = vmatpush1.bf16.msra.mxu0 %v5970_v17  ;;  %3841 = vmatprep.subr.bf16.mxu1 %v5981_v20  ;;  %v6056_v17 = vld [vmem:[#allocation5 + $0xec4] ss:$16 sps:$4 sm:$0xff]   ;;  %v6057_v20 = vld [vmem:[#allocation5 + $0xac8] ss:$16 sps:$4 sm:$0xff]  }
 0x1e3   :  { %3583 = vmatprep.subr.bf16.mxu0 %v5978_v19  ;;  %v6054_v19 = vld [vmem:[#allocation5 + $0xec0] ss:$16 sps:$4 sm:$0xff]  }
 0x1e5   :  { %3842 = vmatpush1.bf16.msra.mxu1 %v5979_v24  ;;  %v6065_v24 = vld [vmem:[#allocation5 + $0xaec] ss:$16 sps:$4 sm:$0xff]  }
 0x1e6   :  { %3584 = vmatpush1.bf16.msra.mxu0 %v5976_v23  ;;  %3843 = vmatprep.subr.bf16.mxu1 %v5987_v8  ;;  %v6062_v23 = vld [vmem:[#allocation5 + $0xee4] ss:$16 sps:$4 sm:$0xff]   ;;  %v6063_v8 = vld [vmem:[#allocation5 + $0xae8] ss:$16 sps:$4 sm:$0xff]  }
 0x1e7   :  { %3585 = vmatprep.subr.bf16.mxu0 %v5984_v26  ;;  %v6060_v26 = vld [vmem:[#allocation5 + $0xee0] ss:$16 sps:$4 sm:$0xff]  }
 0x1e9   :  { %3844 = vmatpush1.bf16.msra.mxu1 %v5985_v31  ;;  %v6071_v31 = vld [vmem:[#allocation5 + $0xb0c] ss:$16 sps:$4 sm:$0xff]  }
 0x1ea   :  { %3586 = vmatpush1.bf16.msra.mxu0 %v5982_v30  ;;  %3845 = vmatprep.subr.bf16.mxu1 %v5993_v22  ;;  %v6068_v30 = vld [vmem:[#allocation5 + $0xf04] ss:$16 sps:$4 sm:$0xff]   ;;  %v6069_v22 = vld [vmem:[#allocation5 + $0xb08] ss:$16 sps:$4 sm:$0xff]  }
 0x1eb   :  { %3587 = vmatprep.subr.bf16.mxu0 %v5990_v21  ;;  %v6066_v21 = vld [vmem:[#allocation5 + $0xf00] ss:$16 sps:$4 sm:$0xff]  }
 0x1ed   :  { %3846 = vmatpush1.bf16.msra.mxu1 %v5991_v55  ;;  %v6077_v55 = vld [vmem:[#allocation5 + $0xb2c] ss:$16 sps:$4 sm:$0xff]  }
 0x1ee   :  { %3588 = vmatpush1.bf16.msra.mxu0 %v5988_v33  ;;  %3847 = vmatprep.subr.bf16.mxu1 %v5999_v37  ;;  %v6074_v33 = vld [vmem:[#allocation5 + $0xf24] ss:$16 sps:$4 sm:$0xff]   ;;  %v6075_v37 = vld [vmem:[#allocation5 + $0xb28] ss:$16 sps:$4 sm:$0xff]  }
 0x1ef   :  { %3589 = vmatprep.subr.bf16.mxu0 %v5996_v9  ;;  %v6072_v9 = vld [vmem:[#allocation5 + $0xf20] ss:$16 sps:$4 sm:$0xff]  }
 0x1f1   :  { %3848 = vmatpush1.bf16.msra.mxu1 %v5997_v29  ;;  %v6083_v29 = vld [vmem:[#allocation5 + $0xb4c] ss:$16 sps:$4 sm:$0xff]  }
 0x1f2   :  { %3590 = vmatpush1.bf16.msra.mxu0 %v5994_v28  ;;  %3849 = vmatprep.subr.bf16.mxu1 %v6005_v41  ;;  %v6080_v28 = vld [vmem:[#allocation5 + $0xf44] ss:$16 sps:$4 sm:$0xff]   ;;  %v6081_v41 = vld [vmem:[#allocation5 + $0xb48] ss:$16 sps:$4 sm:$0xff]  }
 0x1f3   :  { %3591 = vmatprep.subr.bf16.mxu0 %v6002_v40  ;;  %v6078_v40 = vld [vmem:[#allocation5 + $0xf40] ss:$16 sps:$4 sm:$0xff]  }
 0x1f5   :  { %3850 = vmatpush1.bf16.msra.mxu1 %v6003_v38  ;;  %v6089_v38 = vld [vmem:[#allocation5 + $0xb6c] ss:$16 sps:$4 sm:$0xff]  }
 0x1f6   :  { %3592 = vmatpush1.bf16.msra.mxu0 %v6000_v42  ;;  %3851 = vmatprep.subr.bf16.mxu1 %v6011_v16  ;;  %v6086_v42 = vld [vmem:[#allocation5 + $0xf64] ss:$16 sps:$4 sm:$0xff]   ;;  %v6087_v16 = vld [vmem:[#allocation5 + $0xb68] ss:$16 sps:$4 sm:$0xff]  }
 0x1f7   :  { %3593 = vmatprep.subr.bf16.mxu0 %v6008_v43  ;;  %v6084_v43 = vld [vmem:[#allocation5 + $0xf60] ss:$16 sps:$4 sm:$0xff]  }
 0x1f9   :  { %3852 = vmatpush1.bf16.msra.mxu1 %v6009_v48  ;;  %v6095_v48 = vld [vmem:[#allocation5 + $0xb8c] ss:$16 sps:$4 sm:$0xff]  }
 0x1fa   :  { %3594 = vmatpush1.bf16.msra.mxu0 %v6006_v45  ;;  %3853 = vmatprep.subr.bf16.mxu1 %v6017_v49  ;;  %v6092_v45 = vld [vmem:[#allocation5 + $0xf84] ss:$16 sps:$4 sm:$0xff]   ;;  %v6093_v49 = vld [vmem:[#allocation5 + $0xb88] ss:$16 sps:$4 sm:$0xff]  }
 0x1fb   :  { %3595 = vmatprep.subr.bf16.mxu0 %v6014_v25  ;;  %v6090_v25 = vld [vmem:[#allocation5 + $0xf80] ss:$16 sps:$4 sm:$0xff]  }
 0x1fd   :  { %3854 = vmatpush1.bf16.msra.mxu1 %v6015_v36  ;;  %v6101_v36 = vld [vmem:[#allocation5 + $0xbac] ss:$16 sps:$4 sm:$0xff]  }
 0x1fe   :  { %3596 = vmatpush1.bf16.msra.mxu0 %v6012_v34  ;;  %3866 = vmatprep.subr.bf16.mxu1 %v6023_v52  ;;  %v6098_v34 = vld [vmem:[#allocation5 + $0xfa4] ss:$16 sps:$4 sm:$0xff]   ;;  %v6099_v52 = vld [vmem:[#allocation5 + $0xba8] ss:$16 sps:$4 sm:$0xff]  }
 0x1ff   :  { %3608 = vmatprep.subr.bf16.mxu0 %v6020_v51  ;;  %v6096_v51 = vld [vmem:[#allocation5 + $0xfa0] ss:$16 sps:$4 sm:$0xff]  }
 0x200   :  { %3856 = vmatmul.mubr.bf16.vlgmr.msra.gmra.mrb[4].mxu1 %v6713_v35  ;;  %v6041_v35 = vld [vmem:[#allocation5 + $0xa6c] ss:$16 sps:$4 sm:$0xff]  }
 0x201   :  { %3598 = vmatmul.mubr.bf16.vlgmr.msra.gmra.mrb[0].mxu0 %v6751_v53  ;;  %3867 = vmatpush1.bf16.msra.mxu1 %v6021_v60  ;;  %v6107_v60 = vld [vmem:[#allocation5 + $0xbcc] ss:$16 sps:$4 sm:$0xff]  }
 0x202   :  { %3609 = vmatpush1.bf16.msra.mxu0 %v6018_v27  ;;  %3868 = vmatprep.subr.bf16.mxu1 %v6029_v63  ;;  %v6104_v27 = vld [vmem:[#allocation5 + $0xfc4] ss:$16 sps:$4 sm:$0xff]   ;;  %v6105_v63 = vld [vmem:[#allocation5 + $0xbc8] ss:$16 sps:$4 sm:$0xff]  }
 0x203   :  { %3610 = vmatprep.subr.bf16.mxu0 %v6026_v62  ;;  %3640 = vmatprep.mubr.bf16.mxu0 %v6759_v0  ;;  %v6102_v62 = vld [vmem:[#allocation5 + $0xfc0] ss:$16 sps:$4 sm:$0xff]  }
 0x204   :  { %3898 = vmatprep.mubr.bf16.mxu1 %v6719_v39  ;;  %v6045_v39 = vld [vmem:[#allocation5 + $0xa88] ss:$16 sps:$4 sm:$0xff]  }
 0x205   :  { %3869 = vmatpush1.bf16.msra.mxu1 %v6027_v47  ;;  %v6113_v47 = vld [vmem:[#allocation5 + $0xbec] ss:$16 sps:$4 sm:$0xff]  }
 0x206   :  { %3611 = vmatpush1.bf16.msra.mxu0 %v6024_v46  ;;  %3870 = vmatprep.subr.bf16.mxu1 %v6035_v32  ;;  %v6110_v46 = vld [vmem:[#allocation5 + $0xfe4] ss:$16 sps:$4 sm:$0xff]   ;;  %v6111_v32 = vld [vmem:[#allocation5 + $0xbe8] ss:$16 sps:$4 sm:$0xff]  }
 0x207   :  { %3612 = vmatprep.subr.bf16.mxu0 %v6032_v1  ;;  %v6108_v1 = vld [vmem:[#allocation5 + $0xfe0] ss:$16 sps:$4 sm:$0xff]  }
 0x209   :  { %3871 = vmatpush1.bf16.msra.mxu1 %v6033_v3  ;;  %v6767_v3 = vcombine.low %v6753_v54, %v6755_v59  ;;  %v6213_v54 = vld [vmem:[#allocation8 + $0x10] ss:$8 sps:$4 sm:$0xff]   ;;  %v6218_v59 = vld [vmem:[#allocation8 + $0x24] ss:$8 sps:$4 sm:$0xff]  }
 0x20a   :  { %3613 = vmatpush1.bf16.msra.mxu0 %v6030_v2  ;;  %3872 = vmatprep.subr.bf16.mxu1 %v6041_v35  ;;  %v6116_v2 = vld [vmem:[#allocation5 + $0xc0c] ss:$16 sps:$4 sm:$0xff]  }
 0x20b   :  { %3614 = vmatprep.subr.bf16.mxu0 %v6038_v4  ;;  %v6114_v4 = vld [vmem:[#allocation5 + $0xc08] ss:$16 sps:$4 sm:$0xff]   ;;  %v6119_v35 = vld [vmem:[#allocation5 + $0xc2c] ss:$16 sps:$4 sm:$0xff]  }
 0x20d   :  { %3873 = vmatpush1.bf16.msra.mxu1 %v6039_v6  ;;  %v6212_v6 = vld [vmem:[#allocation8 + $0x4] ss:$8 sps:$4 sm:$0xff]  }
 0x20e   :  { %3615 = vmatpush1.bf16.msra.mxu0 %v6036_v5  ;;  %3874 = vmatprep.subr.bf16.mxu1 %v6047_v10  ;;  %v6210_v5 = vld [vmem:[#allocation8] ss:$8 sps:$4 sm:$0xff]   ;;  %v6215_v10 = vld [vmem:[#allocation8 + $0x14] ss:$8 sps:$4 sm:$0xff]  }
 0x20f   :  { %3616 = vmatprep.subr.bf16.mxu0 %v6044_v7  ;;  %v6117_v7 = vld [vmem:[#allocation5 + $0xc28] ss:$16 sps:$4 sm:$0xff]  }
 0x211   :  { %3875 = vmatpush1.bf16.msra.mxu1 %v6045_v39  ;;  %v6120_v39 = vld [vmem:[#allocation5 + $0xc48] ss:$16 sps:$4 sm:$0xff]  }
 0x212   :  { %3617 = vmatpush1.bf16.msra.mxu0 %v6042_v11  ;;  %3876 = vmatprep.subr.bf16.mxu1 %v6053_v13  ;;  %v6122_v11 = vld [vmem:[#allocation5 + $0xc4c] ss:$16 sps:$4 sm:$0xff]   ;;  %v6221_v13 = vld [vmem:[#allocation8 + $0x34] ss:$8 sps:$4 sm:$0xff]  }
 0x213   :  { %3618 = vmatprep.subr.bf16.mxu0 %v6050_v12  ;;  %v6125_v12 = vld [vmem:[#allocation5 + $0xc6c] ss:$16 sps:$4 sm:$0xff]  }
 0x215   :  { %3877 = vmatpush1.bf16.msra.mxu1 %v6051_v15  ;;  %v6219_v15 = vld [vmem:[#allocation8 + $0x30] ss:$8 sps:$4 sm:$0xff]  }
 0x216   :  { %3619 = vmatpush1.bf16.msra.mxu0 %v6048_v14  ;;  %3878 = vmatprep.subr.bf16.mxu1 %v6059_v18  ;;  %v6123_v14 = vld [vmem:[#allocation5 + $0xc68] ss:$16 sps:$4 sm:$0xff]  }
 0x217   :  { %3620 = vmatprep.subr.bf16.mxu0 %v6056_v17  ;;  %v6224_v17 = vld [vmem:[#allocation8 + $0x44] ss:$8 sps:$4 sm:$0xff]  }
 0x218   :  { %v6126_v18 = vld [vmem:[#allocation5 + $0xc88] ss:$16 sps:$4 sm:$0xff]  }
 0x219   :  { %3879 = vmatpush1.bf16.msra.mxu1 %v6057_v20  ;;  %v6222_v20 = vld [vmem:[#allocation8 + $0x40] ss:$8 sps:$4 sm:$0xff]  }
 0x21a   :  { %3621 = vmatpush1.bf16.msra.mxu0 %v6054_v19  ;;  %3880 = vmatprep.subr.bf16.mxu1 %v6065_v24  ;;  %v6131_v19 = vld [vmem:[#allocation5 + $0xcac] ss:$16 sps:$4 sm:$0xff]   ;;  %v6129_v24 = vld [vmem:[#allocation5 + $0xca8] ss:$16 sps:$4 sm:$0xff]  }
 0x21b   :  { %3622 = vmatprep.subr.bf16.mxu0 %v6062_v23  ;;  %v6227_v23 = vld [vmem:[#allocation8 + $0x54] ss:$8 sps:$4 sm:$0xff]  }
 0x21d   :  { %3881 = vmatpush1.bf16.msra.mxu1 %v6063_v8  ;;  %v6225_v8 = vld [vmem:[#allocation8 + $0x50] ss:$8 sps:$4 sm:$0xff]  }
 0x21e   :  { %3623 = vmatpush1.bf16.msra.mxu0 %v6060_v26  ;;  %3882 = vmatprep.subr.bf16.mxu1 %v6071_v31  ;;  %v6134_v26 = vld [vmem:[#allocation5 + $0xccc] ss:$16 sps:$4 sm:$0xff]   ;;  %v6132_v31 = vld [vmem:[#allocation5 + $0xcc8] ss:$16 sps:$4 sm:$0xff]  }
 0x21f   :  { %3624 = vmatprep.subr.bf16.mxu0 %v6068_v30  ;;  %v6230_v30 = vld [vmem:[#allocation8 + $0x64] ss:$8 sps:$4 sm:$0xff]  }
 0x221   :  { %3883 = vmatpush1.bf16.msra.mxu1 %v6069_v22  ;;  %v6228_v22 = vld [vmem:[#allocation8 + $0x60] ss:$8 sps:$4 sm:$0xff]  }
 0x222   :  { %3625 = vmatpush1.bf16.msra.mxu0 %v6066_v21  ;;  %3884 = vmatprep.subr.bf16.mxu1 %v6077_v55  ;;  %v6137_v21 = vld [vmem:[#allocation5 + $0xcec] ss:$16 sps:$4 sm:$0xff]   ;;  %v6135_v55 = vld [vmem:[#allocation5 + $0xce8] ss:$16 sps:$4 sm:$0xff]  }
 0x223   :  { %3626 = vmatprep.subr.bf16.mxu0 %v6074_v33  ;;  %v6233_v33 = vld [vmem:[#allocation8 + $0x74] ss:$8 sps:$4 sm:$0xff]  }
 0x225   :  { %3885 = vmatpush1.bf16.msra.mxu1 %v6075_v37  ;;  %v6231_v37 = vld [vmem:[#allocation8 + $0x70] ss:$8 sps:$4 sm:$0xff]  }
 0x226   :  { %3627 = vmatpush1.bf16.msra.mxu0 %v6072_v9  ;;  %3886 = vmatprep.subr.bf16.mxu1 %v6083_v29  ;;  %v6140_v9 = vld [vmem:[#allocation5 + $0xd0c] ss:$16 sps:$4 sm:$0xff]   ;;  %v6138_v29 = vld [vmem:[#allocation5 + $0xd08] ss:$16 sps:$4 sm:$0xff]  }
 0x227   :  { %3628 = vmatprep.subr.bf16.mxu0 %v6080_v28  ;;  %v6236_v28 = vld [vmem:[#allocation8 + $0x84] ss:$8 sps:$4 sm:$0xff]  }
 0x229   :  { %3887 = vmatpush1.bf16.msra.mxu1 %v6081_v41  ;;  %v6234_v41 = vld [vmem:[#allocation8 + $0x80] ss:$8 sps:$4 sm:$0xff]  }
 0x22a   :  { %3629 = vmatpush1.bf16.msra.mxu0 %v6078_v40  ;;  %3888 = vmatprep.subr.bf16.mxu1 %v6089_v38  ;;  %v6143_v40 = vld [vmem:[#allocation5 + $0xd2c] ss:$16 sps:$4 sm:$0xff]   ;;  %v6141_v38 = vld [vmem:[#allocation5 + $0xd28] ss:$16 sps:$4 sm:$0xff]  }
 0x22b   :  { %3630 = vmatprep.subr.bf16.mxu0 %v6086_v42  ;;  %v6239_v42 = vld [vmem:[#allocation8 + $0x94] ss:$8 sps:$4 sm:$0xff]  }
 0x22d   :  { %3889 = vmatpush1.bf16.msra.mxu1 %v6087_v16  ;;  %v6237_v16 = vld [vmem:[#allocation8 + $0x90] ss:$8 sps:$4 sm:$0xff]  }
 0x22e   :  { %3631 = vmatpush1.bf16.msra.mxu0 %v6084_v43  ;;  %3890 = vmatprep.subr.bf16.mxu1 %v6095_v48  ;;  %v6146_v43 = vld [vmem:[#allocation5 + $0xd4c] ss:$16 sps:$4 sm:$0xff]   ;;  %v6144_v48 = vld [vmem:[#allocation5 + $0xd48] ss:$16 sps:$4 sm:$0xff]  }
 0x22f   :  { %3632 = vmatprep.subr.bf16.mxu0 %v6092_v45  ;;  %v6242_v45 = vld [vmem:[#allocation8 + $0xa4] ss:$8 sps:$4 sm:$0xff]  }
 0x231   :  { %3891 = vmatpush1.bf16.msra.mxu1 %v6093_v49  ;;  %v6240_v49 = vld [vmem:[#allocation8 + $0xa0] ss:$8 sps:$4 sm:$0xff]  }
 0x232   :  { %3633 = vmatpush1.bf16.msra.mxu0 %v6090_v25  ;;  %3892 = vmatprep.subr.bf16.mxu1 %v6101_v36  ;;  %v6149_v25 = vld [vmem:[#allocation5 + $0xd6c] ss:$16 sps:$4 sm:$0xff]   ;;  %v6147_v36 = vld [vmem:[#allocation5 + $0xd68] ss:$16 sps:$4 sm:$0xff]  }
 0x233   :  { %3634 = vmatprep.subr.bf16.mxu0 %v6098_v34  ;;  %v6245_v34 = vld [vmem:[#allocation8 + $0xb4] ss:$8 sps:$4 sm:$0xff]  }
 0x235   :  { %3893 = vmatpush1.bf16.msra.mxu1 %v6099_v52  ;;  %v6243_v52 = vld [vmem:[#allocation8 + $0xb0] ss:$8 sps:$4 sm:$0xff]  }
 0x236   :  { %3635 = vmatpush1.bf16.msra.mxu0 %v6096_v51  ;;  %3894 = vmatprep.subr.bf16.mxu1 %v6107_v60  ;;  %v6152_v51 = vld [vmem:[#allocation5 + $0xd8c] ss:$16 sps:$4 sm:$0xff]   ;;  %v6150_v60 = vld [vmem:[#allocation5 + $0xd88] ss:$16 sps:$4 sm:$0xff]  }
 0x237   :  { %3636 = vmatprep.subr.bf16.mxu0 %v6104_v27  ;;  %v6248_v27 = vld [vmem:[#allocation8 + $0xc4] ss:$8 sps:$4 sm:$0xff]  }
 0x239   :  { %3895 = vmatpush1.bf16.msra.mxu1 %v6105_v63  ;;  %v6246_v63 = vld [vmem:[#allocation8 + $0xc0] ss:$8 sps:$4 sm:$0xff]  }
 0x23a   :  { %3637 = vmatpush1.bf16.msra.mxu0 %v6102_v62  ;;  %3896 = vmatprep.subr.bf16.mxu1 %v6113_v47  ;;  %v6155_v62 = vld [vmem:[#allocation5 + $0xdac] ss:$16 sps:$4 sm:$0xff]   ;;  %v6153_v47 = vld [vmem:[#allocation5 + $0xda8] ss:$16 sps:$4 sm:$0xff]  }
 0x23b   :  { %3638 = vmatprep.subr.bf16.mxu0 %v6110_v46  ;;  %v6251_v46 = vld [vmem:[#allocation8 + $0xd4] ss:$8 sps:$4 sm:$0xff]  }
 0x23d   :  { %3897 = vmatpush1.bf16.msra.mxu1 %v6111_v32  ;;  %v6249_v32 = vld [vmem:[#allocation8 + $0xd0] ss:$8 sps:$4 sm:$0xff]  }
 0x23e   :  { %3639 = vmatpush1.bf16.msra.mxu0 %v6108_v1  ;;  %3909 = vmatprep.subr.bf16.mxu1 %v6116_v2  ;;  %v6158_v1 = vld [vmem:[#allocation5 + $0xdcc] ss:$16 sps:$4 sm:$0xff]   ;;  %v6156_v2 = vld [vmem:[#allocation5 + $0xdc8] ss:$16 sps:$4 sm:$0xff]  }
 0x23f   :  { %4403 = vmatprep.subr.bf16.mxu0 %v6212_v6  ;;  %v6162_v6 = vld [vmem:[#allocation5 + $0xe08] ss:$16 sps:$4 sm:$0xff]  }
 0x240   :  { %3899 = vmatmul.mubr.bf16.vlgmr.msra.gmra.mrb[4].mxu1 %v6735_v44  ;;  %v6216_v44 = vld [vmem:[#allocation8 + $0x20] ss:$8 sps:$4 sm:$0xff]  }
 0x241   :  { %3641 = vmatmul.mubr.bf16.vlgmr.msra.gmra.mrb[0].mxu0 %v6767_v3  ;;  %3910 = vmatpush1.bf16.msra.mxu1 %v6114_v4  ;;  %v6161_v4 = vld [vmem:[#allocation5 + $0xdec] ss:$16 sps:$4 sm:$0xff]  }
 0x242   :  { %3941 = vmatprep.mubr.bf16.mxu1 %v6743_v50  ;;  %3911 = vmatprep.subr.bf16.mxu1 %v6119_v35  ;;  %v6128_v50 = vld [vmem:[#allocation5 + $0xc8c] ss:$16 sps:$4 sm:$0xff]   ;;  %v6159_v35 = vld [vmem:[#allocation5 + $0xde8] ss:$16 sps:$4 sm:$0xff]  }
 0x243   :  { %4404 = vmatpush1.bf16.msra.mxu0 %v6210_v5  ;;  %v6164_v5 = vld [vmem:[#allocation5 + $0xe0c] ss:$16 sps:$4 sm:$0xff]  }
 0x244   :  { %4405 = vmatprep.subr.bf16.mxu0 %v6215_v10  ;;  %v6165_v10 = vld [vmem:[#allocation5 + $0xe28] ss:$16 sps:$4 sm:$0xff]  }
 0x245   :  { %3912 = vmatpush1.bf16.msra.mxu1 %v6117_v7  ;;  %v6167_v7 = vld [vmem:[#allocation5 + $0xe2c] ss:$16 sps:$4 sm:$0xff]  }
 0x246   :  { %3913 = vmatprep.subr.bf16.mxu1 %v6122_v11  ;;  %v6170_v11 = vld [vmem:[#allocation5 + $0xe4c] ss:$16 sps:$4 sm:$0xff]  }
 0x247   :  { %4406 = vmatpush1.bf16.msra.mxu0 %v6213_v54  ;;  %v6168_v54 = vld [vmem:[#allocation5 + $0xe48] ss:$16 sps:$4 sm:$0xff]  }
 0x248   :  { %4407 = vmatprep.subr.bf16.mxu0 %v6218_v59  ;;  %v6173_v59 = vld [vmem:[#allocation5 + $0xe6c] ss:$16 sps:$4 sm:$0xff]  }
 0x249   :  { %3914 = vmatpush1.bf16.msra.mxu1 %v6120_v39  ;;  %v6171_v39 = vld [vmem:[#allocation5 + $0xe68] ss:$16 sps:$4 sm:$0xff]  }
 0x24a   :  { %3915 = vmatprep.subr.bf16.mxu1 %v6125_v12  ;;  %v6176_v12 = vld [vmem:[#allocation5 + $0xe8c] ss:$16 sps:$4 sm:$0xff]  }
 0x24b   :  { %4408 = vmatpush1.bf16.msra.mxu0 %v6216_v44  ;;  %v6174_v44 = vld [vmem:[#allocation5 + $0xe88] ss:$16 sps:$4 sm:$0xff]  }
 0x24c   :  { %4409 = vmatprep.subr.bf16.mxu0 %v6221_v13  ;;  %v6179_v13 = vld [vmem:[#allocation5 + $0xeac] ss:$16 sps:$4 sm:$0xff]  }
 0x24d   :  { %3916 = vmatpush1.bf16.msra.mxu1 %v6123_v14  ;;  %v6182_v14 = vld [vmem:[#allocation5 + $0xecc] ss:$16 sps:$4 sm:$0xff]  }
 0x24e   :  { %3917 = vmatprep.subr.bf16.mxu1 %v6128_v50  ;;  %v6254_v50 = vld [vmem:[#allocation8 + $0xe4] ss:$8 sps:$4 sm:$0xff]  }
 0x24f   :  { %4410 = vmatpush1.bf16.msra.mxu0 %v6219_v15  ;;  %v6252_v15 = vld [vmem:[#allocation8 + $0xe0] ss:$8 sps:$4 sm:$0xff]  }
 0x250   :  { %4411 = vmatprep.subr.bf16.mxu0 %v6224_v17  ;;  %v6185_v17 = vld [vmem:[#allocation5 + $0xeec] ss:$16 sps:$4 sm:$0xff]  }
 0x251   :  { %3918 = vmatpush1.bf16.msra.mxu1 %v6126_v18  ;;  %v6257_v18 = vld [vmem:[#allocation8 + $0xf4] ss:$8 sps:$4 sm:$0xff]  }
 0x252   :  { %3919 = vmatprep.subr.bf16.mxu1 %v6131_v19  ;;  %v6183_v19 = vld [vmem:[#allocation5 + $0xee8] ss:$16 sps:$4 sm:$0xff]  }
 0x253   :  { %4412 = vmatpush1.bf16.msra.mxu0 %v6222_v20  ;;  %v6255_v20 = vld [vmem:[#allocation8 + $0xf0] ss:$8 sps:$4 sm:$0xff]  }
 0x254   :  { %4413 = vmatprep.subr.bf16.mxu0 %v6227_v23  ;;  %v6188_v23 = vld [vmem:[#allocation5 + $0xf0c] ss:$16 sps:$4 sm:$0xff]  }
 0x255   :  { %3920 = vmatpush1.bf16.msra.mxu1 %v6129_v24  ;;  %v6186_v24 = vld [vmem:[#allocation5 + $0xf08] ss:$16 sps:$4 sm:$0xff]  }
 0x256   :  { %3921 = vmatprep.subr.bf16.mxu1 %v6134_v26  ;;  %v6191_v26 = vld [vmem:[#allocation5 + $0xf2c] ss:$16 sps:$4 sm:$0xff]  }
 0x257   :  { %4414 = vmatpush1.bf16.msra.mxu0 %v6225_v8  ;;  %v6260_v8 = vld [vmem:[#allocation8 + $0x104] ss:$8 sps:$4 sm:$0xff]  }
 0x258   :  { %4415 = vmatprep.subr.bf16.mxu0 %v6230_v30  ;;  %v6189_v30 = vld [vmem:[#allocation5 + $0xf28] ss:$16 sps:$4 sm:$0xff]  }
 0x259   :  { %3922 = vmatpush1.bf16.msra.mxu1 %v6132_v31  ;;  %v6194_v31 = vld [vmem:[#allocation5 + $0xf4c] ss:$16 sps:$4 sm:$0xff]  }
 0x25a   :  { %3923 = vmatprep.subr.bf16.mxu1 %v6137_v21  ;;  %v6192_v21 = vld [vmem:[#allocation5 + $0xf48] ss:$16 sps:$4 sm:$0xff]  }
 0x25b   :  { %4416 = vmatpush1.bf16.msra.mxu0 %v6228_v22  ;;  %v6197_v22 = vld [vmem:[#allocation5 + $0xf6c] ss:$16 sps:$4 sm:$0xff]  }
 0x25c   :  { %4417 = vmatprep.subr.bf16.mxu0 %v6233_v33  ;;  %v6195_v33 = vld [vmem:[#allocation5 + $0xf68] ss:$16 sps:$4 sm:$0xff]  }
 0x25d   :  { %3924 = vmatpush1.bf16.msra.mxu1 %v6135_v55  ;;  %v6200_v55 = vld [vmem:[#allocation5 + $0xf8c] ss:$16 sps:$4 sm:$0xff]  }
 0x25e   :  { %3925 = vmatprep.subr.bf16.mxu1 %v6140_v9  ;;  %v6198_v9 = vld [vmem:[#allocation5 + $0xf88] ss:$16 sps:$4 sm:$0xff]  }
 0x25f   :  { %4418 = vmatpush1.bf16.msra.mxu0 %v6231_v37  ;;  %v6203_v37 = vld [vmem:[#allocation5 + $0xfac] ss:$16 sps:$4 sm:$0xff]  }
 0x260   :  { %4419 = vmatprep.subr.bf16.mxu0 %v6236_v28  ;;  %v6201_v28 = vld [vmem:[#allocation5 + $0xfa8] ss:$16 sps:$4 sm:$0xff]  }
 0x261   :  { %3926 = vmatpush1.bf16.msra.mxu1 %v6138_v29  ;;  %v6206_v29 = vld [vmem:[#allocation5 + $0xfcc] ss:$16 sps:$4 sm:$0xff]  }
 0x262   :  { %3927 = vmatprep.subr.bf16.mxu1 %v6143_v40  ;;  %v6204_v40 = vld [vmem:[#allocation5 + $0xfc8] ss:$16 sps:$4 sm:$0xff]  }
 0x263   :  { %4420 = vmatpush1.bf16.msra.mxu0 %v6234_v41  ;;  %v6209_v41 = vld [vmem:[#allocation5 + $0xfec] ss:$16 sps:$4 sm:$0xff]  }
 0x264   :  { %4421 = vmatprep.subr.bf16.mxu0 %v6239_v42  ;;  %v6207_v42 = vld [vmem:[#allocation5 + $0xfe8] ss:$16 sps:$4 sm:$0xff]  }
 0x265   :  { %3928 = vmatpush1.bf16.msra.mxu1 %v6141_v38  ;;  %v647_v38 = vlaneseq }
 0x266   :  { %3929 = vmatprep.subr.bf16.mxu1 %v6146_v43 }
 0x267   :  { %4422 = vmatpush1.bf16.msra.mxu0 %v6237_v16  ;;  %v6775_v43 = vshrl.u32 %v647_v38, 7  ;;  %v6300_v38 = vld [vmem:[#allocation8 + $0x1e0] ss:$8 sps:$4 sm:$0xff]  }
 0x268   :  { %4423 = vmatprep.subr.bf16.mxu0 %v6242_v45  ;;  %v6778_v45 = vld [vmem:[#allocation7] sm:$0xf] }
 0x269   :  { %3930 = vmatpush1.bf16.msra.mxu1 %v6144_v48  ;;  %v649_v16 = vsub.s32 0, %v6775_v43  ;;  %v653_v48 = vsub.s32 1, %v6775_v43 }
 0x26a   :  { %3931 = vmatprep.subr.bf16.mxu1 %v6149_v25 }
 0x26b   :  { %4424 = vmatpush1.bf16.msra.mxu0 %v6240_v49  ;;  %v650_v25 = vrot.slane %v6778_v45, %v649_v16  ;;  %v654_v49 = vrot.slane %v6778_v45, %v653_v48 }
 0x26c   :  { %4425 = vmatprep.subr.bf16.mxu0 %v6245_v34 }
 0x26d   :  { %3932 = vmatpush1.bf16.msra.mxu1 %v6147_v36  ;;  %v3342_v34 = vadd.f32 %v6725_v56, %v650_v25 }
 0x26e   :  { %3933 = vmatprep.subr.bf16.mxu1 %v6152_v51  ;;  %v3346_v51 = vadd.f32 %v6729_v58, %v650_v25  ;;  %v6306_v58 = vld [vmem:[#allocation11 + $0x40] sm:$0xff]   ;;  %v6305_v25 = vld [vmem:[#allocation8 + $0x1f4] ss:$8 sps:$4 sm:$0xff]  }
 0x26f   :  { %4426 = vmatpush1.bf16.msra.mxu0 %v6243_v52 }
 0x270   :  { %4427 = vmatprep.subr.bf16.mxu0 %v6248_v27 }
 0x271   :  { %3934 = vmatpush1.bf16.msra.mxu1 %v6150_v60  ;;  %v3348_v60 = vadd.f32 %v6731_v61, %v654_v49  ;;  %v6261_v61 = vld [vmem:[#allocation8 + $0x110] ss:$8 sps:$4 sm:$0xff]  }
 0x272   :  { %3935 = vmatprep.subr.bf16.mxu1 %v6155_v62 }
 0x273   :  { %4428 = vmatpush1.bf16.msra.mxu0 %v6246_v63 }
 0x274   :  { %4429 = vmatprep.subr.bf16.mxu0 %v6251_v46 }
 0x275   :  { %3936 = vmatpush1.bf16.msra.mxu1 %v6153_v47 }
 0x276   :  { %3937 = vmatprep.subr.bf16.mxu1 %v6158_v1 }
 0x277   :  { %4430 = vmatpush1.bf16.msra.mxu0 %v6249_v32 }
 0x278   :  { %4431 = vmatprep.subr.bf16.mxu0 %v6254_v50  ;;  %v6313_v50 = vld [vmem:[#allocation11 + $0x18] sm:$0xff]  }
 0x279   :  { %3938 = vmatpush1.bf16.msra.mxu1 %v6156_v2 }
 0x27a   :  { %3939 = vmatprep.subr.bf16.mxu1 %v6161_v4 }
 0x27b   :  { %4432 = vmatpush1.bf16.msra.mxu0 %v6252_v15  ;;  %v6270_v15 = vld [vmem:[#allocation8 + $0x140] ss:$8 sps:$4 sm:$0xff]  }
 0x27c   :  { %4433 = vmatprep.subr.bf16.mxu0 %v6257_v18  ;;  %v6315_v18 = vld [vmem:[#allocation11 + $0x20] sm:$0xff]  }
 0x27d   :  { %3940 = vmatpush1.bf16.msra.mxu1 %v6159_v35 }
 0x27e   :  { %3952 = vmatprep.subr.bf16.mxu1 %v6164_v5 }
 0x27f   :  { %4434 = vmatpush1.bf16.msra.mxu0 %v6255_v20  ;;  %v6273_v20 = vld [vmem:[#allocation8 + $0x150] ss:$8 sps:$4 sm:$0xff]  }
 0x280   :  { %3942 = vmatmul.mubr.bf16.vlgmr.msra.gmra.mrb[4].mxu1 %v6751_v53  ;;  %v6177_v53 = vld [vmem:[#allocation5 + $0xea8] ss:$16 sps:$4 sm:$0xff]   ;;  %4446 = vmatprep.subr.bf16.mxu0 %v6260_v8  ;;  %v6279_v8 = vld [vmem:[#allocation8 + $0x170] ss:$8 sps:$4 sm:$0xff]  }
 0x281   :  { %3953 = vmatpush1.bf16.msra.mxu1 %v6162_v6  ;;  %3984 = vmatprep.mubr.bf16.mxu1 %v6759_v0  ;;  %v6180_v0 = vld [vmem:[#allocation5 + $0xec8] ss:$16 sps:$4 sm:$0xff]   ;;  %v6258_v6 = vld [vmem:[#allocation8 + $0x100] ss:$8 sps:$4 sm:$0xff]  }
 0x282   :  { %3954 = vmatprep.subr.bf16.mxu1 %v6167_v7  ;;  %v6307_v7 = vld [vmem:[#allocation11] sm:$0xff]  }
 0x285   :  { %3955 = vmatpush1.bf16.msra.mxu1 %v6165_v10  ;;  %v6308_v10 = vld [vmem:[#allocation11 + $0x48] sm:$0xff]  }
 0x286   :  { %3956 = vmatprep.subr.bf16.mxu1 %v6170_v11  ;;  %v6266_v11 = vld [vmem:[#allocation8 + $0x124] ss:$8 sps:$4 sm:$0xff]  }
 0x289   :  { %3957 = vmatpush1.bf16.msra.mxu1 %v6168_v54  ;;  %v6309_v54 = vld [vmem:[#allocation11 + $0x8] sm:$0xff]  }
 0x28a   :  { %3958 = vmatprep.subr.bf16.mxu1 %v6173_v59  ;;  %v6310_v59 = vld [vmem:[#allocation11 + $0x50] sm:$0xff]  }
 0x28d   :  { %3959 = vmatpush1.bf16.msra.mxu1 %v6171_v39  ;;  %v6264_v39 = vld [vmem:[#allocation8 + $0x120] ss:$8 sps:$4 sm:$0xff]  }
 0x28e   :  { %3960 = vmatprep.subr.bf16.mxu1 %v6176_v12  ;;  %v6269_v12 = vld [vmem:[#allocation8 + $0x134] ss:$8 sps:$4 sm:$0xff]  }
 0x291   :  { %3961 = vmatpush1.bf16.msra.mxu1 %v6174_v44  ;;  %v6311_v44 = vld [vmem:[#allocation11 + $0x10] sm:$0xff]  }
 0x292   :  { %3962 = vmatprep.subr.bf16.mxu1 %v6179_v13  ;;  %v6312_v13 = vld [vmem:[#allocation11 + $0x58] sm:$0xff]  }
 0x295   :  { %3963 = vmatpush1.bf16.msra.mxu1 %v6177_v53  ;;  %v6267_v53 = vld [vmem:[#allocation8 + $0x130] ss:$8 sps:$4 sm:$0xff]  }
 0x296   :  { %3964 = vmatprep.subr.bf16.mxu1 %v6182_v14  ;;  %v6272_v14 = vld [vmem:[#allocation8 + $0x144] ss:$8 sps:$4 sm:$0xff]  }
 0x299   :  { %3965 = vmatpush1.bf16.msra.mxu1 %v6180_v0  ;;  %v6314_v0 = vld [vmem:[#allocation11 + $0x60] sm:$0xff]  }
 0x29a   :  { %3966 = vmatprep.subr.bf16.mxu1 %v6185_v17  ;;  %v6275_v17 = vld [vmem:[#allocation8 + $0x154] ss:$8 sps:$4 sm:$0xff]  }
 0x29d   :  { %3967 = vmatpush1.bf16.msra.mxu1 %v6183_v19  ;;  %v6316_v19 = vld [vmem:[#allocation11 + $0x68] sm:$0xff]  }
 0x29e   :  { %3968 = vmatprep.subr.bf16.mxu1 %v6188_v23  ;;  %v6278_v23 = vld [vmem:[#allocation8 + $0x164] ss:$8 sps:$4 sm:$0xff]  }
 0x2a1   :  { %3969 = vmatpush1.bf16.msra.mxu1 %v6186_v24  ;;  %v6276_v24 = vld [vmem:[#allocation8 + $0x160] ss:$8 sps:$4 sm:$0xff]  }
 0x2a2   :  { %3970 = vmatprep.subr.bf16.mxu1 %v6191_v26  ;;  %v6281_v26 = vld [vmem:[#allocation8 + $0x174] ss:$8 sps:$4 sm:$0xff]  }
 0x2a5   :  { %3971 = vmatpush1.bf16.msra.mxu1 %v6189_v30  ;;  %v6284_v30 = vld [vmem:[#allocation8 + $0x184] ss:$8 sps:$4 sm:$0xff]  }
 0x2a6   :  { %3972 = vmatprep.subr.bf16.mxu1 %v6194_v31  ;;  %v6282_v31 = vld [vmem:[#allocation8 + $0x180] ss:$8 sps:$4 sm:$0xff]  }
 0x2a9   :  { %3973 = vmatpush1.bf16.msra.mxu1 %v6192_v21  ;;  %v6287_v21 = vld [vmem:[#allocation8 + $0x194] ss:$8 sps:$4 sm:$0xff]  }
 0x2aa   :  { %3974 = vmatprep.subr.bf16.mxu1 %v6197_v22  ;;  %v6285_v22 = vld [vmem:[#allocation8 + $0x190] ss:$8 sps:$4 sm:$0xff]  }
 0x2ad   :  { %3975 = vmatpush1.bf16.msra.mxu1 %v6195_v33  ;;  %v6290_v33 = vld [vmem:[#allocation8 + $0x1a4] ss:$8 sps:$4 sm:$0xff]  }
 0x2ae   :  { %3976 = vmatprep.subr.bf16.mxu1 %v6200_v55  ;;  %v6288_v55 = vld [vmem:[#allocation8 + $0x1a0] ss:$8 sps:$4 sm:$0xff]  }
 0x2b1   :  { %3977 = vmatpush1.bf16.msra.mxu1 %v6198_v9  ;;  %v6293_v9 = vld [vmem:[#allocation8 + $0x1b4] ss:$8 sps:$4 sm:$0xff]  }
 0x2b2   :  { %3978 = vmatprep.subr.bf16.mxu1 %v6203_v37  ;;  %v6291_v37 = vld [vmem:[#allocation8 + $0x1b0] ss:$8 sps:$4 sm:$0xff]  }
 0x2b5   :  { %3979 = vmatpush1.bf16.msra.mxu1 %v6201_v28  ;;  %v6296_v28 = vld [vmem:[#allocation8 + $0x1c4] ss:$8 sps:$4 sm:$0xff]  }
 0x2b6   :  { %3980 = vmatprep.subr.bf16.mxu1 %v6206_v29  ;;  %v6294_v29 = vld [vmem:[#allocation8 + $0x1c0] ss:$8 sps:$4 sm:$0xff]  }
 0x2b9   :  { %3981 = vmatpush1.bf16.msra.mxu1 %v6204_v40  ;;  %v6299_v40 = vld [vmem:[#allocation8 + $0x1d4] ss:$8 sps:$4 sm:$0xff]  }
 0x2ba   :  { %3982 = vmatprep.subr.bf16.mxu1 %v6209_v41  ;;  %v6297_v41 = vld [vmem:[#allocation8 + $0x1d0] ss:$8 sps:$4 sm:$0xff]  }
 0x2bd   :  { %3983 = vmatpush1.bf16.msra.mxu1 %v6207_v42  ;;  %v6302_v42 = vld [vmem:[#allocation8 + $0x1e4] ss:$8 sps:$4 sm:$0xff]  }
 0x2be   :  { %5333 = vmatprep.subr.bf16.mxu1 %v6306_v58  ;;  %v6320_v58 = vld [vmem:[#allocation11 + $0x78] sm:$0xff]  }
 0x2c0   :  { %3985 = vmatmul.mubr.bf16.vlgmr.msra.gmra.mrb[4].mxu1 %v6767_v3  ;;  %v3344_v3 = vadd.f32 %v6727_v57, %v654_v49  ;;  %v6263_v57 = vld [vmem:[#allocation8 + $0x114] ss:$8 sps:$4 sm:$0xff]   ;;  %v6303_v49 = vld [vmem:[#allocation8 + $0x1f0] ss:$8 sps:$4 sm:$0xff]  }
 0x2c1   :  { %5334 = vmatpush3.bf16.msra.mxu1 %v6307_v7  ;;  %v6321_v7 = vld [vmem:[#allocation11 + $0x38] sm:$0xff]  }
 0x2c2   :  { %5335 = vmatprep.subr.bf16.mxu1 %v6308_v10  ;;  %v4071_v10 = vld [vmem:[#allocation10] sm:$0x3] }
 0x2c5   :  { %5336 = vmatpush3.bf16.msra.mxu1 %v6309_v54 }
 0x2c6   :  { %5337 = vmatprep.subr.bf16.mxu1 %v6310_v59 }
 0x2c9   :  { %5338 = vmatpush3.bf16.msra.mxu1 %v6311_v44 }
 0x2ca   :  { %5339 = vmatprep.subr.bf16.mxu1 %v6312_v13 }
 0x2cd   :  { %5340 = vmatpush3.bf16.msra.mxu1 %v6313_v50 }
 0x2ce   :  { %5341 = vmatprep.subr.bf16.mxu1 %v6314_v0 }
 0x2d1   :  { %5342 = vmatpush3.bf16.msra.mxu1 %v6315_v18 }
 0x2d2   :  { %5343 = vmatprep.subr.bf16.mxu1 %v6316_v19 }
 0x314   :  { %v3642_v36 = vpop.f32.mrb[0].mxu0 }
 0x315   :  { %v5356_v52 = vadd.f32 %v3642_v36, %v3342_v34  ;;  %v3644_v27 = vpop.f32.mrb[1].mxu0  ;;  %v657_v34 = vsub.s32 2, %v6775_v43 }
 0x316   :  { %v5358_v62 = vadd.f32 %v3644_v27, %v3344_v3  ;;  %v3646_v63 = vpop.f32.mrb[2].mxu0  ;;  %v661_v3 = vsub.s32 3, %v6775_v43 }
 0x317   :  { %v5360_v46 = vadd.f32 %v3646_v63, %v3346_v51  ;;  %v3648_v47 = vpop.f32.mrb[3].mxu0  ;;  %v3995_v32 = vmax.f32 %v5356_v52, 0.0  ;;  %v658_v36 = vrot.slane %v6778_v45, %v657_v34 }
 0x318   :  { %v5362_v1 = vadd.f32 %v3648_v47, %v3348_v60  ;;  %v3996_v4 = vmax.f32 %v5358_v62, 0.0  ;;  %v662_v51 = vrot.slane %v6778_v45, %v661_v3  ;;  %v6319_v45 = vld [vmem:[#allocation11 + $0x30] sm:$0xff]  }
 0x319   :  { %v3999_v2 = vmax.f32 %v5360_v46, 0.0 }
 0x31a   :  { %v4000_v35 = vmax.f32 %v5362_v1, 0.0 }
 0x31b   :  { %v4003_v5 = vpack.c.bf16 %v3999_v2, %v3995_v32 }
 0x31c   :  { %v4004_v56 = vpack.c.bf16 %v4000_v35, %v3996_v4 }
 0x31e   :  { %4435 = vmatprep.mubr.bf16.mxu0 %v4004_v56 }
 0x31f   :  { %4436 = vmatmul.mubr.bf16.vlgmr.msra.gmra.mrb[4].mxu0 %v4003_v5 }
 0x320   :  { %4447 = vmatpush1.bf16.msra.mxu0 %v6258_v6  ;;  %v6317_v6 = vld [vmem:[#allocation11 + $0x28] sm:$0xff]  }
 0x321   :  { %4448 = vmatprep.subr.bf16.mxu0 %v6263_v57  ;;  %5344 = vmatpush3.bf16.msra.mxu1 %v6317_v6  ;;  %v6318_v57 = vld [vmem:[#allocation11 + $0x70] sm:$0xff]  }
 0x322   :  { %5345 = vmatprep.subr.bf16.mxu1 %v6318_v57 }
 0x324   :  { %4449 = vmatpush1.bf16.msra.mxu0 %v6261_v61  ;;  %v4076_v61 = vrot.slane %v4071_v10, %v649_v16 }
 0x325   :  { %4450 = vmatprep.subr.bf16.mxu0 %v6266_v11  ;;  %5346 = vmatpush3.bf16.msra.mxu1 %v6319_v45  ;;  %v4080_v11 = vrot.slane %v4071_v10, %v653_v48 }
 0x326   :  { %5347 = vmatprep.subr.bf16.mxu1 %v6320_v58 }
 0x328   :  { %4451 = vmatpush1.bf16.msra.mxu0 %v6264_v39 }
 0x329   :  { %4452 = vmatprep.subr.bf16.mxu0 %v6269_v12  ;;  %5348 = vmatpush3.bf16.msra.mxu1 %v6321_v7 }
 0x32c   :  { %4453 = vmatpush1.bf16.msra.mxu0 %v6267_v53 }
 0x32d   :  { %4454 = vmatprep.subr.bf16.mxu0 %v6272_v14 }
 0x330   :  { %4455 = vmatpush1.bf16.msra.mxu0 %v6270_v15 }
 0x331   :  { %4456 = vmatprep.subr.bf16.mxu0 %v6275_v17 }
 0x334   :  { %4457 = vmatpush1.bf16.msra.mxu0 %v6273_v20  ;;  %v5305_v20 = vld [vmem:[#allocation13] ss:$0 sm:$0xff] }
 0x335   :  { %4458 = vmatprep.subr.bf16.mxu0 %v6278_v23 }
 0x338   :  { %4459 = vmatpush1.bf16.msra.mxu0 %v6276_v24 }
 0x339   :  { %4460 = vmatprep.subr.bf16.mxu0 %v6281_v26 }
 0x33c   :  { %4461 = vmatpush1.bf16.msra.mxu0 %v6279_v8 }
 0x33d   :  { %4462 = vmatprep.subr.bf16.mxu0 %v6284_v30 }
 0x340   :  { %4463 = vmatpush1.bf16.msra.mxu0 %v6282_v31 }
 0x341   :  { %4464 = vmatprep.subr.bf16.mxu0 %v6287_v21 }
 0x344   :  { %4465 = vmatpush1.bf16.msra.mxu0 %v6285_v22 }
 0x345   :  { %4466 = vmatprep.subr.bf16.mxu0 %v6290_v33 }
 0x348   :  { %4467 = vmatpush1.bf16.msra.mxu0 %v6288_v55 }
 0x349   :  { %4468 = vmatprep.subr.bf16.mxu0 %v6293_v9 }
 0x34c   :  { %4469 = vmatpush1.bf16.msra.mxu0 %v6291_v37 }
 0x34d   :  { %4470 = vmatprep.subr.bf16.mxu0 %v6296_v28 }
 0x350   :  { %4471 = vmatpush1.bf16.msra.mxu0 %v6294_v29 }
 0x351   :  { %4472 = vmatprep.subr.bf16.mxu0 %v6299_v40 }
 0x354   :  { %4473 = vmatpush1.bf16.msra.mxu0 %v6297_v41 }
 0x355   :  { %4474 = vmatprep.subr.bf16.mxu0 %v6302_v42 }
 0x358   :  { %4475 = vmatpush1.bf16.msra.mxu0 %v6300_v38 }
 0x359   :  { %4476 = vmatprep.subr.bf16.mxu0 %v6305_v25 }
 0x35c   :  { %4477 = vmatpush1.bf16.msra.mxu0 %v6303_v49 }
 0x393   :  { %v3986_v52 = vpop.f32.mrb[4].mxu1 }
 0x394   :  { %v5363_v27 = vadd.f32 %v3986_v52, %v658_v36  ;;  %v3988_v60 = vpop.f32.mrb[5].mxu1 }
 0x395   :  { %v5364_v62 = vadd.f32 %v3988_v60, %v662_v51  ;;  %v3990_v63 = vpop.f32.mrb[6].mxu1 }
 0x396   :  { %v5365_v46 = vadd.f32 %v3990_v63, %v658_v36  ;;  %v3992_v47 = vpop.f32.mrb[7].mxu1  ;;  %v3997_v32 = vmax.f32 %v5363_v27, 0.0 }
 0x397   :  { %v5366_v1 = vadd.f32 %v3992_v47, %v662_v51  ;;  %v3998_v4 = vmax.f32 %v5364_v62, 0.0 }
 0x398   :  { %v4001_v2 = vmax.f32 %v5365_v46, 0.0 }
 0x399   :  { %v4002_v35 = vmax.f32 %v5366_v1, 0.0 }
 0x39a   :  { %v4005_v5 = vpack.c.bf16 %v4001_v2, %v3997_v32 }
 0x39b   :  { %v4006_v56 = vpack.c.bf16 %v4002_v35, %v3998_v4 }
 0x39d   :  { %4478 = vmatprep.mubr.bf16.mxu0 %v4006_v56 }
 0x39e   :  { %4479 = vmatmul.mubr.bf16.vlgmr.msra.gmra.mrb[4].mxu0 %v4005_v5 }
 0x471   :  { %v4480_v54 = vpop.f32.mrb[4].mxu0 }
 0x472   :  { %v5367_v59 = vadd.f32 %v4480_v54, %v4076_v61  ;;  %v4482_v39 = vpop.f32.mrb[5].mxu0 }
 0x473   :  { %v5368_v12 = vadd.f32 %v4482_v39, %v4080_v11  ;;  %v4484_v44 = vpop.f32.mrb[6].mxu0 }
 0x474   :  { %v5369_v13 = vadd.f32 %v4484_v44, %v4076_v61  ;;  %v4486_v53 = vpop.f32.mrb[7].mxu0  ;;  %v4489_v50 = vmax.f32 %v5367_v59, 0.0 }
 0x475   :  { %v5370_v14 = vadd.f32 %v4486_v53, %v4080_v11  ;;  %v4490_v15 = vmax.f32 %v5368_v12, 0.0 }
 0x476   :  { %v4491_v0 = vmax.f32 %v5369_v13, 0.0 }
 0x477   :  { %v4492_v17 = vmax.f32 %v5370_v14, 0.0 }
 0x478   :  { %v4493_v18 = vpack.c.bf16 %v4491_v0, %v4489_v50 }
 0x479   :  { %v4494_v19 = vpack.c.bf16 %v4492_v17, %v4490_v15 }
 0x47b   :  { %4662 = vmatprep.mubr.bf16.mxu1 %v4494_v19 }
 0x47c   :  { %4663 = vmatmul.mubr.bf16.vlgmr.msra.gmra.mrb[8].mxu1 %v4493_v18 }
 0x54f   :  { %v5349_v16 = vpop.f32.mrb[8].mxu1 }
 0x550   :  { %v5350_v43 = vpop.f32.mrb[9].mxu1 }
 0x551   :  { %v5351_v48 = vadd.f32 %v5350_v43, %v5349_v16  ;;  %v5352_v23 = vpop.f32.mrb[10].mxu1 }
 0x552   :  { %v5353_v24 = vpop.f32.mrb[11].mxu1 }
 0x553   :  { %v4665_v26 = vadd.f32 %v5351_v48, %v5305_v20  ;;  %v5354_v8 = vadd.f32 %v5353_v24, %v5352_v23 }
 0x555   :  { %v5322_v30 = vmul.f32 -1.442695, %v4665_v26  ;;  %v4668_v31 = vadd.f32 %v5354_v8, %v5305_v20 }
 0x557   :  { %6322 = vpow2.f32 %v5322_v30  ;;  %v5323_v21 = vmul.f32 -1.442695, %v4668_v31 }
 0x559   :  { %6324 = vpow2.f32 %v5323_v21 }
 0x561   :  { %v6323_v22 = vpop.eup %6322 }
 0x562   :  { %v4677_v33 = vadd.f32 1.0, %v6323_v22 }
 0x563   :  { %v6325_v55 = vpop.eup %6324 }
 0x564   :  { %v4678_v9 = vadd.f32 1.0, %v6325_v55  ;;  %6326 = vrcp.f32 %v4677_v33 }
 0x566   :  { %6328 = vrcp.f32 %v4678_v9 }
 0x56e   :  { %v6327_v37 = vpop.eup %6326 }
 0x570   :  { %v6329_v28 = vpop.eup %6328 }
 0x571   :  { %v5331_v29 = vpack.c.bf16 %v6329_v28, %v6327_v37 }
 0x573   :  { %5332 = vst [vmem:[#allocation14] sm:$0xff] %v5331_v29  }
 0x574   :  { %6495 = shalt.err (!%p6492_p4)
}
 0x575   :  { %s6496_s20 = scalar_lea.hbm %s6821_s7, 128 }
 0x576   :  { %p6497_p5 = scmp.ne.s32.totalorder %s6821_s7, %s6496_s20  ;;  %p6500_p6 = scmp.lt.u32.totalorder %s6496_s20, %s6821_s7 }
 0x578   :  { %p6502_p7 = pnand %p6500_p6, %p6497_p5 }
 0x57a   :  { %6505 = shalt.err (!%p6502_p7)
}
 0x57b   :  { %4704 = dma.vmem_to_hbm [thread:$0]  %s4699_s17, 128, %s6821_s7, [#allocation4], %s6523_s3, %s6523_s3, %s6524_s15  }
 0x57c   :  { %6514 = dma.done.wait [#allocation4], 128  }
 0x57d   :  { %6515 = vsyncadd [#allocation4], 4294967168 }
 0x57e   :  { %4708 = vsyncpa [#allocation3], 1 }
 0x57f   :  { %4709 = vsyncpa [#allocation6], 1 }
 0x580   :  { %4710 = vsyncpa [#allocation9], 1 }
 0x581   :  { %4711 = vsyncpa [#allocation12], 1 }
 0x582   :  { %4712 = vsyncpa [#allocation4], 1 }

</bundles_post_ra>
